<compile_context>
chip_gen: v7x
topology: tpu7x:2x2x1
jax: 0.10.0
libtpu: 0.0.40
codegen_flags: <defaults>
</compile_context>

<pallas_src>
import math

import jax
import jax.numpy as jnp
from jax.experimental import pallas as pl
from jax.experimental.pallas import tpu as pltpu

K = 3      # kernel size
CIN = 8    # in channels  (fixed by the module)
COUT = 3   # out channels (fixed by the module)
P = K - 1  # full-correlation padding


def _deconv_fused_kernel(x_ref, wtab_ref, btab_ref, o_ref, xrep_s):
    # x_ref:    (NB, CIN, H,  W )  f32 VMEM  -- raw (unpadded) input samples
    # wtab_ref: (CIN*K*K, LANES)   f32 VMEM  -- flipped weights as lane vectors
    # btab_ref: (1, LANES)         f32 VMEM  -- bias as a lane vector
    # o_ref:    (NB, COUT, Ho, Wo) f32 VMEM  -- fused output (NCHW)
    # xrep_s:   (CIN, NB*Hp, COUT*Wp) f32 VMEM scratch (padded + lane-replicated)
    NB, _, H, W = x_ref.shape
    _, _, Ho, Wo = o_ref.shape
    Hp, Wp = H + 2 * P, W + 2 * P
    LANES = wtab_ref.shape[1]            # = 2*Wp + Wo
    ACC_H = (NB - 1) * Hp + Ho

    # ---- build padded, x3 lane-replicated planes on-chip (store slots are idle)
    xrep_s[...] = jnp.zeros_like(xrep_s)
    for b in range(NB):
        xb = x_ref[b]                                        # (CIN, H, W), one load
        for r in range(COUT):
            xrep_s[:, b * Hp + P:b * Hp + P + H,
                   r * Wp + P:r * Wp + P + W] = xb

    # ---- one vector FMA per (ci,kh,kw) covers all COUT channels and NB samples
    acc = jnp.broadcast_to(btab_ref[...], (ACC_H, LANES)).astype(jnp.float32)
    for ci in range(CIN):
        for kh in range(K):
            for kw in range(K):
                idx = (ci * K + kh) * K + kw
                wrow = wtab_ref[idx:idx + 1, :]                    # (1, LANES)
                tile = xrep_s[ci, kh:kh + ACC_H, kw:kw + LANES]    # ref slice -> vld
                acc = acc + wrow * tile                            # vector FMA

    # ---- fused elementwise epilogue:
    #   v4 = (y+0)*0.044715 + (0.79788456.. + y) == 1.044715*y + 0.79788456..
    #   out = (tanh(v4)+1-1)*0.5 + y*0.5         == 0.5*(tanh(v4) + y)
    out = 0.5 * (jnp.tanh(acc * 1.044715 + 0.7978845608028654) + acc)

    for b in range(NB):
        for co in range(COUT):
            o_ref[b, co, :, :] = out[b * Hp:b * Hp + Ho,
                                     co * Wp:co * Wp + Wo]


def model_forward(x, weight, bias, *, samples_per_step=None):
    """x: (N, CIN, H, W); weight: (CIN, COUT, K, K) [PyTorch ConvTranspose2d
    layout]; bias: (COUT,).  Returns the fused module output, NCHW,
    shape (N, COUT, H+K-1, W+K-1)."""
    N, cin, H, W = x.shape
    assert cin == CIN, cin
    Ho, Wo = H + P, W + P
    Hp, Wp = H + 2 * P, W + 2 * P
    LANES = 2 * Wp + Wo          # 3 lane segments of width Wp (last one trimmed)

    nb = samples_per_step if samples_per_step is not None else math.gcd(N, 4)
    assert N % nb == 0, (N, nb)

    x = x.astype(jnp.float32)

    # ConvTranspose2d (stride=1) == full correlation with the spatially flipped,
    # channel-transposed kernel.  Lay the weights out as lane vectors: lane
    # segment co (offset co*Wp, width Wo) holds w_flipped[co, ci, kh, kw].
    wf = jnp.transpose(weight[:, :, ::-1, ::-1], (1, 0, 2, 3)).astype(jnp.float32)
    wf = wf.reshape(COUT, CIN * K * K)                       # (3, 72)
    wtab = jnp.zeros((CIN * K * K, LANES), jnp.float32)
    btab = jnp.zeros((1, LANES), jnp.float32)
    for co in range(COUT):
        wtab = wtab.at[:, co * Wp:co * Wp + Wo].set(wf[co][:, None])
        btab = btab.at[:, co * Wp:co * Wp + Wo].set(bias[co].astype(jnp.float32))

    grid_spec = pltpu.PrefetchScalarGridSpec(
        num_scalar_prefetch=0,
        grid=(N // nb,),
        in_specs=[
            pl.BlockSpec((nb, CIN, H, W), lambda g: (g, 0, 0, 0)),
            pl.BlockSpec((CIN * K * K, LANES), lambda g: (0, 0)),   # resident
            pl.BlockSpec((1, LANES), lambda g: (0, 0)),             # resident
        ],
        out_specs=pl.BlockSpec((nb, COUT, Ho, Wo), lambda g: (g, 0, 0, 0)),
        scratch_shapes=[pltpu.VMEM((CIN, nb * Hp, COUT * Wp), jnp.float32)],
    )

    return pl.pallas_call(
        _deconv_fused_kernel,
        out_shape=jax.ShapeDtypeStruct((N, COUT, Ho, Wo), jnp.float32),
        grid_spec=grid_spec,
        compiler_params=pltpu.CompilerParams(
            dimension_semantics=("parallel",)),
    )(x, wtab, btab)


def ref_forward(x, weight, bias):
    """Pure-jnp reference (scatter form of ConvTranspose2d) + exact PyTorch
    elementwise chain, for validation."""
    N, _, H, W = x.shape
    Ho, Wo = H + P, W + P
    y = jnp.zeros((N, COUT, Ho, Wo), jnp.float32)
    for kh in range(K):
        for kw in range(K):
            y = y.at[:, :, kh:kh + H, kw:kw + W].add(
                jnp.einsum('nchw,cd->ndhw', x, weight[:, :, kh, kw],
                           precision=jax.lax.Precision.HIGHEST))
    y = y + bias.reshape(1, COUT, 1, 1)
    v3 = y + 0.0
    v4 = v3 * 0.044715 + (0.7978845608028654 + y)
    v5 = jnp.tanh(v4)
    v6 = v5 + 1.0 - 1.0
    return v6 * 0.5 + y * 0.5


if __name__ == "__main__":
    key = jax.random.PRNGKey(0)
    kx, kw_, kb = jax.random.split(key, 3)

    # small shapes consistent with the module (channels fixed at 8 -> 3)
    N, H, W = 2, 16, 16
    x = jax.random.normal(kx, (N, CIN, H, W), dtype=jnp.float32)

    # deterministic parameters (ConvTranspose2d weight layout: (CIN, COUT, K, K))
    weight = 0.1 * jax.random.normal(kw_, (CIN, COUT, K, K), dtype=jnp.float32)
    bias = 0.1 * jax.random.normal(kb, (COUT,), dtype=jnp.float32)

    out = jax.block_until_ready(model_forward(x, weight, bias))

    ref = ref_forward(x, weight, bias)
    assert out.shape == (N, COUT, H + P, W + P), out.shape
    max_err = float(jnp.max(jnp.abs(out - ref)))
    assert jnp.allclose(out, ref, atol=5e-4, rtol=5e-4), max_err

    print("KERNEL_OK")
</pallas_src>

<mosaic_0001>
module attributes {stable_mosaic.version = 11 : i64} {
  func.func @_deconv_fused_kernel(%arg0: i32, %arg1: memref<2x8x16x16xf32, #tpu.memory_space<vmem>>, %arg2: memref<72x58xf32, #tpu.memory_space<vmem>>, %arg3: memref<1x58xf32, #tpu.memory_space<vmem>>, %arg4: memref<2x3x18x18xf32, #tpu.memory_space<vmem>>, %arg5: memref<8x40x60xf32, #tpu.memory_space<vmem>>) attributes {dimension_semantics = [#tpu.dimension_semantics<parallel>], iteration_bounds = array<i64: 1>, scalar_prefetch = 0 : i64, scratch_operands = 1 : i64, tpu.core_type = #tpu.core_type<tc>, window_params = [{transform_indices = @transform_0, window_bounds = array<i64: 2, 8, 16, 16>}, {pipeline_mode = #tpu.pipeline_mode<synchronous>, transform_indices = @transform_1, window_bounds = array<i64: 72, 58>}, {pipeline_mode = #tpu.pipeline_mode<synchronous>, transform_indices = @transform_2, window_bounds = array<i64: 1, 58>}, {transform_indices = @transform_3, window_bounds = array<i64: 2, 3, 18, 18>}]} {
    %cst = arith.constant 0.000000e+00 : f32
    %0 = vector.broadcast %cst : f32 to vector<8x40x60xf32>
    %c0 = arith.constant 0 : index
    %c0_0 = arith.constant 0 : index
    %c0_1 = arith.constant 0 : index
    %1 = vector.load %arg5[%c0, %c0_0, %c0_1] : memref<8x40x60xf32, #tpu.memory_space<vmem>>, vector<8x40x60xf32>
    tpu.vector_store %arg5[%c0, %c0_0, %c0_1], %0 {strides = array<i32>} : memref<8x40x60xf32, #tpu.memory_space<vmem>>, vector<8x40x60xf32>,
    %c0_2 = arith.constant 0 : index
    %c0_3 = arith.constant 0 : index
    %c0_4 = arith.constant 0 : index
    %c0_5 = arith.constant 0 : index
    %2 = vector.load %arg1[%c0_2, %c0_3, %c0_4, %c0_5] : memref<2x8x16x16xf32, #tpu.memory_space<vmem>>, vector<1x8x16x16xf32>
    %3 = vector.shape_cast %2 : vector<1x8x16x16xf32> to vector<8x16x16xf32>
    %c0_6 = arith.constant 0 : index
    %c2 = arith.constant 2 : index
    %c2_7 = arith.constant 2 : index
    %4 = vector.load %arg5[%c0_6, %c2, %c2_7] : memref<8x40x60xf32, #tpu.memory_space<vmem>>, vector<8x16x16xf32>
    tpu.vector_store %arg5[%c0_6, %c2, %c2_7], %3 {strides = array<i32>} : memref<8x40x60xf32, #tpu.memory_space<vmem>>, vector<8x16x16xf32>,
    %c0_8 = arith.constant 0 : index
    %c2_9 = arith.constant 2 : index
    %c22 = arith.constant 22 : index
    %5 = vector.load %arg5[%c0_8, %c2_9, %c22] : memref<8x40x60xf32, #tpu.memory_space<vmem>>, vector<8x16x16xf32>
    tpu.vector_store %arg5[%c0_8, %c2_9, %c22], %3 {strides = array<i32>} : memref<8x40x60xf32, #tpu.memory_space<vmem>>, vector<8x16x16xf32>,
    %c0_10 = arith.constant 0 : index
    %c2_11 = arith.constant 2 : index
    %c42 = arith.constant 42 : index
    %6 = vector.load %arg5[%c0_10, %c2_11, %c42] : memref<8x40x60xf32, #tpu.memory_space<vmem>>, vector<8x16x16xf32>
    tpu.vector_store %arg5[%c0_10, %c2_11, %c42], %3 {strides = array<i32>} : memref<8x40x60xf32, #tpu.memory_space<vmem>>, vector<8x16x16xf32>,
    %c1 = arith.constant 1 : index
    %c0_12 = arith.constant 0 : index
    %c0_13 = arith.constant 0 : index
    %c0_14 = arith.constant 0 : index
    %7 = vector.load %arg1[%c1, %c0_12, %c0_13, %c0_14] : memref<2x8x16x16xf32, #tpu.memory_space<vmem>>, vector<1x8x16x16xf32>
    %8 = vector.shape_cast %7 : vector<1x8x16x16xf32> to vector<8x16x16xf32>
    %c0_15 = arith.constant 0 : index
    %c22_16 = arith.constant 22 : index
    %c2_17 = arith.constant 2 : index
    %9 = vector.load %arg5[%c0_15, %c22_16, %c2_17] : memref<8x40x60xf32, #tpu.memory_space<vmem>>, vector<8x16x16xf32>
    tpu.vector_store %arg5[%c0_15, %c22_16, %c2_17], %8 {strides = array<i32>} : memref<8x40x60xf32, #tpu.memory_space<vmem>>, vector<8x16x16xf32>,
    %c0_18 = arith.constant 0 : index
    %c22_19 = arith.constant 22 : index
    %c22_20 = arith.constant 22 : index
    %10 = vector.load %arg5[%c0_18, %c22_19, %c22_20] : memref<8x40x60xf32, #tpu.memory_space<vmem>>, vector<8x16x16xf32>
    tpu.vector_store %arg5[%c0_18, %c22_19, %c22_20], %8 {strides = array<i32>} : memref<8x40x60xf32, #tpu.memory_space<vmem>>, vector<8x16x16xf32>,
    %c0_21 = arith.constant 0 : index
    %c22_22 = arith.constant 22 : index
    %c42_23 = arith.constant 42 : index
    %11 = vector.load %arg5[%c0_21, %c22_22, %c42_23] : memref<8x40x60xf32, #tpu.memory_space<vmem>>, vector<8x16x16xf32>
    tpu.vector_store %arg5[%c0_21, %c22_22, %c42_23], %8 {strides = array<i32>} : memref<8x40x60xf32, #tpu.memory_space<vmem>>, vector<8x16x16xf32>,
    %c0_24 = arith.constant 0 : index
    %c0_25 = arith.constant 0 : index
    %12 = vector.load %arg3[%c0_24, %c0_25] : memref<1x58xf32, #tpu.memory_space<vmem>>, vector<1x58xf32>
    %13 = vector.shape_cast %12 : vector<1x58xf32> to vector<1x58xf32>
    %14 = vector.broadcast %13 : vector<1x58xf32> to vector<38x58xf32>
    %c0_26 = arith.constant 0 : index
    %c0_27 = arith.constant 0 : index
    %15 = vector.load %arg2[%c0_26, %c0_27] : memref<72x58xf32, #tpu.memory_space<vmem>>, vector<1x58xf32>
    %c0_28 = arith.constant 0 : index
    %c0_29 = arith.constant 0 : index
    %c0_30 = arith.constant 0 : index
    %16 = vector.load %arg5[%c0_28, %c0_29, %c0_30] : memref<8x40x60xf32, #tpu.memory_space<vmem>>, vector<1x38x58xf32>
    %17 = vector.shape_cast %16 : vector<1x38x58xf32> to vector<38x58xf32>
    %18 = vector.broadcast %15 : vector<1x58xf32> to vector<38x58xf32>
    %19 = arith.mulf %18, %17 : vector<38x58xf32>
    %20 = arith.addf %14, %19 : vector<38x58xf32>
    %c1_31 = arith.constant 1 : index
    %c0_32 = arith.constant 0 : index
    %21 = vector.load %arg2[%c1_31, %c0_32] : memref<72x58xf32, #tpu.memory_space<vmem>>, vector<1x58xf32>
    %c0_33 = arith.constant 0 : index
    %c0_34 = arith.constant 0 : index
    %c1_35 = arith.constant 1 : index
    %22 = vector.load %arg5[%c0_33, %c0_34, %c1_35] : memref<8x40x60xf32, #tpu.memory_space<vmem>>, vector<1x38x58xf32>
    %23 = vector.shape_cast %22 : vector<1x38x58xf32> to vector<38x58xf32>
    %24 = vector.broadcast %21 : vector<1x58xf32> to vector<38x58xf32>
    %25 = arith.mulf %24, %23 : vector<38x58xf32>
    %26 = arith.addf %20, %25 : vector<38x58xf32>
    %c2_36 = arith.constant 2 : index
    %c0_37 = arith.constant 0 : index
    %27 = vector.load %arg2[%c2_36, %c0_37] : memref<72x58xf32, #tpu.memory_space<vmem>>, vector<1x58xf32>
    %c0_38 = arith.constant 0 : index
    %c0_39 = arith.constant 0 : index
    %c2_40 = arith.constant 2 : index
    %28 = vector.load %arg5[%c0_38, %c0_39, %c2_40] : memref<8x40x60xf32, #tpu.memory_space<vmem>>, vector<1x38x58xf32>
    %29 = vector.shape_cast %28 : vector<1x38x58xf32> to vector<38x58xf32>
    %30 = vector.broadcast %27 : vector<1x58xf32> to vector<38x58xf32>
    %31 = arith.mulf %30, %29 : vector<38x58xf32>
    %32 = arith.addf %26, %31 : vector<38x58xf32>
    %c3 = arith.constant 3 : index
    %c0_41 = arith.constant 0 : index
    %33 = vector.load %arg2[%c3, %c0_41] : memref<72x58xf32, #tpu.memory_space<vmem>>, vector<1x58xf32>
    %c0_42 = arith.constant 0 : index
    %c1_43 = arith.constant 1 : index
    %c0_44 = arith.constant 0 : index
    %34 = vector.load %arg5[%c0_42, %c1_43, %c0_44] : memref<8x40x60xf32, #tpu.memory_space<vmem>>, vector<1x38x58xf32>
    %35 = vector.shape_cast %34 : vector<1x38x58xf32> to vector<38x58xf32>
    %36 = vector.broadcast %33 : vector<1x58xf32> to vector<38x58xf32>
    %37 = arith.mulf %36, %35 : vector<38x58xf32>
    %38 = arith.addf %32, %37 : vector<38x58xf32>
    %c4 = arith.constant 4 : index
    %c0_45 = arith.constant 0 : index
    %39 = vector.load %arg2[%c4, %c0_45] : memref<72x58xf32, #tpu.memory_space<vmem>>, vector<1x58xf32>
    %c0_46 = arith.constant 0 : index
    %c1_47 = arith.constant 1 : index
    %c1_48 = arith.constant 1 : index
    %40 = vector.load %arg5[%c0_46, %c1_47, %c1_48] : memref<8x40x60xf32, #tpu.memory_space<vmem>>, vector<1x38x58xf32>
    %41 = vector.shape_cast %40 : vector<1x38x58xf32> to vector<38x58xf32>
    %42 = vector.broadcast %39 : vector<1x58xf32> to vector<38x58xf32>
    %43 = arith.mulf %42, %41 : vector<38x58xf32>
    %44 = arith.addf %38, %43 : vector<38x58xf32>
    %c5 = arith.constant 5 : index
    %c0_49 = arith.constant 0 : index
    %45 = vector.load %arg2[%c5, %c0_49] : memref<72x58xf32, #tpu.memory_space<vmem>>, vector<1x58xf32>
    %c0_50 = arith.constant 0 : index
    %c1_51 = arith.constant 1 : index
    %c2_52 = arith.constant 2 : index
    %46 = vector.load %arg5[%c0_50, %c1_51, %c2_52] : memref<8x40x60xf32, #tpu.memory_space<vmem>>, vector<1x38x58xf32>
    %47 = vector.shape_cast %46 : vector<1x38x58xf32> to vector<38x58xf32>
    %48 = vector.broadcast %45 : vector<1x58xf32> to vector<38x58xf32>
    %49 = arith.mulf %48, %47 : vector<38x58xf32>
    %50 = arith.addf %44, %49 : vector<38x58xf32>
    %c6 = arith.constant 6 : index
    %c0_53 = arith.constant 0 : index
    %51 = vector.load %arg2[%c6, %c0_53] : memref<72x58xf32, #tpu.memory_space<vmem>>, vector<1x58xf32>
    %c0_54 = arith.constant 0 : index
    %c2_55 = arith.constant 2 : index
    %c0_56 = arith.constant 0 : index
    %52 = vector.load %arg5[%c0_54, %c2_55, %c0_56] : memref<8x40x60xf32, #tpu.memory_space<vmem>>, vector<1x38x58xf32>
    %53 = vector.shape_cast %52 : vector<1x38x58xf32> to vector<38x58xf32>
    %54 = vector.broadcast %51 : vector<1x58xf32> to vector<38x58xf32>
    %55 = arith.mulf %54, %53 : vector<38x58xf32>
    %56 = arith.addf %50, %55 : vector<38x58xf32>
    %c7 = arith.constant 7 : index
    %c0_57 = arith.constant 0 : index
    %57 = vector.load %arg2[%c7, %c0_57] : memref<72x58xf32, #tpu.memory_space<vmem>>, vector<1x58xf32>
    %c0_58 = arith.constant 0 : index
    %c2_59 = arith.constant 2 : index
    %c1_60 = arith.constant 1 : index
    %58 = vector.load %arg5[%c0_58, %c2_59, %c1_60] : memref<8x40x60xf32, #tpu.memory_space<vmem>>, vector<1x38x58xf32>
    %59 = vector.shape_cast %58 : vector<1x38x58xf32> to vector<38x58xf32>
    %60 = vector.broadcast %57 : vector<1x58xf32> to vector<38x58xf32>
    %61 = arith.mulf %60, %59 : vector<38x58xf32>
    %62 = arith.addf %56, %61 : vector<38x58xf32>
    %c8 = arith.constant 8 : index
    %c0_61 = arith.constant 0 : index
    %63 = vector.load %arg2[%c8, %c0_61] : memref<72x58xf32, #tpu.memory_space<vmem>>, vector<1x58xf32>
    %c0_62 = arith.constant 0 : index
    %c2_63 = arith.constant 2 : index
    %c2_64 = arith.constant 2 : index
    %64 = vector.load %arg5[%c0_62, %c2_63, %c2_64] : memref<8x40x60xf32, #tpu.memory_space<vmem>>, vector<1x38x58xf32>
    %65 = vector.shape_cast %64 : vector<1x38x58xf32> to vector<38x58xf32>
    %66 = vector.broadcast %63 : vector<1x58xf32> to vector<38x58xf32>
    %67 = arith.mulf %66, %65 : vector<38x58xf32>
    %68 = arith.addf %62, %67 : vector<38x58xf32>
    %c9 = arith.constant 9 : index
    %c0_65 = arith.constant 0 : index
    %69 = vector.load %arg2[%c9, %c0_65] : memref<72x58xf32, #tpu.memory_space<vmem>>, vector<1x58xf32>
    %c1_66 = arith.constant 1 : index
    %c0_67 = arith.constant 0 : index
    %c0_68 = arith.constant 0 : index
    %70 = vector.load %arg5[%c1_66, %c0_67, %c0_68] : memref<8x40x60xf32, #tpu.memory_space<vmem>>, vector<1x38x58xf32>
    %71 = vector.shape_cast %70 : vector<1x38x58xf32> to vector<38x58xf32>
    %72 = vector.broadcast %69 : vector<1x58xf32> to vector<38x58xf32>
    %73 = arith.mulf %72, %71 : vector<38x58xf32>
    %74 = arith.addf %68, %73 : vector<38x58xf32>
    %c10 = arith.constant 10 : index
    %c0_69 = arith.constant 0 : index
    %75 = vector.load %arg2[%c10, %c0_69] : memref<72x58xf32, #tpu.memory_space<vmem>>, vector<1x58xf32>
    %c1_70 = arith.constant 1 : index
    %c0_71 = arith.constant 0 : index
    %c1_72 = arith.constant 1 : index
    %76 = vector.load %arg5[%c1_70, %c0_71, %c1_72] : memref<8x40x60xf32, #tpu.memory_space<vmem>>, vector<1x38x58xf32>
    %77 = vector.shape_cast %76 : vector<1x38x58xf32> to vector<38x58xf32>
    %78 = vector.broadcast %75 : vector<1x58xf32> to vector<38x58xf32>
    %79 = arith.mulf %78, %77 : vector<38x58xf32>
    %80 = arith.addf %74, %79 : vector<38x58xf32>
    %c11 = arith.constant 11 : index
    %c0_73 = arith.constant 0 : index
    %81 = vector.load %arg2[%c11, %c0_73] : memref<72x58xf32, #tpu.memory_space<vmem>>, vector<1x58xf32>
    %c1_74 = arith.constant 1 : index
    %c0_75 = arith.constant 0 : index
    %c2_76 = arith.constant 2 : index
    %82 = vector.load %arg5[%c1_74, %c0_75, %c2_76] : memref<8x40x60xf32, #tpu.memory_space<vmem>>, vector<1x38x58xf32>
    %83 = vector.shape_cast %82 : vector<1x38x58xf32> to vector<38x58xf32>
    %84 = vector.broadcast %81 : vector<1x58xf32> to vector<38x58xf32>
    %85 = arith.mulf %84, %83 : vector<38x58xf32>
    %86 = arith.addf %80, %85 : vector<38x58xf32>
    %c12 = arith.constant 12 : index
    %c0_77 = arith.constant 0 : index
    %87 = vector.load %arg2[%c12, %c0_77] : memref<72x58xf32, #tpu.memory_space<vmem>>, vector<1x58xf32>
    %c1_78 = arith.constant 1 : index
    %c1_79 = arith.constant 1 : index
    %c0_80 = arith.constant 0 : index
    %88 = vector.load %arg5[%c1_78, %c1_79, %c0_80] : memref<8x40x60xf32, #tpu.memory_space<vmem>>, vector<1x38x58xf32>
    %89 = vector.shape_cast %88 : vector<1x38x58xf32> to vector<38x58xf32>
    %90 = vector.broadcast %87 : vector<1x58xf32> to vector<38x58xf32>
    %91 = arith.mulf %90, %89 : vector<38x58xf32>
    %92 = arith.addf %86, %91 : vector<38x58xf32>
    %c13 = arith.constant 13 : index
    %c0_81 = arith.constant 0 : index
    %93 = vector.load %arg2[%c13, %c0_81] : memref<72x58xf32, #tpu.memory_space<vmem>>, vector<1x58xf32>
    %c1_82 = arith.constant 1 : index
    %c1_83 = arith.constant 1 : index
    %c1_84 = arith.constant 1 : index
    %94 = vector.load %arg5[%c1_82, %c1_83, %c1_84] : memref<8x40x60xf32, #tpu.memory_space<vmem>>, vector<1x38x58xf32>
    %95 = vector.shape_cast %94 : vector<1x38x58xf32> to vector<38x58xf32>
    %96 = vector.broadcast %93 : vector<1x58xf32> to vector<38x58xf32>
    %97 = arith.mulf %96, %95 : vector<38x58xf32>
    %98 = arith.addf %92, %97 : vector<38x58xf32>
    %c14 = arith.constant 14 : index
    %c0_85 = arith.constant 0 : index
    %99 = vector.load %arg2[%c14, %c0_85] : memref<72x58xf32, #tpu.memory_space<vmem>>, vector<1x58xf32>
    %c1_86 = arith.constant 1 : index
    %c1_87 = arith.constant 1 : index
    %c2_88 = arith.constant 2 : index
    %100 = vector.load %arg5[%c1_86, %c1_87, %c2_88] : memref<8x40x60xf32, #tpu.memory_space<vmem>>, vector<1x38x58xf32>
    %101 = vector.shape_cast %100 : vector<1x38x58xf32> to vector<38x58xf32>
    %102 = vector.broadcast %99 : vector<1x58xf32> to vector<38x58xf32>
    %103 = arith.mulf %102, %101 : vector<38x58xf32>
    %104 = arith.addf %98, %103 : vector<38x58xf32>
    %c15 = arith.constant 15 : index
    %c0_89 = arith.constant 0 : index
    %105 = vector.load %arg2[%c15, %c0_89] : memref<72x58xf32, #tpu.memory_space<vmem>>, vector<1x58xf32>
    %c1_90 = arith.constant 1 : index
    %c2_91 = arith.constant 2 : index
    %c0_92 = arith.constant 0 : index
    %106 = vector.load %arg5[%c1_90, %c2_91, %c0_92] : memref<8x40x60xf32, #tpu.memory_space<vmem>>, vector<1x38x58xf32>
    %107 = vector.shape_cast %106 : vector<1x38x58xf32> to vector<38x58xf32>
    %108 = vector.broadcast %105 : vector<1x58xf32> to vector<38x58xf32>
    %109 = arith.mulf %108, %107 : vector<38x58xf32>
    %110 = arith.addf %104, %109 : vector<38x58xf32>
    %c16 = arith.constant 16 : index
    %c0_93 = arith.constant 0 : index
    %111 = vector.load %arg2[%c16, %c0_93] : memref<72x58xf32, #tpu.memory_space<vmem>>, vector<1x58xf32>
    %c1_94 = arith.constant 1 : index
    %c2_95 = arith.constant 2 : index
    %c1_96 = arith.constant 1 : index
    %112 = vector.load %arg5[%c1_94, %c2_95, %c1_96] : memref<8x40x60xf32, #tpu.memory_space<vmem>>, vector<1x38x58xf32>
    %113 = vector.shape_cast %112 : vector<1x38x58xf32> to vector<38x58xf32>
    %114 = vector.broadcast %111 : vector<1x58xf32> to vector<38x58xf32>
    %115 = arith.mulf %114, %113 : vector<38x58xf32>
    %116 = arith.addf %110, %115 : vector<38x58xf32>
    %c17 = arith.constant 17 : index
    %c0_97 = arith.constant 0 : index
    %117 = vector.load %arg2[%c17, %c0_97] : memref<72x58xf32, #tpu.memory_space<vmem>>, vector<1x58xf32>
    %c1_98 = arith.constant 1 : index
    %c2_99 = arith.constant 2 : index
    %c2_100 = arith.constant 2 : index
    %118 = vector.load %arg5[%c1_98, %c2_99, %c2_100] : memref<8x40x60xf32, #tpu.memory_space<vmem>>, vector<1x38x58xf32>
    %119 = vector.shape_cast %118 : vector<1x38x58xf32> to vector<38x58xf32>
    %120 = vector.broadcast %117 : vector<1x58xf32> to vector<38x58xf32>
    %121 = arith.mulf %120, %119 : vector<38x58xf32>
    %122 = arith.addf %116, %121 : vector<38x58xf32>
    %c18 = arith.constant 18 : index
    %c0_101 = arith.constant 0 : index
    %123 = vector.load %arg2[%c18, %c0_101] : memref<72x58xf32, #tpu.memory_space<vmem>>, vector<1x58xf32>
    %c2_102 = arith.constant 2 : index
    %c0_103 = arith.constant 0 : index
    %c0_104 = arith.constant 0 : index
    %124 = vector.load %arg5[%c2_102, %c0_103, %c0_104] : memref<8x40x60xf32, #tpu.memory_space<vmem>>, vector<1x38x58xf32>
    %125 = vector.shape_cast %124 : vector<1x38x58xf32> to vector<38x58xf32>
    %126 = vector.broadcast %123 : vector<1x58xf32> to vector<38x58xf32>
    %127 = arith.mulf %126, %125 : vector<38x58xf32>
    %128 = arith.addf %122, %127 : vector<38x58xf32>
    %c19 = arith.constant 19 : index
    %c0_105 = arith.constant 0 : index
    %129 = vector.load %arg2[%c19, %c0_105] : memref<72x58xf32, #tpu.memory_space<vmem>>, vector<1x58xf32>
    %c2_106 = arith.constant 2 : index
    %c0_107 = arith.constant 0 : index
    %c1_108 = arith.constant 1 : index
    %130 = vector.load %arg5[%c2_106, %c0_107, %c1_108] : memref<8x40x60xf32, #tpu.memory_space<vmem>>, vector<1x38x58xf32>
    %131 = vector.shape_cast %130 : vector<1x38x58xf32> to vector<38x58xf32>
    %132 = vector.broadcast %129 : vector<1x58xf32> to vector<38x58xf32>
    %133 = arith.mulf %132, %131 : vector<38x58xf32>
    %134 = arith.addf %128, %133 : vector<38x58xf32>
    %c20 = arith.constant 20 : index
    %c0_109 = arith.constant 0 : index
    %135 = vector.load %arg2[%c20, %c0_109] : memref<72x58xf32, #tpu.memory_space<vmem>>, vector<1x58xf32>
    %c2_110 = arith.constant 2 : index
    %c0_111 = arith.constant 0 : index
    %c2_112 = arith.constant 2 : index
    %136 = vector.load %arg5[%c2_110, %c0_111, %c2_112] : memref<8x40x60xf32, #tpu.memory_space<vmem>>, vector<1x38x58xf32>
    %137 = vector.shape_cast %136 : vector<1x38x58xf32> to vector<38x58xf32>
    %138 = vector.broadcast %135 : vector<1x58xf32> to vector<38x58xf32>
    %139 = arith.mulf %138, %137 : vector<38x58xf32>
    %140 = arith.addf %134, %139 : vector<38x58xf32>
    %c21 = arith.constant 21 : index
    %c0_113 = arith.constant 0 : index
    %141 = vector.load %arg2[%c21, %c0_113] : memref<72x58xf32, #tpu.memory_space<vmem>>, vector<1x58xf32>
    %c2_114 = arith.constant 2 : index
    %c1_115 = arith.constant 1 : index
    %c0_116 = arith.constant 0 : index
    %142 = vector.load %arg5[%c2_114, %c1_115, %c0_116] : memref<8x40x60xf32, #tpu.memory_space<vmem>>, vector<1x38x58xf32>
    %143 = vector.shape_cast %142 : vector<1x38x58xf32> to vector<38x58xf32>
    %144 = vector.broadcast %141 : vector<1x58xf32> to vector<38x58xf32>
    %145 = arith.mulf %144, %143 : vector<38x58xf32>
    %146 = arith.addf %140, %145 : vector<38x58xf32>
    %c22_117 = arith.constant 22 : index
    %c0_118 = arith.constant 0 : index
    %147 = vector.load %arg2[%c22_117, %c0_118] : memref<72x58xf32, #tpu.memory_space<vmem>>, vector<1x58xf32>
    %c2_119 = arith.constant 2 : index
    %c1_120 = arith.constant 1 : index
    %c1_121 = arith.constant 1 : index
    %148 = vector.load %arg5[%c2_119, %c1_120, %c1_121] : memref<8x40x60xf32, #tpu.memory_space<vmem>>, vector<1x38x58xf32>
    %149 = vector.shape_cast %148 : vector<1x38x58xf32> to vector<38x58xf32>
    %150 = vector.broadcast %147 : vector<1x58xf32> to vector<38x58xf32>
    %151 = arith.mulf %150, %149 : vector<38x58xf32>
    %152 = arith.addf %146, %151 : vector<38x58xf32>
    %c23 = arith.constant 23 : index
    %c0_122 = arith.constant 0 : index
    %153 = vector.load %arg2[%c23, %c0_122] : memref<72x58xf32, #tpu.memory_space<vmem>>, vector<1x58xf32>
    %c2_123 = arith.constant 2 : index
    %c1_124 = arith.constant 1 : index
    %c2_125 = arith.constant 2 : index
    %154 = vector.load %arg5[%c2_123, %c1_124, %c2_125] : memref<8x40x60xf32, #tpu.memory_space<vmem>>, vector<1x38x58xf32>
    %155 = vector.shape_cast %154 : vector<1x38x58xf32> to vector<38x58xf32>
    %156 = vector.broadcast %153 : vector<1x58xf32> to vector<38x58xf32>
    %157 = arith.mulf %156, %155 : vector<38x58xf32>
    %158 = arith.addf %152, %157 : vector<38x58xf32>
    %c24 = arith.constant 24 : index
    %c0_126 = arith.constant 0 : index
    %159 = vector.load %arg2[%c24, %c0_126] : memref<72x58xf32, #tpu.memory_space<vmem>>, vector<1x58xf32>
    %c2_127 = arith.constant 2 : index
    %c2_128 = arith.constant 2 : index
    %c0_129 = arith.constant 0 : index
    %160 = vector.load %arg5[%c2_127, %c2_128, %c0_129] : memref<8x40x60xf32, #tpu.memory_space<vmem>>, vector<1x38x58xf32>
    %161 = vector.shape_cast %160 : vector<1x38x58xf32> to vector<38x58xf32>
    %162 = vector.broadcast %159 : vector<1x58xf32> to vector<38x58xf32>
    %163 = arith.mulf %162, %161 : vector<38x58xf32>
    %164 = arith.addf %158, %163 : vector<38x58xf32>
    %c25 = arith.constant 25 : index
    %c0_130 = arith.constant 0 : index
    %165 = vector.load %arg2[%c25, %c0_130] : memref<72x58xf32, #tpu.memory_space<vmem>>, vector<1x58xf32>
    %c2_131 = arith.constant 2 : index
    %c2_132 = arith.constant 2 : index
    %c1_133 = arith.constant 1 : index
    %166 = vector.load %arg5[%c2_131, %c2_132, %c1_133] : memref<8x40x60xf32, #tpu.memory_space<vmem>>, vector<1x38x58xf32>
    %167 = vector.shape_cast %166 : vector<1x38x58xf32> to vector<38x58xf32>
    %168 = vector.broadcast %165 : vector<1x58xf32> to vector<38x58xf32>
    %169 = arith.mulf %168, %167 : vector<38x58xf32>
    %170 = arith.addf %164, %169 : vector<38x58xf32>
    %c26 = arith.constant 26 : index
    %c0_134 = arith.constant 0 : index
    %171 = vector.load %arg2[%c26, %c0_134] : memref<72x58xf32, #tpu.memory_space<vmem>>, vector<1x58xf32>
    %c2_135 = arith.constant 2 : index
    %c2_136 = arith.constant 2 : index
    %c2_137 = arith.constant 2 : index
    %172 = vector.load %arg5[%c2_135, %c2_136, %c2_137] : memref<8x40x60xf32, #tpu.memory_space<vmem>>, vector<1x38x58xf32>
    %173 = vector.shape_cast %172 : vector<1x38x58xf32> to vector<38x58xf32>
    %174 = vector.broadcast %171 : vector<1x58xf32> to vector<38x58xf32>
    %175 = arith.mulf %174, %173 : vector<38x58xf32>
    %176 = arith.addf %170, %175 : vector<38x58xf32>
    %c27 = arith.constant 27 : index
    %c0_138 = arith.constant 0 : index
    %177 = vector.load %arg2[%c27, %c0_138] : memref<72x58xf32, #tpu.memory_space<vmem>>, vector<1x58xf32>
    %c3_139 = arith.constant 3 : index
    %c0_140 = arith.constant 0 : index
    %c0_141 = arith.constant 0 : index
    %178 = vector.load %arg5[%c3_139, %c0_140, %c0_141] : memref<8x40x60xf32, #tpu.memory_space<vmem>>, vector<1x38x58xf32>
    %179 = vector.shape_cast %178 : vector<1x38x58xf32> to vector<38x58xf32>
    %180 = vector.broadcast %177 : vector<1x58xf32> to vector<38x58xf32>
    %181 = arith.mulf %180, %179 : vector<38x58xf32>
    %182 = arith.addf %176, %181 : vector<38x58xf32>
    %c28 = arith.constant 28 : index
    %c0_142 = arith.constant 0 : index
    %183 = vector.load %arg2[%c28, %c0_142] : memref<72x58xf32, #tpu.memory_space<vmem>>, vector<1x58xf32>
    %c3_143 = arith.constant 3 : index
    %c0_144 = arith.constant 0 : index
    %c1_145 = arith.constant 1 : index
    %184 = vector.load %arg5[%c3_143, %c0_144, %c1_145] : memref<8x40x60xf32, #tpu.memory_space<vmem>>, vector<1x38x58xf32>
    %185 = vector.shape_cast %184 : vector<1x38x58xf32> to vector<38x58xf32>
    %186 = vector.broadcast %183 : vector<1x58xf32> to vector<38x58xf32>
    %187 = arith.mulf %186, %185 : vector<38x58xf32>
    %188 = arith.addf %182, %187 : vector<38x58xf32>
    %c29 = arith.constant 29 : index
    %c0_146 = arith.constant 0 : index
    %189 = vector.load %arg2[%c29, %c0_146] : memref<72x58xf32, #tpu.memory_space<vmem>>, vector<1x58xf32>
    %c3_147 = arith.constant 3 : index
    %c0_148 = arith.constant 0 : index
    %c2_149 = arith.constant 2 : index
    %190 = vector.load %arg5[%c3_147, %c0_148, %c2_149] : memref<8x40x60xf32, #tpu.memory_space<vmem>>, vector<1x38x58xf32>
    %191 = vector.shape_cast %190 : vector<1x38x58xf32> to vector<38x58xf32>
    %192 = vector.broadcast %189 : vector<1x58xf32> to vector<38x58xf32>
    %193 = arith.mulf %192, %191 : vector<38x58xf32>
    %194 = arith.addf %188, %193 : vector<38x58xf32>
    %c30 = arith.constant 30 : index
    %c0_150 = arith.constant 0 : index
    %195 = vector.load %arg2[%c30, %c0_150] : memref<72x58xf32, #tpu.memory_space<vmem>>, vector<1x58xf32>
    %c3_151 = arith.constant 3 : index
    %c1_152 = arith.constant 1 : index
    %c0_153 = arith.constant 0 : index
    %196 = vector.load %arg5[%c3_151, %c1_152, %c0_153] : memref<8x40x60xf32, #tpu.memory_space<vmem>>, vector<1x38x58xf32>
    %197 = vector.shape_cast %196 : vector<1x38x58xf32> to vector<38x58xf32>
    %198 = vector.broadcast %195 : vector<1x58xf32> to vector<38x58xf32>
    %199 = arith.mulf %198, %197 : vector<38x58xf32>
    %200 = arith.addf %194, %199 : vector<38x58xf32>
    %c31 = arith.constant 31 : index
    %c0_154 = arith.constant 0 : index
    %201 = vector.load %arg2[%c31, %c0_154] : memref<72x58xf32, #tpu.memory_space<vmem>>, vector<1x58xf32>
    %c3_155 = arith.constant 3 : index
    %c1_156 = arith.constant 1 : index
    %c1_157 = arith.constant 1 : index
    %202 = vector.load %arg5[%c3_155, %c1_156, %c1_157] : memref<8x40x60xf32, #tpu.memory_space<vmem>>, vector<1x38x58xf32>
    %203 = vector.shape_cast %202 : vector<1x38x58xf32> to vector<38x58xf32>
    %204 = vector.broadcast %201 : vector<1x58xf32> to vector<38x58xf32>
    %205 = arith.mulf %204, %203 : vector<38x58xf32>
    %206 = arith.addf %200, %205 : vector<38x58xf32>
    %c32 = arith.constant 32 : index
    %c0_158 = arith.constant 0 : index
    %207 = vector.load %arg2[%c32, %c0_158] : memref<72x58xf32, #tpu.memory_space<vmem>>, vector<1x58xf32>
    %c3_159 = arith.constant 3 : index
    %c1_160 = arith.constant 1 : index
    %c2_161 = arith.constant 2 : index
    %208 = vector.load %arg5[%c3_159, %c1_160, %c2_161] : memref<8x40x60xf32, #tpu.memory_space<vmem>>, vector<1x38x58xf32>
    %209 = vector.shape_cast %208 : vector<1x38x58xf32> to vector<38x58xf32>
    %210 = vector.broadcast %207 : vector<1x58xf32> to vector<38x58xf32>
    %211 = arith.mulf %210, %209 : vector<38x58xf32>
    %212 = arith.addf %206, %211 : vector<38x58xf32>
    %c33 = arith.constant 33 : index
    %c0_162 = arith.constant 0 : index
    %213 = vector.load %arg2[%c33, %c0_162] : memref<72x58xf32, #tpu.memory_space<vmem>>, vector<1x58xf32>
    %c3_163 = arith.constant 3 : index
    %c2_164 = arith.constant 2 : index
    %c0_165 = arith.constant 0 : index
    %214 = vector.load %arg5[%c3_163, %c2_164, %c0_165] : memref<8x40x60xf32, #tpu.memory_space<vmem>>, vector<1x38x58xf32>
    %215 = vector.shape_cast %214 : vector<1x38x58xf32> to vector<38x58xf32>
    %216 = vector.broadcast %213 : vector<1x58xf32> to vector<38x58xf32>
    %217 = arith.mulf %216, %215 : vector<38x58xf32>
    %218 = arith.addf %212, %217 : vector<38x58xf32>
    %c34 = arith.constant 34 : index
    %c0_166 = arith.constant 0 : index
    %219 = vector.load %arg2[%c34, %c0_166] : memref<72x58xf32, #tpu.memory_space<vmem>>, vector<1x58xf32>
    %c3_167 = arith.constant 3 : index
    %c2_168 = arith.constant 2 : index
    %c1_169 = arith.constant 1 : index
    %220 = vector.load %arg5[%c3_167, %c2_168, %c1_169] : memref<8x40x60xf32, #tpu.memory_space<vmem>>, vector<1x38x58xf32>
    %221 = vector.shape_cast %220 : vector<1x38x58xf32> to vector<38x58xf32>
    %222 = vector.broadcast %219 : vector<1x58xf32> to vector<38x58xf32>
    %223 = arith.mulf %222, %221 : vector<38x58xf32>
    %224 = arith.addf %218, %223 : vector<38x58xf32>
    %c35 = arith.constant 35 : index
    %c0_170 = arith.constant 0 : index
    %225 = vector.load %arg2[%c35, %c0_170] : memref<72x58xf32, #tpu.memory_space<vmem>>, vector<1x58xf32>
    %c3_171 = arith.constant 3 : index
    %c2_172 = arith.constant 2 : index
    %c2_173 = arith.constant 2 : index
    %226 = vector.load %arg5[%c3_171, %c2_172, %c2_173] : memref<8x40x60xf32, #tpu.memory_space<vmem>>, vector<1x38x58xf32>
    %227 = vector.shape_cast %226 : vector<1x38x58xf32> to vector<38x58xf32>
    %228 = vector.broadcast %225 : vector<1x58xf32> to vector<38x58xf32>
    %229 = arith.mulf %228, %227 : vector<38x58xf32>
    %230 = arith.addf %224, %229 : vector<38x58xf32>
    %c36 = arith.constant 36 : index
    %c0_174 = arith.constant 0 : index
    %231 = vector.load %arg2[%c36, %c0_174] : memref<72x58xf32, #tpu.memory_space<vmem>>, vector<1x58xf32>
    %c4_175 = arith.constant 4 : index
    %c0_176 = arith.constant 0 : index
    %c0_177 = arith.constant 0 : index
    %232 = vector.load %arg5[%c4_175, %c0_176, %c0_177] : memref<8x40x60xf32, #tpu.memory_space<vmem>>, vector<1x38x58xf32>
    %233 = vector.shape_cast %232 : vector<1x38x58xf32> to vector<38x58xf32>
    %234 = vector.broadcast %231 : vector<1x58xf32> to vector<38x58xf32>
    %235 = arith.mulf %234, %233 : vector<38x58xf32>
    %236 = arith.addf %230, %235 : vector<38x58xf32>
    %c37 = arith.constant 37 : index
    %c0_178 = arith.constant 0 : index
    %237 = vector.load %arg2[%c37, %c0_178] : memref<72x58xf32, #tpu.memory_space<vmem>>, vector<1x58xf32>
    %c4_179 = arith.constant 4 : index
    %c0_180 = arith.constant 0 : index
    %c1_181 = arith.constant 1 : index
    %238 = vector.load %arg5[%c4_179, %c0_180, %c1_181] : memref<8x40x60xf32, #tpu.memory_space<vmem>>, vector<1x38x58xf32>
    %239 = vector.shape_cast %238 : vector<1x38x58xf32> to vector<38x58xf32>
    %240 = vector.broadcast %237 : vector<1x58xf32> to vector<38x58xf32>
    %241 = arith.mulf %240, %239 : vector<38x58xf32>
    %242 = arith.addf %236, %241 : vector<38x58xf32>
    %c38 = arith.constant 38 : index
    %c0_182 = arith.constant 0 : index
    %243 = vector.load %arg2[%c38, %c0_182] : memref<72x58xf32, #tpu.memory_space<vmem>>, vector<1x58xf32>
    %c4_183 = arith.constant 4 : index
    %c0_184 = arith.constant 0 : index
    %c2_185 = arith.constant 2 : index
    %244 = vector.load %arg5[%c4_183, %c0_184, %c2_185] : memref<8x40x60xf32, #tpu.memory_space<vmem>>, vector<1x38x58xf32>
    %245 = vector.shape_cast %244 : vector<1x38x58xf32> to vector<38x58xf32>
    %246 = vector.broadcast %243 : vector<1x58xf32> to vector<38x58xf32>
    %247 = arith.mulf %246, %245 : vector<38x58xf32>
    %248 = arith.addf %242, %247 : vector<38x58xf32>
    %c39 = arith.constant 39 : index
    %c0_186 = arith.constant 0 : index
    %249 = vector.load %arg2[%c39, %c0_186] : memref<72x58xf32, #tpu.memory_space<vmem>>, vector<1x58xf32>
    %c4_187 = arith.constant 4 : index
    %c1_188 = arith.constant 1 : index
    %c0_189 = arith.constant 0 : index
    %250 = vector.load %arg5[%c4_187, %c1_188, %c0_189] : memref<8x40x60xf32, #tpu.memory_space<vmem>>, vector<1x38x58xf32>
    %251 = vector.shape_cast %250 : vector<1x38x58xf32> to vector<38x58xf32>
    %252 = vector.broadcast %249 : vector<1x58xf32> to vector<38x58xf32>
    %253 = arith.mulf %252, %251 : vector<38x58xf32>
    %254 = arith.addf %248, %253 : vector<38x58xf32>
    %c40 = arith.constant 40 : index
    %c0_190 = arith.constant 0 : index
    %255 = vector.load %arg2[%c40, %c0_190] : memref<72x58xf32, #tpu.memory_space<vmem>>, vector<1x58xf32>
    %c4_191 = arith.constant 4 : index
    %c1_192 = arith.constant 1 : index
    %c1_193 = arith.constant 1 : index
    %256 = vector.load %arg5[%c4_191, %c1_192, %c1_193] : memref<8x40x60xf32, #tpu.memory_space<vmem>>, vector<1x38x58xf32>
    %257 = vector.shape_cast %256 : vector<1x38x58xf32> to vector<38x58xf32>
    %258 = vector.broadcast %255 : vector<1x58xf32> to vector<38x58xf32>
    %259 = arith.mulf %258, %257 : vector<38x58xf32>
    %260 = arith.addf %254, %259 : vector<38x58xf32>
    %c41 = arith.constant 41 : index
    %c0_194 = arith.constant 0 : index
    %261 = vector.load %arg2[%c41, %c0_194] : memref<72x58xf32, #tpu.memory_space<vmem>>, vector<1x58xf32>
    %c4_195 = arith.constant 4 : index
    %c1_196 = arith.constant 1 : index
    %c2_197 = arith.constant 2 : index
    %262 = vector.load %arg5[%c4_195, %c1_196, %c2_197] : memref<8x40x60xf32, #tpu.memory_space<vmem>>, vector<1x38x58xf32>
    %263 = vector.shape_cast %262 : vector<1x38x58xf32> to vector<38x58xf32>
    %264 = vector.broadcast %261 : vector<1x58xf32> to vector<38x58xf32>
    %265 = arith.mulf %264, %263 : vector<38x58xf32>
    %266 = arith.addf %260, %265 : vector<38x58xf32>
    %c42_198 = arith.constant 42 : index
    %c0_199 = arith.constant 0 : index
    %267 = vector.load %arg2[%c42_198, %c0_199] : memref<72x58xf32, #tpu.memory_space<vmem>>, vector<1x58xf32>
    %c4_200 = arith.constant 4 : index
    %c2_201 = arith.constant 2 : index
    %c0_202 = arith.constant 0 : index
    %268 = vector.load %arg5[%c4_200, %c2_201, %c0_202] : memref<8x40x60xf32, #tpu.memory_space<vmem>>, vector<1x38x58xf32>
    %269 = vector.shape_cast %268 : vector<1x38x58xf32> to vector<38x58xf32>
    %270 = vector.broadcast %267 : vector<1x58xf32> to vector<38x58xf32>
    %271 = arith.mulf %270, %269 : vector<38x58xf32>
    %272 = arith.addf %266, %271 : vector<38x58xf32>
    %c43 = arith.constant 43 : index
    %c0_203 = arith.constant 0 : index
    %273 = vector.load %arg2[%c43, %c0_203] : memref<72x58xf32, #tpu.memory_space<vmem>>, vector<1x58xf32>
    %c4_204 = arith.constant 4 : index
    %c2_205 = arith.constant 2 : index
    %c1_206 = arith.constant 1 : index
    %274 = vector.load %arg5[%c4_204, %c2_205, %c1_206] : memref<8x40x60xf32, #tpu.memory_space<vmem>>, vector<1x38x58xf32>
    %275 = vector.shape_cast %274 : vector<1x38x58xf32> to vector<38x58xf32>
    %276 = vector.broadcast %273 : vector<1x58xf32> to vector<38x58xf32>
    %277 = arith.mulf %276, %275 : vector<38x58xf32>
    %278 = arith.addf %272, %277 : vector<38x58xf32>
    %c44 = arith.constant 44 : index
    %c0_207 = arith.constant 0 : index
    %279 = vector.load %arg2[%c44, %c0_207] : memref<72x58xf32, #tpu.memory_space<vmem>>, vector<1x58xf32>
    %c4_208 = arith.constant 4 : index
    %c2_209 = arith.constant 2 : index
    %c2_210 = arith.constant 2 : index
    %280 = vector.load %arg5[%c4_208, %c2_209, %c2_210] : memref<8x40x60xf32, #tpu.memory_space<vmem>>, vector<1x38x58xf32>
    %281 = vector.shape_cast %280 : vector<1x38x58xf32> to vector<38x58xf32>
    %282 = vector.broadcast %279 : vector<1x58xf32> to vector<38x58xf32>
    %283 = arith.mulf %282, %281 : vector<38x58xf32>
    %284 = arith.addf %278, %283 : vector<38x58xf32>
    %c45 = arith.constant 45 : index
    %c0_211 = arith.constant 0 : index
    %285 = vector.load %arg2[%c45, %c0_211] : memref<72x58xf32, #tpu.memory_space<vmem>>, vector<1x58xf32>
    %c5_212 = arith.constant 5 : index
    %c0_213 = arith.constant 0 : index
    %c0_214 = arith.constant 0 : index
    %286 = vector.load %arg5[%c5_212, %c0_213, %c0_214] : memref<8x40x60xf32, #tpu.memory_space<vmem>>, vector<1x38x58xf32>
    %287 = vector.shape_cast %286 : vector<1x38x58xf32> to vector<38x58xf32>
    %288 = vector.broadcast %285 : vector<1x58xf32> to vector<38x58xf32>
    %289 = arith.mulf %288, %287 : vector<38x58xf32>
    %290 = arith.addf %284, %289 : vector<38x58xf32>
    %c46 = arith.constant 46 : index
    %c0_215 = arith.constant 0 : index
    %291 = vector.load %arg2[%c46, %c0_215] : memref<72x58xf32, #tpu.memory_space<vmem>>, vector<1x58xf32>
    %c5_216 = arith.constant 5 : index
    %c0_217 = arith.constant 0 : index
    %c1_218 = arith.constant 1 : index
    %292 = vector.load %arg5[%c5_216, %c0_217, %c1_218] : memref<8x40x60xf32, #tpu.memory_space<vmem>>, vector<1x38x58xf32>
    %293 = vector.shape_cast %292 : vector<1x38x58xf32> to vector<38x58xf32>
    %294 = vector.broadcast %291 : vector<1x58xf32> to vector<38x58xf32>
    %295 = arith.mulf %294, %293 : vector<38x58xf32>
    %296 = arith.addf %290, %295 : vector<38x58xf32>
    %c47 = arith.constant 47 : index
    %c0_219 = arith.constant 0 : index
    %297 = vector.load %arg2[%c47, %c0_219] : memref<72x58xf32, #tpu.memory_space<vmem>>, vector<1x58xf32>
    %c5_220 = arith.constant 5 : index
    %c0_221 = arith.constant 0 : index
    %c2_222 = arith.constant 2 : index
    %298 = vector.load %arg5[%c5_220, %c0_221, %c2_222] : memref<8x40x60xf32, #tpu.memory_space<vmem>>, vector<1x38x58xf32>
    %299 = vector.shape_cast %298 : vector<1x38x58xf32> to vector<38x58xf32>
    %300 = vector.broadcast %297 : vector<1x58xf32> to vector<38x58xf32>
    %301 = arith.mulf %300, %299 : vector<38x58xf32>
    %302 = arith.addf %296, %301 : vector<38x58xf32>
    %c48 = arith.constant 48 : index
    %c0_223 = arith.constant 0 : index
    %303 = vector.load %arg2[%c48, %c0_223] : memref<72x58xf32, #tpu.memory_space<vmem>>, vector<1x58xf32>
    %c5_224 = arith.constant 5 : index
    %c1_225 = arith.constant 1 : index
    %c0_226 = arith.constant 0 : index
    %304 = vector.load %arg5[%c5_224, %c1_225, %c0_226] : memref<8x40x60xf32, #tpu.memory_space<vmem>>, vector<1x38x58xf32>
    %305 = vector.shape_cast %304 : vector<1x38x58xf32> to vector<38x58xf32>
    %306 = vector.broadcast %303 : vector<1x58xf32> to vector<38x58xf32>
    %307 = arith.mulf %306, %305 : vector<38x58xf32>
    %308 = arith.addf %302, %307 : vector<38x58xf32>
    %c49 = arith.constant 49 : index
    %c0_227 = arith.constant 0 : index
    %309 = vector.load %arg2[%c49, %c0_227] : memref<72x58xf32, #tpu.memory_space<vmem>>, vector<1x58xf32>
    %c5_228 = arith.constant 5 : index
    %c1_229 = arith.constant 1 : index
    %c1_230 = arith.constant 1 : index
    %310 = vector.load %arg5[%c5_228, %c1_229, %c1_230] : memref<8x40x60xf32, #tpu.memory_space<vmem>>, vector<1x38x58xf32>
    %311 = vector.shape_cast %310 : vector<1x38x58xf32> to vector<38x58xf32>
    %312 = vector.broadcast %309 : vector<1x58xf32> to vector<38x58xf32>
    %313 = arith.mulf %312, %311 : vector<38x58xf32>
    %314 = arith.addf %308, %313 : vector<38x58xf32>
    %c50 = arith.constant 50 : index
    %c0_231 = arith.constant 0 : index
    %315 = vector.load %arg2[%c50, %c0_231] : memref<72x58xf32, #tpu.memory_space<vmem>>, vector<1x58xf32>
    %c5_232 = arith.constant 5 : index
    %c1_233 = arith.constant 1 : index
    %c2_234 = arith.constant 2 : index
    %316 = vector.load %arg5[%c5_232, %c1_233, %c2_234] : memref<8x40x60xf32, #tpu.memory_space<vmem>>, vector<1x38x58xf32>
    %317 = vector.shape_cast %316 : vector<1x38x58xf32> to vector<38x58xf32>
    %318 = vector.broadcast %315 : vector<1x58xf32> to vector<38x58xf32>
    %319 = arith.mulf %318, %317 : vector<38x58xf32>
    %320 = arith.addf %314, %319 : vector<38x58xf32>
    %c51 = arith.constant 51 : index
    %c0_235 = arith.constant 0 : index
    %321 = vector.load %arg2[%c51, %c0_235] : memref<72x58xf32, #tpu.memory_space<vmem>>, vector<1x58xf32>
    %c5_236 = arith.constant 5 : index
    %c2_237 = arith.constant 2 : index
    %c0_238 = arith.constant 0 : index
    %322 = vector.load %arg5[%c5_236, %c2_237, %c0_238] : memref<8x40x60xf32, #tpu.memory_space<vmem>>, vector<1x38x58xf32>
    %323 = vector.shape_cast %322 : vector<1x38x58xf32> to vector<38x58xf32>
    %324 = vector.broadcast %321 : vector<1x58xf32> to vector<38x58xf32>
    %325 = arith.mulf %324, %323 : vector<38x58xf32>
    %326 = arith.addf %320, %325 : vector<38x58xf32>
    %c52 = arith.constant 52 : index
    %c0_239 = arith.constant 0 : index
    %327 = vector.load %arg2[%c52, %c0_239] : memref<72x58xf32, #tpu.memory_space<vmem>>, vector<1x58xf32>
    %c5_240 = arith.constant 5 : index
    %c2_241 = arith.constant 2 : index
    %c1_242 = arith.constant 1 : index
    %328 = vector.load %arg5[%c5_240, %c2_241, %c1_242] : memref<8x40x60xf32, #tpu.memory_space<vmem>>, vector<1x38x58xf32>
    %329 = vector.shape_cast %328 : vector<1x38x58xf32> to vector<38x58xf32>
    %330 = vector.broadcast %327 : vector<1x58xf32> to vector<38x58xf32>
    %331 = arith.mulf %330, %329 : vector<38x58xf32>
    %332 = arith.addf %326, %331 : vector<38x58xf32>
    %c53 = arith.constant 53 : index
    %c0_243 = arith.constant 0 : index
    %333 = vector.load %arg2[%c53, %c0_243] : memref<72x58xf32, #tpu.memory_space<vmem>>, vector<1x58xf32>
    %c5_244 = arith.constant 5 : index
    %c2_245 = arith.constant 2 : index
    %c2_246 = arith.constant 2 : index
    %334 = vector.load %arg5[%c5_244, %c2_245, %c2_246] : memref<8x40x60xf32, #tpu.memory_space<vmem>>, vector<1x38x58xf32>
    %335 = vector.shape_cast %334 : vector<1x38x58xf32> to vector<38x58xf32>
    %336 = vector.broadcast %333 : vector<1x58xf32> to vector<38x58xf32>
    %337 = arith.mulf %336, %335 : vector<38x58xf32>
    %338 = arith.addf %332, %337 : vector<38x58xf32>
    %c54 = arith.constant 54 : index
    %c0_247 = arith.constant 0 : index
    %339 = vector.load %arg2[%c54, %c0_247] : memref<72x58xf32, #tpu.memory_space<vmem>>, vector<1x58xf32>
    %c6_248 = arith.constant 6 : index
    %c0_249 = arith.constant 0 : index
    %c0_250 = arith.constant 0 : index
    %340 = vector.load %arg5[%c6_248, %c0_249, %c0_250] : memref<8x40x60xf32, #tpu.memory_space<vmem>>, vector<1x38x58xf32>
    %341 = vector.shape_cast %340 : vector<1x38x58xf32> to vector<38x58xf32>
    %342 = vector.broadcast %339 : vector<1x58xf32> to vector<38x58xf32>
    %343 = arith.mulf %342, %341 : vector<38x58xf32>
    %344 = arith.addf %338, %343 : vector<38x58xf32>
    %c55 = arith.constant 55 : index
    %c0_251 = arith.constant 0 : index
    %345 = vector.load %arg2[%c55, %c0_251] : memref<72x58xf32, #tpu.memory_space<vmem>>, vector<1x58xf32>
    %c6_252 = arith.constant 6 : index
    %c0_253 = arith.constant 0 : index
    %c1_254 = arith.constant 1 : index
    %346 = vector.load %arg5[%c6_252, %c0_253, %c1_254] : memref<8x40x60xf32, #tpu.memory_space<vmem>>, vector<1x38x58xf32>
    %347 = vector.shape_cast %346 : vector<1x38x58xf32> to vector<38x58xf32>
    %348 = vector.broadcast %345 : vector<1x58xf32> to vector<38x58xf32>
    %349 = arith.mulf %348, %347 : vector<38x58xf32>
    %350 = arith.addf %344, %349 : vector<38x58xf32>
    %c56 = arith.constant 56 : index
    %c0_255 = arith.constant 0 : index
    %351 = vector.load %arg2[%c56, %c0_255] : memref<72x58xf32, #tpu.memory_space<vmem>>, vector<1x58xf32>
    %c6_256 = arith.constant 6 : index
    %c0_257 = arith.constant 0 : index
    %c2_258 = arith.constant 2 : index
    %352 = vector.load %arg5[%c6_256, %c0_257, %c2_258] : memref<8x40x60xf32, #tpu.memory_space<vmem>>, vector<1x38x58xf32>
    %353 = vector.shape_cast %352 : vector<1x38x58xf32> to vector<38x58xf32>
    %354 = vector.broadcast %351 : vector<1x58xf32> to vector<38x58xf32>
    %355 = arith.mulf %354, %353 : vector<38x58xf32>
    %356 = arith.addf %350, %355 : vector<38x58xf32>
    %c57 = arith.constant 57 : index
    %c0_259 = arith.constant 0 : index
    %357 = vector.load %arg2[%c57, %c0_259] : memref<72x58xf32, #tpu.memory_space<vmem>>, vector<1x58xf32>
    %c6_260 = arith.constant 6 : index
    %c1_261 = arith.constant 1 : index
    %c0_262 = arith.constant 0 : index
    %358 = vector.load %arg5[%c6_260, %c1_261, %c0_262] : memref<8x40x60xf32, #tpu.memory_space<vmem>>, vector<1x38x58xf32>
    %359 = vector.shape_cast %358 : vector<1x38x58xf32> to vector<38x58xf32>
    %360 = vector.broadcast %357 : vector<1x58xf32> to vector<38x58xf32>
    %361 = arith.mulf %360, %359 : vector<38x58xf32>
    %362 = arith.addf %356, %361 : vector<38x58xf32>
    %c58 = arith.constant 58 : index
    %c0_263 = arith.constant 0 : index
    %363 = vector.load %arg2[%c58, %c0_263] : memref<72x58xf32, #tpu.memory_space<vmem>>, vector<1x58xf32>
    %c6_264 = arith.constant 6 : index
    %c1_265 = arith.constant 1 : index
    %c1_266 = arith.constant 1 : index
    %364 = vector.load %arg5[%c6_264, %c1_265, %c1_266] : memref<8x40x60xf32, #tpu.memory_space<vmem>>, vector<1x38x58xf32>
    %365 = vector.shape_cast %364 : vector<1x38x58xf32> to vector<38x58xf32>
    %366 = vector.broadcast %363 : vector<1x58xf32> to vector<38x58xf32>
    %367 = arith.mulf %366, %365 : vector<38x58xf32>
    %368 = arith.addf %362, %367 : vector<38x58xf32>
    %c59 = arith.constant 59 : index
    %c0_267 = arith.constant 0 : index
    %369 = vector.load %arg2[%c59, %c0_267] : memref<72x58xf32, #tpu.memory_space<vmem>>, vector<1x58xf32>
    %c6_268 = arith.constant 6 : index
    %c1_269 = arith.constant 1 : index
    %c2_270 = arith.constant 2 : index
    %370 = vector.load %arg5[%c6_268, %c1_269, %c2_270] : memref<8x40x60xf32, #tpu.memory_space<vmem>>, vector<1x38x58xf32>
    %371 = vector.shape_cast %370 : vector<1x38x58xf32> to vector<38x58xf32>
    %372 = vector.broadcast %369 : vector<1x58xf32> to vector<38x58xf32>
    %373 = arith.mulf %372, %371 : vector<38x58xf32>
    %374 = arith.addf %368, %373 : vector<38x58xf32>
    %c60 = arith.constant 60 : index
    %c0_271 = arith.constant 0 : index
    %375 = vector.load %arg2[%c60, %c0_271] : memref<72x58xf32, #tpu.memory_space<vmem>>, vector<1x58xf32>
    %c6_272 = arith.constant 6 : index
    %c2_273 = arith.constant 2 : index
    %c0_274 = arith.constant 0 : index
    %376 = vector.load %arg5[%c6_272, %c2_273, %c0_274] : memref<8x40x60xf32, #tpu.memory_space<vmem>>, vector<1x38x58xf32>
    %377 = vector.shape_cast %376 : vector<1x38x58xf32> to vector<38x58xf32>
    %378 = vector.broadcast %375 : vector<1x58xf32> to vector<38x58xf32>
    %379 = arith.mulf %378, %377 : vector<38x58xf32>
    %380 = arith.addf %374, %379 : vector<38x58xf32>
    %c61 = arith.constant 61 : index
    %c0_275 = arith.constant 0 : index
    %381 = vector.load %arg2[%c61, %c0_275] : memref<72x58xf32, #tpu.memory_space<vmem>>, vector<1x58xf32>
    %c6_276 = arith.constant 6 : index
    %c2_277 = arith.constant 2 : index
    %c1_278 = arith.constant 1 : index
    %382 = vector.load %arg5[%c6_276, %c2_277, %c1_278] : memref<8x40x60xf32, #tpu.memory_space<vmem>>, vector<1x38x58xf32>
    %383 = vector.shape_cast %382 : vector<1x38x58xf32> to vector<38x58xf32>
    %384 = vector.broadcast %381 : vector<1x58xf32> to vector<38x58xf32>
    %385 = arith.mulf %384, %383 : vector<38x58xf32>
    %386 = arith.addf %380, %385 : vector<38x58xf32>
    %c62 = arith.constant 62 : index
    %c0_279 = arith.constant 0 : index
    %387 = vector.load %arg2[%c62, %c0_279] : memref<72x58xf32, #tpu.memory_space<vmem>>, vector<1x58xf32>
    %c6_280 = arith.constant 6 : index
    %c2_281 = arith.constant 2 : index
    %c2_282 = arith.constant 2 : index
    %388 = vector.load %arg5[%c6_280, %c2_281, %c2_282] : memref<8x40x60xf32, #tpu.memory_space<vmem>>, vector<1x38x58xf32>
    %389 = vector.shape_cast %388 : vector<1x38x58xf32> to vector<38x58xf32>
    %390 = vector.broadcast %387 : vector<1x58xf32> to vector<38x58xf32>
    %391 = arith.mulf %390, %389 : vector<38x58xf32>
    %392 = arith.addf %386, %391 : vector<38x58xf32>
    %c63 = arith.constant 63 : index
    %c0_283 = arith.constant 0 : index
    %393 = vector.load %arg2[%c63, %c0_283] : memref<72x58xf32, #tpu.memory_space<vmem>>, vector<1x58xf32>
    %c7_284 = arith.constant 7 : index
    %c0_285 = arith.constant 0 : index
    %c0_286 = arith.constant 0 : index
    %394 = vector.load %arg5[%c7_284, %c0_285, %c0_286] : memref<8x40x60xf32, #tpu.memory_space<vmem>>, vector<1x38x58xf32>
    %395 = vector.shape_cast %394 : vector<1x38x58xf32> to vector<38x58xf32>
    %396 = vector.broadcast %393 : vector<1x58xf32> to vector<38x58xf32>
    %397 = arith.mulf %396, %395 : vector<38x58xf32>
    %398 = arith.addf %392, %397 : vector<38x58xf32>
    %c64 = arith.constant 64 : index
    %c0_287 = arith.constant 0 : index
    %399 = vector.load %arg2[%c64, %c0_287] : memref<72x58xf32, #tpu.memory_space<vmem>>, vector<1x58xf32>
    %c7_288 = arith.constant 7 : index
    %c0_289 = arith.constant 0 : index
    %c1_290 = arith.constant 1 : index
    %400 = vector.load %arg5[%c7_288, %c0_289, %c1_290] : memref<8x40x60xf32, #tpu.memory_space<vmem>>, vector<1x38x58xf32>
    %401 = vector.shape_cast %400 : vector<1x38x58xf32> to vector<38x58xf32>
    %402 = vector.broadcast %399 : vector<1x58xf32> to vector<38x58xf32>
    %403 = arith.mulf %402, %401 : vector<38x58xf32>
    %404 = arith.addf %398, %403 : vector<38x58xf32>
    %c65 = arith.constant 65 : index
    %c0_291 = arith.constant 0 : index
    %405 = vector.load %arg2[%c65, %c0_291] : memref<72x58xf32, #tpu.memory_space<vmem>>, vector<1x58xf32>
    %c7_292 = arith.constant 7 : index
    %c0_293 = arith.constant 0 : index
    %c2_294 = arith.constant 2 : index
    %406 = vector.load %arg5[%c7_292, %c0_293, %c2_294] : memref<8x40x60xf32, #tpu.memory_space<vmem>>, vector<1x38x58xf32>
    %407 = vector.shape_cast %406 : vector<1x38x58xf32> to vector<38x58xf32>
    %408 = vector.broadcast %405 : vector<1x58xf32> to vector<38x58xf32>
    %409 = arith.mulf %408, %407 : vector<38x58xf32>
    %410 = arith.addf %404, %409 : vector<38x58xf32>
    %c66 = arith.constant 66 : index
    %c0_295 = arith.constant 0 : index
    %411 = vector.load %arg2[%c66, %c0_295] : memref<72x58xf32, #tpu.memory_space<vmem>>, vector<1x58xf32>
    %c7_296 = arith.constant 7 : index
    %c1_297 = arith.constant 1 : index
    %c0_298 = arith.constant 0 : index
    %412 = vector.load %arg5[%c7_296, %c1_297, %c0_298] : memref<8x40x60xf32, #tpu.memory_space<vmem>>, vector<1x38x58xf32>
    %413 = vector.shape_cast %412 : vector<1x38x58xf32> to vector<38x58xf32>
    %414 = vector.broadcast %411 : vector<1x58xf32> to vector<38x58xf32>
    %415 = arith.mulf %414, %413 : vector<38x58xf32>
    %416 = arith.addf %410, %415 : vector<38x58xf32>
    %c67 = arith.constant 67 : index
    %c0_299 = arith.constant 0 : index
    %417 = vector.load %arg2[%c67, %c0_299] : memref<72x58xf32, #tpu.memory_space<vmem>>, vector<1x58xf32>
    %c7_300 = arith.constant 7 : index
    %c1_301 = arith.constant 1 : index
    %c1_302 = arith.constant 1 : index
    %418 = vector.load %arg5[%c7_300, %c1_301, %c1_302] : memref<8x40x60xf32, #tpu.memory_space<vmem>>, vector<1x38x58xf32>
    %419 = vector.shape_cast %418 : vector<1x38x58xf32> to vector<38x58xf32>
    %420 = vector.broadcast %417 : vector<1x58xf32> to vector<38x58xf32>
    %421 = arith.mulf %420, %419 : vector<38x58xf32>
    %422 = arith.addf %416, %421 : vector<38x58xf32>
    %c68 = arith.constant 68 : index
    %c0_303 = arith.constant 0 : index
    %423 = vector.load %arg2[%c68, %c0_303] : memref<72x58xf32, #tpu.memory_space<vmem>>, vector<1x58xf32>
    %c7_304 = arith.constant 7 : index
    %c1_305 = arith.constant 1 : index
    %c2_306 = arith.constant 2 : index
    %424 = vector.load %arg5[%c7_304, %c1_305, %c2_306] : memref<8x40x60xf32, #tpu.memory_space<vmem>>, vector<1x38x58xf32>
    %425 = vector.shape_cast %424 : vector<1x38x58xf32> to vector<38x58xf32>
    %426 = vector.broadcast %423 : vector<1x58xf32> to vector<38x58xf32>
    %427 = arith.mulf %426, %425 : vector<38x58xf32>
    %428 = arith.addf %422, %427 : vector<38x58xf32>
    %c69 = arith.constant 69 : index
    %c0_307 = arith.constant 0 : index
    %429 = vector.load %arg2[%c69, %c0_307] : memref<72x58xf32, #tpu.memory_space<vmem>>, vector<1x58xf32>
    %c7_308 = arith.constant 7 : index
    %c2_309 = arith.constant 2 : index
    %c0_310 = arith.constant 0 : index
    %430 = vector.load %arg5[%c7_308, %c2_309, %c0_310] : memref<8x40x60xf32, #tpu.memory_space<vmem>>, vector<1x38x58xf32>
    %431 = vector.shape_cast %430 : vector<1x38x58xf32> to vector<38x58xf32>
    %432 = vector.broadcast %429 : vector<1x58xf32> to vector<38x58xf32>
    %433 = arith.mulf %432, %431 : vector<38x58xf32>
    %434 = arith.addf %428, %433 : vector<38x58xf32>
    %c70 = arith.constant 70 : index
    %c0_311 = arith.constant 0 : index
    %435 = vector.load %arg2[%c70, %c0_311] : memref<72x58xf32, #tpu.memory_space<vmem>>, vector<1x58xf32>
    %c7_312 = arith.constant 7 : index
    %c2_313 = arith.constant 2 : index
    %c1_314 = arith.constant 1 : index
    %436 = vector.load %arg5[%c7_312, %c2_313, %c1_314] : memref<8x40x60xf32, #tpu.memory_space<vmem>>, vector<1x38x58xf32>
    %437 = vector.shape_cast %436 : vector<1x38x58xf32> to vector<38x58xf32>
    %438 = vector.broadcast %435 : vector<1x58xf32> to vector<38x58xf32>
    %439 = arith.mulf %438, %437 : vector<38x58xf32>
    %440 = arith.addf %434, %439 : vector<38x58xf32>
    %c71 = arith.constant 71 : index
    %c0_315 = arith.constant 0 : index
    %441 = vector.load %arg2[%c71, %c0_315] : memref<72x58xf32, #tpu.memory_space<vmem>>, vector<1x58xf32>
    %c7_316 = arith.constant 7 : index
    %c2_317 = arith.constant 2 : index
    %c2_318 = arith.constant 2 : index
    %442 = vector.load %arg5[%c7_316, %c2_317, %c2_318] : memref<8x40x60xf32, #tpu.memory_space<vmem>>, vector<1x38x58xf32>
    %443 = vector.shape_cast %442 : vector<1x38x58xf32> to vector<38x58xf32>
    %444 = vector.broadcast %441 : vector<1x58xf32> to vector<38x58xf32>
    %445 = arith.mulf %444, %443 : vector<38x58xf32>
    %446 = arith.addf %440, %445 : vector<38x58xf32>
    %cst_319 = arith.constant 1.04471505 : f32
    %447 = vector.broadcast %cst_319 : f32 to vector<38x58xf32>
    %448 = arith.mulf %446, %447 : vector<38x58xf32>
    %cst_320 = arith.constant 0.797884583 : f32
    %449 = vector.broadcast %cst_320 : f32 to vector<38x58xf32>
    %450 = arith.addf %448, %449 : vector<38x58xf32>
    %451 = math.tanh %450 : vector<38x58xf32>
    %452 = arith.addf %451, %446 : vector<38x58xf32>
    %cst_321 = arith.constant 5.000000e-01 : f32
    %453 = vector.broadcast %cst_321 : f32 to vector<38x58xf32>
    %454 = arith.mulf %453, %452 : vector<38x58xf32>
    %455 = vector.extract_strided_slice %454 {offsets = [0, 0], sizes = [18, 18], strides = [1, 1]} : vector<38x58xf32> to vector<18x18xf32>
    %c0_322 = arith.constant 0 : index
    %c0_323 = arith.constant 0 : index
    %c0_324 = arith.constant 0 : index
    %c0_325 = arith.constant 0 : index
    %456 = vector.load %arg4[%c0_322, %c0_323, %c0_324, %c0_325] : memref<2x3x18x18xf32, #tpu.memory_space<vmem>>, vector<1x1x18x18xf32>
    %457 = vector.shape_cast %456 : vector<1x1x18x18xf32> to vector<18x18xf32>
    %458 = vector.shape_cast %455 : vector<18x18xf32> to vector<1x1x18x18xf32>
    tpu.vector_store %arg4[%c0_322, %c0_323, %c0_324, %c0_325], %458 {strides = array<i32>} : memref<2x3x18x18xf32, #tpu.memory_space<vmem>>, vector<1x1x18x18xf32>,
    %459 = vector.extract_strided_slice %454 {offsets = [0, 20], sizes = [18, 18], strides = [1, 1]} : vector<38x58xf32> to vector<18x18xf32>
    %c0_326 = arith.constant 0 : index
    %c1_327 = arith.constant 1 : index
    %c0_328 = arith.constant 0 : index
    %c0_329 = arith.constant 0 : index
    %460 = vector.load %arg4[%c0_326, %c1_327, %c0_328, %c0_329] : memref<2x3x18x18xf32, #tpu.memory_space<vmem>>, vector<1x1x18x18xf32>
    %461 = vector.shape_cast %460 : vector<1x1x18x18xf32> to vector<18x18xf32>
    %462 = vector.shape_cast %459 : vector<18x18xf32> to vector<1x1x18x18xf32>
    tpu.vector_store %arg4[%c0_326, %c1_327, %c0_328, %c0_329], %462 {strides = array<i32>} : memref<2x3x18x18xf32, #tpu.memory_space<vmem>>, vector<1x1x18x18xf32>,
    %463 = vector.extract_strided_slice %454 {offsets = [0, 40], sizes = [18, 18], strides = [1, 1]} : vector<38x58xf32> to vector<18x18xf32>
    %c0_330 = arith.constant 0 : index
    %c2_331 = arith.constant 2 : index
    %c0_332 = arith.constant 0 : index
    %c0_333 = arith.constant 0 : index
    %464 = vector.load %arg4[%c0_330, %c2_331, %c0_332, %c0_333] : memref<2x3x18x18xf32, #tpu.memory_space<vmem>>, vector<1x1x18x18xf32>
    %465 = vector.shape_cast %464 : vector<1x1x18x18xf32> to vector<18x18xf32>
    %466 = vector.shape_cast %463 : vector<18x18xf32> to vector<1x1x18x18xf32>
    tpu.vector_store %arg4[%c0_330, %c2_331, %c0_332, %c0_333], %466 {strides = array<i32>} : memref<2x3x18x18xf32, #tpu.memory_space<vmem>>, vector<1x1x18x18xf32>,
    %467 = vector.extract_strided_slice %454 {offsets = [20, 0], sizes = [18, 18], strides = [1, 1]} : vector<38x58xf32> to vector<18x18xf32>
    %c1_334 = arith.constant 1 : index
    %c0_335 = arith.constant 0 : index
    %c0_336 = arith.constant 0 : index
    %c0_337 = arith.constant 0 : index
    %468 = vector.load %arg4[%c1_334, %c0_335, %c0_336, %c0_337] : memref<2x3x18x18xf32, #tpu.memory_space<vmem>>, vector<1x1x18x18xf32>
    %469 = vector.shape_cast %468 : vector<1x1x18x18xf32> to vector<18x18xf32>
    %470 = vector.shape_cast %467 : vector<18x18xf32> to vector<1x1x18x18xf32>
    tpu.vector_store %arg4[%c1_334, %c0_335, %c0_336, %c0_337], %470 {strides = array<i32>} : memref<2x3x18x18xf32, #tpu.memory_space<vmem>>, vector<1x1x18x18xf32>,
    %471 = vector.extract_strided_slice %454 {offsets = [20, 20], sizes = [18, 18], strides = [1, 1]} : vector<38x58xf32> to vector<18x18xf32>
    %c1_338 = arith.constant 1 : index
    %c1_339 = arith.constant 1 : index
    %c0_340 = arith.constant 0 : index
    %c0_341 = arith.constant 0 : index
    %472 = vector.load %arg4[%c1_338, %c1_339, %c0_340, %c0_341] : memref<2x3x18x18xf32, #tpu.memory_space<vmem>>, vector<1x1x18x18xf32>
    %473 = vector.shape_cast %472 : vector<1x1x18x18xf32> to vector<18x18xf32>
    %474 = vector.shape_cast %471 : vector<18x18xf32> to vector<1x1x18x18xf32>
    tpu.vector_store %arg4[%c1_338, %c1_339, %c0_340, %c0_341], %474 {strides = array<i32>} : memref<2x3x18x18xf32, #tpu.memory_space<vmem>>, vector<1x1x18x18xf32>,
    %475 = vector.extract_strided_slice %454 {offsets = [20, 40], sizes = [18, 18], strides = [1, 1]} : vector<38x58xf32> to vector<18x18xf32>
    %c1_342 = arith.constant 1 : index
    %c2_343 = arith.constant 2 : index
    %c0_344 = arith.constant 0 : index
    %c0_345 = arith.constant 0 : index
    %476 = vector.load %arg4[%c1_342, %c2_343, %c0_344, %c0_345] : memref<2x3x18x18xf32, #tpu.memory_space<vmem>>, vector<1x1x18x18xf32>
    %477 = vector.shape_cast %476 : vector<1x1x18x18xf32> to vector<18x18xf32>
    %478 = vector.shape_cast %475 : vector<18x18xf32> to vector<1x1x18x18xf32>
    tpu.vector_store %arg4[%c1_342, %c2_343, %c0_344, %c0_345], %478 {strides = array<i32>} : memref<2x3x18x18xf32, #tpu.memory_space<vmem>>, vector<1x1x18x18xf32>,
    return
  }
  func.func @transform_0(%arg0: i32) -> (i32, i32, i32, i32) {
    %c0_i32 = arith.constant 0 : i32
    %c0_i32_0 = arith.constant 0 : i32
    %c0_i32_1 = arith.constant 0 : i32
    %c0_i32_2 = arith.constant 0 : i32
    return %arg0, %c0_i32, %c0_i32_0, %c0_i32_1 : i32, i32, i32, i32
  }
  func.func @transform_1(%arg0: i32) -> (i32, i32) {
    %c0_i32 = arith.constant 0 : i32
    %c0_i32_0 = arith.constant 0 : i32
    %c0_i32_1 = arith.constant 0 : i32
    return %c0_i32, %c0_i32_0 : i32, i32
  }
  func.func @transform_2(%arg0: i32) -> (i32, i32) {
    %c0_i32 = arith.constant 0 : i32
    %c0_i32_0 = arith.constant 0 : i32
    %c0_i32_1 = arith.constant 0 : i32
    return %c0_i32, %c0_i32_0 : i32, i32
  }
  func.func @transform_3(%arg0: i32) -> (i32, i32, i32, i32) {
    %c0_i32 = arith.constant 0 : i32
    %c0_i32_0 = arith.constant 0 : i32
    %c0_i32_1 = arith.constant 0 : i32
    %c0_i32_2 = arith.constant 0 : i32
    return %arg0, %c0_i32, %c0_i32_0, %c0_i32_1 : i32, i32, i32, i32
  }
}

</mosaic_0001>

<bundles_post_ra>
// kernel: tpu_custom_call.1
= control target key start
LH: loop header
LB: loop body
LE: loop exit
PB: predicated region body
PF: predicated region fallthrough
CT: control target
= control target key end

     0   :  { %8 = vsyncpa [#allocation4], 0  ;;  %s2833_s12 = smov [#allocation3]   ;;  %s4706_s0 = inlined_call_operand.hbm [shape: f32[2,8,16,16], index: 0, kind: input, shape index: {}]   ;;  %s4707_s1 = inlined_call_operand.vmem [shape: f32[72,58], index: 1, kind: input, shape index: {}]   ;;  %s4708_s2 = inlined_call_operand.vmem [shape: f32[1,58], index: 2, kind: input, shape index: {}]   ;;  %s4709_s3 = inlined_call_operand.vmem [shape: f32[2,3,18,18], index: 3, kind: output, shape index: {}]  }
   0x1   :  { %s14_s13 = sshll.u32 %s2833_s12, 4  ;;  %s2809_s16 = scalar_lea.hbm %s4706_s0, 4096  ;;  %s15_s13 = int_to_ptr.vmem [resolvable:$true] %s14_s13 }
   0x2   :  { %p2810_p0 = scmp.ne.s32.totalorder %s4706_s0, %s2809_s16  ;;  %p2813_p1 = scmp.lt.u32.totalorder %s2809_s16, %s4706_s0 }
   0x4   :  { %p2815_p2 = pnand %p2813_p1, %p2810_p0 }
   0x6   :  { %2818 = shalt.err (!%p2815_p2)
}
   0x7   :  { %s2819_s21 = scalar_lea.vmem %s15_s13, 4096  ;;  %p2824_p4 = scmp.lt.s32.totalorder %s15_s13, %s15_s13 }
   0x8   :  { %p2820_p3 = scmp.ne.s32.totalorder %s15_s13, %s2819_s21  ;;  %p2825_p5 = scmp.lt.s32.totalorder %s2819_s21, %s2819_s21 }
   0xa   :  { %p2826_p6 = por %p2825_p5, %p2824_p4 }
   0xc   :  { %p2827_p7 = pnand %p2826_p6, %p2820_p3 }
   0xe   :  { %2830 = shalt.err (!%p2827_p7)
}
   0xf   :  { %s2834_s22 = smov 128   ;;  %s2835_s23 = smov 8  }
  0x10   :  { %20 = dma.hbm_to_vmem [thread:$0]  %s4706_s0, 4096, %s15_s13, [#allocation4], %s2834_s22, %s2834_s22, %s2835_s23  }
  0x11   :  { %2831 = dma.done.wait [#allocation4], 4096  }
  0x12   :  { %2832 = vsyncadd [#allocation4], 4294963200  ;;  %vm28_vm0 = vcmask 490496   ;;  %v2836_v0 = vmov 0.0   ;;  %v71_v1 = vld [vmem:[#allocation3 + $0x10] sm:$0xff]  ;;  %v69_v2 = vld [vmem:[#allocation3] sm:$0xff] }
  0x13   :  { %34 = vst.msk [vmem:[#allocation2 + $0x28] sm:$0xff] %vm28_vm0, %v2836_v0  ;;  %35 = vst.msk [vmem:[#allocation2 + $0x30] sm:$0xff] %vm28_vm0, %v2836_v0  ;;  %s2837_s0 = smov 2   ;;  %v72_v3 = vld [vmem:[#allocation3 + $0x18] sm:$0xff]  ;;  %v70_v4 = vld [vmem:[#allocation3 + $0x8] sm:$0xff]  ;;  %s2838_s26 = smov 22  }
  0x14   :  { %29 = vst.msk [vmem:[#allocation2] sm:$0xff] %vm28_vm0, %v2836_v0  ;;  %30 = vst.msk [vmem:[#allocation2 + $0x8] sm:$0xff] %vm28_vm0, %v2836_v0  ;;  %105 = vrot.lane.b32.xlu1 %v71_v1, %s2837_s0  ;;  %101 = vrot.lane.b32.xlu0 %v69_v2, %s2837_s0  ;;  %v74_v5 = vld [vmem:[#allocation3 + $0x28] sm:$0xff]  ;;  %v73_v6 = vld [vmem:[#allocation3 + $0x20] sm:$0xff]  ;;  %s2839_s27 = smov 42   ;;  %vm149_vm1 = vcmask 146448  }
  0x15   :  { %31 = vst.msk [vmem:[#allocation2 + $0x10] sm:$0xff] %vm28_vm0, %v2836_v0  ;;  %32 = vst.msk [vmem:[#allocation2 + $0x18] sm:$0xff] %vm28_vm0, %v2836_v0  ;;  %v76_v7 = vld [vmem:[#allocation3 + $0x38] sm:$0xff]  ;;  %v75_v8 = vld [vmem:[#allocation3 + $0x30] sm:$0xff]  ;;  %vm214_vm2 = vcmask 310448   ;;  %vm279_vm3 = vcmask 474448  }
  0x16   :  { %33 = vst.msk [vmem:[#allocation2 + $0x20] sm:$0xff] %vm28_vm0, %v2836_v0  ;;  %36 = vst.msk [vmem:[#allocation2 + $0x38] sm:$0xff] %vm28_vm0, %v2836_v0  ;;  %v78_v9 = vld [vmem:[#allocation3 + $0x48] sm:$0xff]  ;;  %v77_v10 = vld [vmem:[#allocation3 + $0x40] sm:$0xff]  ;;  %s2840_s28 = smov 127   ;;  %s2841_s29 = smov 126  }
  0x17   :  { %37 = vst.msk [vmem:[#allocation2 + $0x40] sm:$0xff] %vm28_vm0, %v2836_v0  ;;  %38 = vst.msk [vmem:[#allocation2 + $0x48] sm:$0xff] %vm28_vm0, %v2836_v0  ;;  %v80_v11 = vld [vmem:[#allocation3 + $0x58] sm:$0xff]  ;;  %v79_v12 = vld [vmem:[#allocation3 + $0x50] sm:$0xff]  ;;  %vm2600_vm4 = vcmask 146432   ;;  %vm2603_vm5 = vcmask 140288  }
  0x18   :  { %39 = vst.msk [vmem:[#allocation2 + $0x50] sm:$0xff] %vm28_vm0, %v2836_v0  ;;  %40 = vst.msk [vmem:[#allocation2 + $0x58] sm:$0xff] %vm28_vm0, %v2836_v0  ;;  %107 = vrot.lane.b32.xlu1 %v72_v3, %s2837_s0  ;;  %103 = vrot.lane.b32.xlu0 %v70_v4, %s2837_s0  ;;  %v82_v13 = vld [vmem:[#allocation3 + $0x68] sm:$0xff]  ;;  %v81_v14 = vld [vmem:[#allocation3 + $0x60] sm:$0xff]  ;;  %vm2635_vm6 = vcmask 146436   ;;  %vm2638_vm7 = vcmask 144384  }
  0x19   :  { %41 = vst.msk [vmem:[#allocation2 + $0x60] sm:$0xff] %vm28_vm0, %v2836_v0  ;;  %42 = vst.msk [vmem:[#allocation2 + $0x68] sm:$0xff] %vm28_vm0, %v2836_v0  ;;  %v84_v15 = vld [vmem:[#allocation3 + $0x78] sm:$0xff]  ;;  %v83_v16 = vld [vmem:[#allocation3 + $0x70] sm:$0xff]  ;;  %s2843_s17 = smov 88  }
  0x1a   :  { %43 = vst.msk [vmem:[#allocation2 + $0x70] sm:$0xff] %vm28_vm0, %v2836_v0  ;;  %44 = vst.msk [vmem:[#allocation2 + $0x78] sm:$0xff] %vm28_vm0, %v2836_v0  ;;  %v2964_v17 = vld [vmem:[#allocation3 + $0x88] sm:$0xff]  ;;  %v2966_v18 = vld [vmem:[#allocation3 + $0x80] sm:$0xff] }
  0x1b   :  { %45 = vst.msk [vmem:[#allocation2 + $0x80] sm:$0xff] %vm28_vm0, %v2836_v0  ;;  %46 = vst.msk [vmem:[#allocation2 + $0x88] sm:$0xff] %vm28_vm0, %v2836_v0  ;;  %v2972_v19 = vld [vmem:[#allocation3 + $0x98] sm:$0xff]  ;;  %v2974_v20 = vld [vmem:[#allocation3 + $0x90] sm:$0xff] }
  0x1c   :  { %47 = vst.msk [vmem:[#allocation2 + $0x90] sm:$0xff] %vm28_vm0, %v2836_v0  ;;  %48 = vst.msk [vmem:[#allocation2 + $0x98] sm:$0xff] %vm28_vm0, %v2836_v0  ;;  %111 = vrot.lane.b32.xlu1 %v74_v5, %s2837_s0  ;;  %109 = vrot.lane.b32.xlu0 %v73_v6, %s2837_s0  ;;  %v2980_v21 = vld [vmem:[#allocation3 + $0xa8] sm:$0xff]  ;;  %v2982_v22 = vld [vmem:[#allocation3 + $0xa0] sm:$0xff] }
  0x1d   :  { %49 = vst.msk [vmem:[#allocation2 + $0xa0] sm:$0xff] %vm28_vm0, %v2836_v0  ;;  %50 = vst.msk [vmem:[#allocation2 + $0xa8] sm:$0xff] %vm28_vm0, %v2836_v0  ;;  %v2988_v23 = vld [vmem:[#allocation3 + $0xb8] sm:$0xff]  ;;  %v2990_v24 = vld [vmem:[#allocation3 + $0xb0] sm:$0xff] }
  0x1e   :  { %51 = vst.msk [vmem:[#allocation2 + $0xb0] sm:$0xff] %vm28_vm0, %v2836_v0  ;;  %52 = vst.msk [vmem:[#allocation2 + $0xb8] sm:$0xff] %vm28_vm0, %v2836_v0  ;;  %v2996_v25 = vld [vmem:[#allocation3 + $0xc8] sm:$0xff]  ;;  %v2998_v26 = vld [vmem:[#allocation3 + $0xc0] sm:$0xff] }
  0x1f   :  { %53 = vst.msk [vmem:[#allocation2 + $0xc0] sm:$0xff] %vm28_vm0, %v2836_v0  ;;  %54 = vst.msk [vmem:[#allocation2 + $0xc8] sm:$0xff] %vm28_vm0, %v2836_v0  ;;  %v3004_v27 = vld [vmem:[#allocation3 + $0xd8] sm:$0xff]  ;;  %v3006_v28 = vld [vmem:[#allocation3 + $0xd0] sm:$0xff] }
  0x20   :  { %55 = vst.msk [vmem:[#allocation2 + $0xd0] sm:$0xff] %vm28_vm0, %v2836_v0  ;;  %56 = vst.msk [vmem:[#allocation2 + $0xd8] sm:$0xff] %vm28_vm0, %v2836_v0  ;;  %115 = vrot.lane.b32.xlu1 %v76_v7, %s2837_s0  ;;  %113 = vrot.lane.b32.xlu0 %v75_v8, %s2837_s0  ;;  %v3014_v31 = vld [vmem:[#allocation3 + $0xe8] sm:$0xff]  ;;  %v3016_v32 = vld [vmem:[#allocation3 + $0xe0] sm:$0xff] }
  0x21   :  { %57 = vst.msk [vmem:[#allocation2 + $0xe0] sm:$0xff] %vm28_vm0, %v2836_v0  ;;  %58 = vst.msk [vmem:[#allocation2 + $0xe8] sm:$0xff] %vm28_vm0, %v2836_v0  ;;  %v3024_v35 = vld [vmem:[#allocation3 + $0xf8] sm:$0xff]  ;;  %v3026_v36 = vld [vmem:[#allocation3 + $0xf0] sm:$0xff] }
  0x22   :  { %59 = vst.msk [vmem:[#allocation2 + $0xf0] sm:$0xff] %vm28_vm0, %v2836_v0  ;;  %60 = vst.msk [vmem:[#allocation2 + $0xf8] sm:$0xff] %vm28_vm0, %v2836_v0 }
  0x23   :  { %61 = vst.msk [vmem:[#allocation2 + $0x100] sm:$0xff] %vm28_vm0, %v2836_v0  ;;  %62 = vst.msk [vmem:[#allocation2 + $0x108] sm:$0xff] %vm28_vm0, %v2836_v0 }
  0x24   :  { %63 = vst.msk [vmem:[#allocation2 + $0x110] sm:$0xff] %vm28_vm0, %v2836_v0  ;;  %64 = vst.msk [vmem:[#allocation2 + $0x118] sm:$0xff] %vm28_vm0, %v2836_v0  ;;  %119 = vrot.lane.b32.xlu1 %v78_v9, %s2837_s0  ;;  %117 = vrot.lane.b32.xlu0 %v77_v10, %s2837_s0 }
  0x25   :  { %65 = vst.msk [vmem:[#allocation2 + $0x120] sm:$0xff] %vm28_vm0, %v2836_v0  ;;  %66 = vst.msk [vmem:[#allocation2 + $0x128] sm:$0xff] %vm28_vm0, %v2836_v0 }
  0x26   :  { %67 = vst.msk [vmem:[#allocation2 + $0x130] sm:$0xff] %vm28_vm0, %v2836_v0  ;;  %68 = vst.msk [vmem:[#allocation2 + $0x138] sm:$0xff] %vm28_vm0, %v2836_v0 }
  0x28   :  { %123 = vrot.lane.b32.xlu1 %v80_v11, %s2837_s0  ;;  %121 = vrot.lane.b32.xlu0 %v79_v12, %s2837_s0 }
  0x2c   :  { %127 = vrot.lane.b32.xlu1 %v82_v13, %s2837_s0  ;;  %125 = vrot.lane.b32.xlu0 %v81_v14, %s2837_s0 }
  0x30   :  { %131 = vrot.lane.b32.xlu1 %v84_v15, %s2837_s0  ;;  %129 = vrot.lane.b32.xlu0 %v83_v16, %s2837_s0 }
  0x34   :  { %168 = vrot.lane.b32.xlu1 %v70_v4, %s2838_s26  ;;  %166 = vrot.lane.b32.xlu0 %v69_v2, %s2838_s26 }
  0x38   :  { %172 = vrot.lane.b32.xlu1 %v72_v3, %s2838_s26  ;;  %170 = vrot.lane.b32.xlu0 %v71_v1, %s2838_s26 }
  0x3c   :  { %176 = vrot.lane.b32.xlu1 %v74_v5, %s2838_s26  ;;  %174 = vrot.lane.b32.xlu0 %v73_v6, %s2838_s26 }
  0x40   :  { %180 = vrot.lane.b32.xlu1 %v76_v7, %s2838_s26  ;;  %178 = vrot.lane.b32.xlu0 %v75_v8, %s2838_s26 }
  0x44   :  { %184 = vrot.lane.b32.xlu1 %v78_v9, %s2838_s26  ;;  %182 = vrot.lane.b32.xlu0 %v77_v10, %s2838_s26 }
  0x48   :  { %188 = vrot.lane.b32.xlu1 %v80_v11, %s2838_s26  ;;  %186 = vrot.lane.b32.xlu0 %v79_v12, %s2838_s26 }
  0x4c   :  { %192 = vrot.lane.b32.xlu1 %v82_v13, %s2838_s26  ;;  %190 = vrot.lane.b32.xlu0 %v81_v14, %s2838_s26 }
  0x50   :  { %196 = vrot.lane.b32.xlu1 %v84_v15, %s2838_s26  ;;  %194 = vrot.lane.b32.xlu0 %v83_v16, %s2838_s26 }
  0x54   :  { %233 = vrot.lane.b32.xlu1 %v70_v4, %s2839_s27  ;;  %231 = vrot.lane.b32.xlu0 %v69_v2, %s2839_s27 }
  0x58   :  { %237 = vrot.lane.b32.xlu1 %v72_v3, %s2839_s27  ;;  %235 = vrot.lane.b32.xlu0 %v71_v1, %s2839_s27 }
  0x5c   :  { %241 = vrot.lane.b32.xlu1 %v74_v5, %s2839_s27  ;;  %239 = vrot.lane.b32.xlu0 %v73_v6, %s2839_s27 }
  0x60   :  { %245 = vrot.lane.b32.xlu1 %v76_v7, %s2839_s27  ;;  %243 = vrot.lane.b32.xlu0 %v75_v8, %s2839_s27 }
  0x64   :  { %249 = vrot.lane.b32.xlu1 %v78_v9, %s2839_s27  ;;  %247 = vrot.lane.b32.xlu0 %v77_v10, %s2839_s27 }
  0x68   :  { %253 = vrot.lane.b32.xlu1 %v80_v11, %s2839_s27  ;;  %251 = vrot.lane.b32.xlu0 %v79_v12, %s2839_s27 }
  0x6c   :  { %257 = vrot.lane.b32.xlu1 %v82_v13, %s2839_s27  ;;  %255 = vrot.lane.b32.xlu0 %v81_v14, %s2839_s27 }
  0x70   :  { %261 = vrot.lane.b32.xlu1 %v84_v15, %s2839_s27  ;;  %259 = vrot.lane.b32.xlu0 %v83_v16, %s2839_s27 }
  0x74   :  { %331 = vrot.lane.b32.xlu1 %v2964_v17, %s2837_s0  ;;  %329 = vrot.lane.b32.xlu0 %v2966_v18, %s2837_s0 }
  0x78   :  { %335 = vrot.lane.b32.xlu1 %v2972_v19, %s2837_s0  ;;  %333 = vrot.lane.b32.xlu0 %v2974_v20, %s2837_s0 }
  0x7c   :  { %339 = vrot.lane.b32.xlu1 %v2980_v21, %s2837_s0  ;;  %337 = vrot.lane.b32.xlu0 %v2982_v22, %s2837_s0 }
  0x80   :  { %343 = vrot.lane.b32.xlu1 %v2988_v23, %s2837_s0  ;;  %341 = vrot.lane.b32.xlu0 %v2990_v24, %s2837_s0 }
  0x84   :  { %347 = vrot.lane.b32.xlu1 %v2996_v25, %s2837_s0  ;;  %345 = vrot.lane.b32.xlu0 %v2998_v26, %s2837_s0 }
  0x86   :  { %v106_v29 = vpop.permute.xlu1 %105  ;;  %v102_v30 = vpop.permute.xlu0 %101 }
  0x87   :  { %152 = vst.msk [vmem:[#allocation2 + $0x2a] sm:$0xff] %vm149_vm1, %v106_v29  ;;  %150 = vst.msk [vmem:[#allocation2 + $0x2] sm:$0xff] %vm149_vm1, %v102_v30 }
  0x88   :  { %351 = vrot.lane.b32.xlu1 %v3004_v27, %s2837_s0  ;;  %349 = vrot.lane.b32.xlu0 %v3006_v28, %s2837_s0 }
  0x8a   :  { %v108_v33 = vpop.permute.xlu1 %107  ;;  %v104_v34 = vpop.permute.xlu0 %103 }
  0x8b   :  { %153 = vst.msk [vmem:[#allocation2 + $0x32] sm:$0xff] %vm149_vm1, %v108_v33  ;;  %151 = vst.msk [vmem:[#allocation2 + $0xa] sm:$0xff] %vm149_vm1, %v104_v34 }
  0x8c   :  { %355 = vrot.lane.b32.xlu1 %v3014_v31, %s2837_s0  ;;  %353 = vrot.lane.b32.xlu0 %v3016_v32, %s2837_s0 }
  0x8e   :  { %v112_v37 = vpop.permute.xlu1 %111  ;;  %v110_v38 = vpop.permute.xlu0 %109 }
  0x8f   :  { %155 = vst.msk [vmem:[#allocation2 + $0x5a] sm:$0xff] %vm149_vm1, %v112_v37  ;;  %154 = vst.msk [vmem:[#allocation2 + $0x52] sm:$0xff] %vm149_vm1, %v110_v38 }
  0x90   :  { %359 = vrot.lane.b32.xlu1 %v3024_v35, %s2837_s0  ;;  %357 = vrot.lane.b32.xlu0 %v3026_v36, %s2837_s0 }
  0x92   :  { %v116_v39 = vpop.permute.xlu1 %115  ;;  %v114_v40 = vpop.permute.xlu0 %113 }
  0x93   :  { %157 = vst.msk [vmem:[#allocation2 + $0x82] sm:$0xff] %vm149_vm1, %v116_v39  ;;  %156 = vst.msk [vmem:[#allocation2 + $0x7a] sm:$0xff] %vm149_vm1, %v114_v40 }
  0x94   :  { %395 = vrot.lane.b32.xlu1 %v2964_v17, %s2838_s26  ;;  %393 = vrot.lane.b32.xlu0 %v2966_v18, %s2838_s26 }
  0x96   :  { %v120_v41 = vpop.permute.xlu1 %119  ;;  %v118_v42 = vpop.permute.xlu0 %117 }
  0x97   :  { %159 = vst.msk [vmem:[#allocation2 + $0xaa] sm:$0xff] %vm149_vm1, %v120_v41  ;;  %158 = vst.msk [vmem:[#allocation2 + $0xa2] sm:$0xff] %vm149_vm1, %v118_v42 }
  0x98   :  { %399 = vrot.lane.b32.xlu1 %v2972_v19, %s2838_s26  ;;  %397 = vrot.lane.b32.xlu0 %v2974_v20, %s2838_s26 }
  0x9a   :  { %v124_v43 = vpop.permute.xlu1 %123  ;;  %v122_v44 = vpop.permute.xlu0 %121 }
  0x9b   :  { %161 = vst.msk [vmem:[#allocation2 + $0xd2] sm:$0xff] %vm149_vm1, %v124_v43  ;;  %160 = vst.msk [vmem:[#allocation2 + $0xca] sm:$0xff] %vm149_vm1, %v122_v44 }
  0x9c   :  { %403 = vrot.lane.b32.xlu1 %v2980_v21, %s2838_s26  ;;  %401 = vrot.lane.b32.xlu0 %v2982_v22, %s2838_s26 }
  0x9e   :  { %v128_v45 = vpop.permute.xlu1 %127  ;;  %v126_v46 = vpop.permute.xlu0 %125 }
  0x9f   :  { %163 = vst.msk [vmem:[#allocation2 + $0xfa] sm:$0xff] %vm149_vm1, %v128_v45  ;;  %162 = vst.msk [vmem:[#allocation2 + $0xf2] sm:$0xff] %vm149_vm1, %v126_v46 }
  0xa0   :  { %407 = vrot.lane.b32.xlu1 %v2988_v23, %s2838_s26  ;;  %405 = vrot.lane.b32.xlu0 %v2990_v24, %s2838_s26 }
  0xa2   :  { %v132_v47 = vpop.permute.xlu1 %131  ;;  %v130_v48 = vpop.permute.xlu0 %129 }
  0xa3   :  { %165 = vst.msk [vmem:[#allocation2 + $0x122] sm:$0xff] %vm149_vm1, %v132_v47  ;;  %164 = vst.msk [vmem:[#allocation2 + $0x11a] sm:$0xff] %vm149_vm1, %v130_v48 }
  0xa4   :  { %411 = vrot.lane.b32.xlu1 %v2996_v25, %s2838_s26  ;;  %409 = vrot.lane.b32.xlu0 %v2998_v26, %s2838_s26 }
  0xa6   :  { %v169_v49 = vpop.permute.xlu1 %168  ;;  %v167_v50 = vpop.permute.xlu0 %166 }
  0xa7   :  { %216 = vst.msk [vmem:[#allocation2 + $0xa] sm:$0xff] %vm214_vm2, %v169_v49  ;;  %215 = vst.msk [vmem:[#allocation2 + $0x2] sm:$0xff] %vm214_vm2, %v167_v50 }
  0xa8   :  { %415 = vrot.lane.b32.xlu1 %v3004_v27, %s2838_s26  ;;  %413 = vrot.lane.b32.xlu0 %v3006_v28, %s2838_s26 }
  0xaa   :  { %v173_v51 = vpop.permute.xlu1 %172  ;;  %v171_v52 = vpop.permute.xlu0 %170 }
  0xab   :  { %218 = vst.msk [vmem:[#allocation2 + $0x32] sm:$0xff] %vm214_vm2, %v173_v51  ;;  %217 = vst.msk [vmem:[#allocation2 + $0x2a] sm:$0xff] %vm214_vm2, %v171_v52 }
  0xac   :  { %419 = vrot.lane.b32.xlu1 %v3014_v31, %s2838_s26  ;;  %417 = vrot.lane.b32.xlu0 %v3016_v32, %s2838_s26 }
  0xae   :  { %v177_v53 = vpop.permute.xlu1 %176  ;;  %v175_v54 = vpop.permute.xlu0 %174 }
  0xaf   :  { %220 = vst.msk [vmem:[#allocation2 + $0x5a] sm:$0xff] %vm214_vm2, %v177_v53  ;;  %219 = vst.msk [vmem:[#allocation2 + $0x52] sm:$0xff] %vm214_vm2, %v175_v54 }
  0xb0   :  { %423 = vrot.lane.b32.xlu1 %v3024_v35, %s2838_s26  ;;  %421 = vrot.lane.b32.xlu0 %v3026_v36, %s2838_s26 }
  0xb2   :  { %v181_v55 = vpop.permute.xlu1 %180  ;;  %v179_v56 = vpop.permute.xlu0 %178 }
  0xb3   :  { %222 = vst.msk [vmem:[#allocation2 + $0x82] sm:$0xff] %vm214_vm2, %v181_v55  ;;  %221 = vst.msk [vmem:[#allocation2 + $0x7a] sm:$0xff] %vm214_vm2, %v179_v56 }
  0xb4   :  { %459 = vrot.lane.b32.xlu1 %v2964_v17, %s2839_s27  ;;  %457 = vrot.lane.b32.xlu0 %v2966_v18, %s2839_s27 }
  0xb6   :  { %v185_v57 = vpop.permute.xlu1 %184  ;;  %v183_v58 = vpop.permute.xlu0 %182 }
  0xb7   :  { %224 = vst.msk [vmem:[#allocation2 + $0xaa] sm:$0xff] %vm214_vm2, %v185_v57  ;;  %223 = vst.msk [vmem:[#allocation2 + $0xa2] sm:$0xff] %vm214_vm2, %v183_v58 }
  0xb8   :  { %463 = vrot.lane.b32.xlu1 %v2972_v19, %s2839_s27  ;;  %461 = vrot.lane.b32.xlu0 %v2974_v20, %s2839_s27 }
  0xba   :  { %v189_v59 = vpop.permute.xlu1 %188  ;;  %v187_v60 = vpop.permute.xlu0 %186 }
  0xbb   :  { %226 = vst.msk [vmem:[#allocation2 + $0xd2] sm:$0xff] %vm214_vm2, %v189_v59  ;;  %225 = vst.msk [vmem:[#allocation2 + $0xca] sm:$0xff] %vm214_vm2, %v187_v60 }
  0xbc   :  { %467 = vrot.lane.b32.xlu1 %v2980_v21, %s2839_s27  ;;  %465 = vrot.lane.b32.xlu0 %v2982_v22, %s2839_s27 }
  0xbe   :  { %v193_v61 = vpop.permute.xlu1 %192  ;;  %v191_v62 = vpop.permute.xlu0 %190 }
  0xbf   :  { %228 = vst.msk [vmem:[#allocation2 + $0xfa] sm:$0xff] %vm214_vm2, %v193_v61  ;;  %227 = vst.msk [vmem:[#allocation2 + $0xf2] sm:$0xff] %vm214_vm2, %v191_v62 }
  0xc0   :  { %471 = vrot.lane.b32.xlu1 %v2988_v23, %s2839_s27  ;;  %469 = vrot.lane.b32.xlu0 %v2990_v24, %s2839_s27 }
  0xc2   :  { %v197_v63 = vpop.permute.xlu1 %196  ;;  %v195_v0 = vpop.permute.xlu0 %194 }
  0xc3   :  { %230 = vst.msk [vmem:[#allocation2 + $0x122] sm:$0xff] %vm214_vm2, %v197_v63  ;;  %229 = vst.msk [vmem:[#allocation2 + $0x11a] sm:$0xff] %vm214_vm2, %v195_v0 }
  0xc4   :  { %475 = vrot.lane.b32.xlu1 %v2996_v25, %s2839_s27  ;;  %473 = vrot.lane.b32.xlu0 %v2998_v26, %s2839_s27 }
  0xc6   :  { %v234_v1 = vpop.permute.xlu1 %233  ;;  %v232_v2 = vpop.permute.xlu0 %231 }
  0xc7   :  { %281 = vst.msk [vmem:[#allocation2 + $0xa] sm:$0xff] %vm279_vm3, %v234_v1  ;;  %280 = vst.msk [vmem:[#allocation2 + $0x2] sm:$0xff] %vm279_vm3, %v232_v2 }
  0xc8   :  { %479 = vrot.lane.b32.xlu1 %v3004_v27, %s2839_s27  ;;  %477 = vrot.lane.b32.xlu0 %v3006_v28, %s2839_s27 }
  0xca   :  { %v238_v3 = vpop.permute.xlu1 %237  ;;  %v236_v4 = vpop.permute.xlu0 %235 }
  0xcb   :  { %283 = vst.msk [vmem:[#allocation2 + $0x32] sm:$0xff] %vm279_vm3, %v238_v3  ;;  %282 = vst.msk [vmem:[#allocation2 + $0x2a] sm:$0xff] %vm279_vm3, %v236_v4 }
  0xcc   :  { %483 = vrot.lane.b32.xlu1 %v3014_v31, %s2839_s27  ;;  %481 = vrot.lane.b32.xlu0 %v3016_v32, %s2839_s27 }
  0xce   :  { %v242_v5 = vpop.permute.xlu1 %241  ;;  %v240_v6 = vpop.permute.xlu0 %239  ;;  %v3132_v9 = vld [vmem:[#allocation2 + $0x8] sm:$0xff]  ;;  %v3134_v10 = vld [vmem:[#allocation2] sm:$0xff] }
  0xcf   :  { %285 = vst.msk [vmem:[#allocation2 + $0x5a] sm:$0xff] %vm279_vm3, %v242_v5  ;;  %284 = vst.msk [vmem:[#allocation2 + $0x52] sm:$0xff] %vm279_vm3, %v240_v6  ;;  %v3214_v4 = vld [vmem:[#allocation2 + $0x9] sm:$0xff]  ;;  %v3216_v5 = vld [vmem:[#allocation2 + $0x1] sm:$0xff] }
  0xd0   :  { %487 = vrot.lane.b32.xlu1 %v3024_v35, %s2839_s27  ;;  %485 = vrot.lane.b32.xlu0 %v3026_v36, %s2839_s27 }
  0xd2   :  { %v246_v7 = vpop.permute.xlu1 %245  ;;  %v244_v8 = vpop.permute.xlu0 %243 }
  0xd3   :  { %287 = vst.msk [vmem:[#allocation2 + $0x82] sm:$0xff] %vm279_vm3, %v246_v7  ;;  %286 = vst.msk [vmem:[#allocation2 + $0x7a] sm:$0xff] %vm279_vm3, %v244_v8 }
  0xd4   :  { %560 = vrot.lane.b32.xlu1 %v3132_v9, %s2840_s28  ;;  %558 = vrot.lane.b32.xlu0 %v3134_v10, %s2840_s28 }
  0xd6   :  { %v250_v11 = vpop.permute.xlu1 %249  ;;  %v248_v12 = vpop.permute.xlu0 %247 }
  0xd7   :  { %289 = vst.msk [vmem:[#allocation2 + $0xaa] sm:$0xff] %vm279_vm3, %v250_v11  ;;  %288 = vst.msk [vmem:[#allocation2 + $0xa2] sm:$0xff] %vm279_vm3, %v248_v12 }
  0xda   :  { %v254_v13 = vpop.permute.xlu1 %253  ;;  %v252_v14 = vpop.permute.xlu0 %251 }
  0xdb   :  { %291 = vst.msk [vmem:[#allocation2 + $0xd2] sm:$0xff] %vm279_vm3, %v254_v13  ;;  %290 = vst.msk [vmem:[#allocation2 + $0xca] sm:$0xff] %vm279_vm3, %v252_v14  ;;  %v3248_v13 = vld [vmem:[#allocation2 + $0xa] sm:$0xff]  ;;  %v3250_v14 = vld [vmem:[#allocation2 + $0x2] sm:$0xff] }
  0xde   :  { %v258_v15 = vpop.permute.xlu1 %257  ;;  %v256_v16 = vpop.permute.xlu0 %255 }
  0xdf   :  { %293 = vst.msk [vmem:[#allocation2 + $0xfa] sm:$0xff] %vm279_vm3, %v258_v15  ;;  %292 = vst.msk [vmem:[#allocation2 + $0xf2] sm:$0xff] %vm279_vm3, %v256_v16 }
  0xe2   :  { %v262_v17 = vpop.permute.xlu1 %261  ;;  %v260_v18 = vpop.permute.xlu0 %259 }
  0xe3   :  { %295 = vst.msk [vmem:[#allocation2 + $0x122] sm:$0xff] %vm279_vm3, %v262_v17  ;;  %294 = vst.msk [vmem:[#allocation2 + $0x11a] sm:$0xff] %vm279_vm3, %v260_v18  ;;  %v3278_v18 = vld [vmem:[#allocation2 + $0x30] sm:$0xff] }
  0xe6   :  { %v332_v19 = vpop.permute.xlu1 %331  ;;  %v330_v20 = vpop.permute.xlu0 %329 }
  0xe7   :  { %378 = vst.msk [vmem:[#allocation2 + $0x1e] sm:$0xff] %vm149_vm1, %v332_v19  ;;  %377 = vst.msk [vmem:[#allocation2 + $0x16] sm:$0xff] %vm149_vm1, %v330_v20  ;;  %v3280_v19 = vld [vmem:[#allocation2 + $0x28] sm:$0xff] }
  0xea   :  { %v336_v21 = vpop.permute.xlu1 %335  ;;  %v334_v22 = vpop.permute.xlu0 %333 }
  0xeb   :  { %380 = vst.msk [vmem:[#allocation2 + $0x46] sm:$0xff] %vm149_vm1, %v336_v21  ;;  %379 = vst.msk [vmem:[#allocation2 + $0x3e] sm:$0xff] %vm149_vm1, %v334_v22 }
  0xee   :  { %v340_v23 = vpop.permute.xlu1 %339  ;;  %v338_v24 = vpop.permute.xlu0 %337 }
  0xef   :  { %382 = vst.msk [vmem:[#allocation2 + $0x6e] sm:$0xff] %vm149_vm1, %v340_v23  ;;  %381 = vst.msk [vmem:[#allocation2 + $0x66] sm:$0xff] %vm149_vm1, %v338_v24  ;;  %v3308_v23 = vld [vmem:[#allocation2 + $0x31] sm:$0xff]  ;;  %v3310_v24 = vld [vmem:[#allocation2 + $0x29] sm:$0xff] }
  0xf0   :  { %4754 = vst [vmem:[#allocation6_spill] sm:$0xff] %v3308_v23  ;;  %4755 = vst [vmem:[#allocation7_spill] sm:$0xff] %v3310_v24 }
  0xf2   :  { %v344_v25 = vpop.permute.xlu1 %343  ;;  %v342_v26 = vpop.permute.xlu0 %341 }
  0xf3   :  { %384 = vst.msk [vmem:[#allocation2 + $0x96] sm:$0xff] %vm149_vm1, %v344_v25  ;;  %383 = vst.msk [vmem:[#allocation2 + $0x8e] sm:$0xff] %vm149_vm1, %v342_v26 }
  0xf6   :  { %v348_v27 = vpop.permute.xlu1 %347  ;;  %v346_v28 = vpop.permute.xlu0 %345 }
  0xf7   :  { %386 = vst.msk [vmem:[#allocation2 + $0xbe] sm:$0xff] %vm149_vm1, %v348_v27  ;;  %385 = vst.msk [vmem:[#allocation2 + $0xb6] sm:$0xff] %vm149_vm1, %v346_v28  ;;  %v3338_v28 = vld [vmem:[#allocation2 + $0x32] sm:$0xff] }
  0xf8   :  { %4757 = vst [vmem:[#allocation9_spill] sm:$0xff] %v3338_v28 }
  0xfa   :  { %v352_v29 = vpop.permute.xlu1 %351  ;;  %v350_v30 = vpop.permute.xlu0 %349 }
  0xfb   :  { %388 = vst.msk [vmem:[#allocation2 + $0xe6] sm:$0xff] %vm149_vm1, %v352_v29  ;;  %387 = vst.msk [vmem:[#allocation2 + $0xde] sm:$0xff] %vm149_vm1, %v350_v30  ;;  %v3340_v29 = vld [vmem:[#allocation2 + $0x2a] sm:$0xff] }
  0xfc   :  { %4758 = vst [vmem:[#allocation10_spill] sm:$0xff] %v3340_v29 }
  0xfe   :  { %v356_v31 = vpop.permute.xlu1 %355  ;;  %v354_v32 = vpop.permute.xlu0 %353 }
  0xff   :  { %390 = vst.msk [vmem:[#allocation2 + $0x10e] sm:$0xff] %vm149_vm1, %v356_v31  ;;  %389 = vst.msk [vmem:[#allocation2 + $0x106] sm:$0xff] %vm149_vm1, %v354_v32 }
 0x102   :  { %v360_v33 = vpop.permute.xlu1 %359  ;;  %v358_v34 = vpop.permute.xlu0 %357 }
 0x103   :  { %392 = vst.msk [vmem:[#allocation2 + $0x136] sm:$0xff] %vm149_vm1, %v360_v33  ;;  %391 = vst.msk [vmem:[#allocation2 + $0x12e] sm:$0xff] %vm149_vm1, %v358_v34 }
 0x106   :  { %v396_v35 = vpop.permute.xlu1 %395  ;;  %v394_v36 = vpop.permute.xlu0 %393 }
 0x107   :  { %442 = vst.msk [vmem:[#allocation2 + $0x1e] sm:$0xff] %vm214_vm2, %v396_v35  ;;  %441 = vst.msk [vmem:[#allocation2 + $0x16] sm:$0xff] %vm214_vm2, %v394_v36 }
 0x10a   :  { %v400_v37 = vpop.permute.xlu1 %399  ;;  %v398_v38 = vpop.permute.xlu0 %397 }
 0x10b   :  { %444 = vst.msk [vmem:[#allocation2 + $0x46] sm:$0xff] %vm214_vm2, %v400_v37  ;;  %443 = vst.msk [vmem:[#allocation2 + $0x3e] sm:$0xff] %vm214_vm2, %v398_v38  ;;  %v3372_v37 = vld [vmem:[#allocation2 + $0x58] sm:$0xff]  ;;  %v3374_v38 = vld [vmem:[#allocation2 + $0x50] sm:$0xff] }
 0x10c   :  { %4762 = vst [vmem:[#allocation14_spill] sm:$0xff] %v3372_v37  ;;  %4763 = vst [vmem:[#allocation15_spill] sm:$0xff] %v3374_v38 }
 0x10e   :  { %v404_v39 = vpop.permute.xlu1 %403  ;;  %v402_v40 = vpop.permute.xlu0 %401 }
 0x10f   :  { %446 = vst.msk [vmem:[#allocation2 + $0x6e] sm:$0xff] %vm214_vm2, %v404_v39  ;;  %445 = vst.msk [vmem:[#allocation2 + $0x66] sm:$0xff] %vm214_vm2, %v402_v40  ;;  %v3379_v39 = vld [vmem:[%s4707_s1] ss:$0 sm:$0xff] }
 0x112   :  { %v408_v41 = vpop.permute.xlu1 %407  ;;  %v406_v42 = vpop.permute.xlu0 %405 }
 0x113   :  { %448 = vst.msk [vmem:[#allocation2 + $0x96] sm:$0xff] %vm214_vm2, %v408_v41  ;;  %447 = vst.msk [vmem:[#allocation2 + $0x8e] sm:$0xff] %vm214_vm2, %v406_v42  ;;  %v3390_v41 = vld [vmem:[%s4707_s1 + $0x1] ss:$0 sm:$0xff] }
 0x116   :  { %v412_v43 = vpop.permute.xlu1 %411  ;;  %v410_v44 = vpop.permute.xlu0 %409 }
 0x117   :  { %450 = vst.msk [vmem:[#allocation2 + $0xbe] sm:$0xff] %vm214_vm2, %v412_v43  ;;  %449 = vst.msk [vmem:[#allocation2 + $0xb6] sm:$0xff] %vm214_vm2, %v410_v44 }
 0x11a   :  { %v416_v45 = vpop.permute.xlu1 %415  ;;  %v414_v46 = vpop.permute.xlu0 %413 }
 0x11b   :  { %452 = vst.msk [vmem:[#allocation2 + $0xe6] sm:$0xff] %vm214_vm2, %v416_v45  ;;  %451 = vst.msk [vmem:[#allocation2 + $0xde] sm:$0xff] %vm214_vm2, %v414_v46 }
 0x11e   :  { %v420_v47 = vpop.permute.xlu1 %419  ;;  %v418_v48 = vpop.permute.xlu0 %417 }
 0x11f   :  { %454 = vst.msk [vmem:[#allocation2 + $0x10e] sm:$0xff] %vm214_vm2, %v420_v47  ;;  %453 = vst.msk [vmem:[#allocation2 + $0x106] sm:$0xff] %vm214_vm2, %v418_v48  ;;  %v3402_v47 = vld [vmem:[%s4708_s2] ss:$0 sm:$0xff]  ;;  %s2842_s2 = smov 108  }
 0x122   :  { %v424_v49 = vpop.permute.xlu1 %423  ;;  %v422_v50 = vpop.permute.xlu0 %421 }
 0x123   :  { %456 = vst.msk [vmem:[#allocation2 + $0x136] sm:$0xff] %vm214_vm2, %v424_v49  ;;  %455 = vst.msk [vmem:[#allocation2 + $0x12e] sm:$0xff] %vm214_vm2, %v422_v50 }
 0x126   :  { %v460_v51 = vpop.permute.xlu1 %459  ;;  %v458_v52 = vpop.permute.xlu0 %457 }
 0x127   :  { %506 = vst.msk [vmem:[#allocation2 + $0x1e] sm:$0xff] %vm279_vm3, %v460_v51  ;;  %505 = vst.msk [vmem:[#allocation2 + $0x16] sm:$0xff] %vm279_vm3, %v458_v52  ;;  %v3417_v52 = vld [vmem:[%s4707_s1 + $0x2] ss:$0 sm:$0xff] }
 0x12a   :  { %v464_v53 = vpop.permute.xlu1 %463  ;;  %v462_v54 = vpop.permute.xlu0 %461 }
 0x12b   :  { %508 = vst.msk [vmem:[#allocation2 + $0x46] sm:$0xff] %vm279_vm3, %v464_v53  ;;  %507 = vst.msk [vmem:[#allocation2 + $0x3e] sm:$0xff] %vm279_vm3, %v462_v54 }
 0x12e   :  { %v468_v55 = vpop.permute.xlu1 %467  ;;  %v466_v56 = vpop.permute.xlu0 %465  ;;  %v3184_v57 = vld [vmem:[#allocation2 + $0x18] sm:$0xff]  ;;  %v3186_v58 = vld [vmem:[#allocation2 + $0x10] sm:$0xff]  ;;  %v3194_v59 = vld [vmem:[#allocation2 + $0x20] sm:$0x3f] }
 0x12f   :  { %510 = vst.msk [vmem:[#allocation2 + $0x6e] sm:$0xff] %vm279_vm3, %v468_v55  ;;  %509 = vst.msk [vmem:[#allocation2 + $0x66] sm:$0xff] %vm279_vm3, %v466_v56  ;;  %564 = vrot.lane.b32.xlu1 %v3184_v57, %s2840_s28  ;;  %562 = vrot.lane.b32.xlu0 %v3186_v58, %s2840_s28  ;;  %v3224_v8 = vld [vmem:[#allocation2 + $0x19] sm:$0xff]  ;;  %v3226_v11 = vld [vmem:[#allocation2 + $0x11] sm:$0xff]  ;;  %v540_v40 = vmul.f32 %v3379_v39, %v3186_v58  ;;  %v541_v48 = vmul.f32 %v3379_v39, %v3184_v57 }
 0x130   :  { %v3234_v12 = vld [vmem:[#allocation2 + $0x21] sm:$0x3f]  ;;  %v3258_v16 = vld [vmem:[#allocation2 + $0x12] sm:$0xff]  ;;  %v542_v50 = vmul.f32 %v3379_v39, %v3194_v59 }
 0x131   :  { %v3256_v15 = vld [vmem:[#allocation2 + $0x1a] sm:$0xff]  ;;  %v3264_v17 = vld [vmem:[#allocation2 + $0x22] sm:$0x3f]  ;;  %v545_v49 = vadd.f32 %v3402_v47, %v540_v40 }
 0x132   :  { %v472_v60 = vpop.permute.xlu1 %471  ;;  %v470_v61 = vpop.permute.xlu0 %469  ;;  %v3286_v20 = vld [vmem:[#allocation2 + $0x40] sm:$0xff]  ;;  %v3288_v21 = vld [vmem:[#allocation2 + $0x38] sm:$0xff]  ;;  %v3294_v22 = vld [vmem:[#allocation2 + $0x48] sm:$0x3f] }
 0x133   :  { %512 = vst.msk [vmem:[#allocation2 + $0x96] sm:$0xff] %vm279_vm3, %v472_v60  ;;  %511 = vst.msk [vmem:[#allocation2 + $0x8e] sm:$0xff] %vm279_vm3, %v470_v61  ;;  %588 = vrot.lane.b32.xlu1 %v3134_v10, %s2841_s29  ;;  %566 = vrot.lane.b32.xlu0 %v3194_v59, %s2840_s28  ;;  %v3316_v25 = vld [vmem:[#allocation2 + $0x41] sm:$0xff]  ;;  %v3318_v26 = vld [vmem:[#allocation2 + $0x39] sm:$0xff]  ;;  %v546_v60 = vadd.f32 %v3402_v47, %v541_v48  ;;  %v547_v61 = vadd.f32 %v3402_v47, %v542_v50 }
 0x134   :  { %v3324_v27 = vld [vmem:[#allocation2 + $0x49] sm:$0x3f]  ;;  %v3348_v31 = vld [vmem:[#allocation2 + $0x3a] sm:$0xff] }
 0x135   :  { %4756 = vst [vmem:[#allocation8_spill] sm:$0xff] %v3324_v27  ;;  %v3346_v30 = vld [vmem:[#allocation2 + $0x42] sm:$0xff]  ;;  %4760 = vst [vmem:[#allocation12_spill] sm:$0xff] %v3348_v31  ;;  %v3354_v32 = vld [vmem:[#allocation2 + $0x4a] sm:$0x3f] }
 0x136   :  { %v476_v62 = vpop.permute.xlu1 %475  ;;  %v474_v63 = vpop.permute.xlu0 %473  ;;  %4759 = vst [vmem:[#allocation11_spill] sm:$0xff] %v3346_v30  ;;  %4761 = vst [vmem:[#allocation13_spill] sm:$0xff] %v3354_v32  ;;  %v3395_v45 = vld [vmem:[#allocation2 + $0x68] sm:$0xff]  ;;  %v3397_v46 = vld [vmem:[#allocation2 + $0x60] sm:$0xff] }
 0x137   :  { %514 = vst.msk [vmem:[#allocation2 + $0xbe] sm:$0xff] %vm279_vm3, %v476_v62  ;;  %513 = vst.msk [vmem:[#allocation2 + $0xb6] sm:$0xff] %vm279_vm3, %v474_v63  ;;  %592 = vrot.lane.b32.xlu1 %v3186_v58, %s2841_s29  ;;  %590 = vrot.lane.b32.xlu0 %v3132_v9, %s2841_s29  ;;  %v3423_v58 = vld [vmem:[#allocation2 + $0x70] sm:$0x3f] }
 0x138   :  { %4764 = vst [vmem:[#allocation16_spill] sm:$0xff] %v3395_v45  ;;  %4765 = vst [vmem:[#allocation17_spill] sm:$0xff] %v3397_v46 }
 0x139   :  { %4766 = vst [vmem:[#allocation18_spill] sm:$0xff] %v3423_v58 }
 0x13a   :  { %v480_v0 = vpop.permute.xlu1 %479  ;;  %v478_v1 = vpop.permute.xlu0 %477 }
 0x13b   :  { %516 = vst.msk [vmem:[#allocation2 + $0xe6] sm:$0xff] %vm279_vm3, %v480_v0  ;;  %515 = vst.msk [vmem:[#allocation2 + $0xde] sm:$0xff] %vm279_vm3, %v478_v1  ;;  %596 = vrot.lane.b32.xlu1 %v3194_v59, %s2841_s29  ;;  %594 = vrot.lane.b32.xlu0 %v3184_v57, %s2841_s29  ;;  %v3429_v59 = vld [vmem:[%s4707_s1 + $0x3] ss:$0 sm:$0xff] }
 0x13c   :  { %v625_v62 = vmul.f32 %v3429_v59, %v3226_v11 }
 0x13e   :  { %v484_v2 = vpop.permute.xlu1 %483  ;;  %v482_v3 = vpop.permute.xlu0 %481 }
 0x13f   :  { %518 = vst.msk [vmem:[#allocation2 + $0x10e] sm:$0xff] %vm279_vm3, %v484_v2  ;;  %517 = vst.msk [vmem:[#allocation2 + $0x106] sm:$0xff] %vm279_vm3, %v482_v3  ;;  %645 = vrot.lane.b32.xlu1 %v3214_v4, %s2840_s28  ;;  %643 = vrot.lane.b32.xlu0 %v3216_v5, %s2840_s28 }
 0x142   :  { %v488_v6 = vpop.permute.xlu1 %487  ;;  %v486_v7 = vpop.permute.xlu0 %485 }
 0x143   :  { %520 = vst.msk [vmem:[#allocation2 + $0x136] sm:$0xff] %vm279_vm3, %v488_v6  ;;  %519 = vst.msk [vmem:[#allocation2 + $0x12e] sm:$0xff] %vm279_vm3, %v486_v7  ;;  %649 = vrot.lane.b32.xlu1 %v3224_v8, %s2840_s28  ;;  %647 = vrot.lane.b32.xlu0 %v3226_v11, %s2840_s28 }
 0x146   :  { %v3364_v33 = vpop.permute.xlu1 %560  ;;  %v3366_v34 = vpop.permute.xlu0 %558 }
 0x147   :  { %673 = vrot.lane.b32.xlu1 %v3216_v5, %s2841_s29  ;;  %651 = vrot.lane.b32.xlu0 %v3234_v12, %s2840_s28 }
 0x14b   :  { %677 = vrot.lane.b32.xlu1 %v3226_v11, %s2841_s29  ;;  %675 = vrot.lane.b32.xlu0 %v3214_v4, %s2841_s29  ;;  %v627_v11 = vmul.f32 %v3429_v59, %v3234_v12 }
 0x14f   :  { %681 = vrot.lane.b32.xlu1 %v3234_v12, %s2841_s29  ;;  %679 = vrot.lane.b32.xlu0 %v3224_v8, %s2841_s29  ;;  %v3467_v12 = vld [vmem:[%s4707_s1 + $0x4] ss:$0 sm:$0xff] }
 0x153   :  { %730 = vrot.lane.b32.xlu1 %v3248_v13, %s2840_s28  ;;  %728 = vrot.lane.b32.xlu0 %v3250_v14, %s2840_s28 }
 0x157   :  { %734 = vrot.lane.b32.xlu1 %v3256_v15, %s2840_s28  ;;  %732 = vrot.lane.b32.xlu0 %v3258_v16, %s2840_s28 }
 0x15b   :  { %758 = vrot.lane.b32.xlu1 %v3250_v14, %s2841_s29  ;;  %736 = vrot.lane.b32.xlu0 %v3264_v17, %s2840_s28 }
 0x15f   :  { %762 = vrot.lane.b32.xlu1 %v3258_v16, %s2841_s29  ;;  %760 = vrot.lane.b32.xlu0 %v3248_v13, %s2841_s29 }
 0x163   :  { %766 = vrot.lane.b32.xlu1 %v3264_v17, %s2841_s29  ;;  %764 = vrot.lane.b32.xlu0 %v3256_v15, %s2841_s29 }
 0x167   :  { %816 = vrot.lane.b32.xlu1 %v3278_v18, %s2840_s28  ;;  %814 = vrot.lane.b32.xlu0 %v3280_v19, %s2840_s28 }
 0x16b   :  { %820 = vrot.lane.b32.xlu1 %v3286_v20, %s2840_s28  ;;  %818 = vrot.lane.b32.xlu0 %v3288_v21, %s2840_s28 }
 0x16f   :  { %844 = vrot.lane.b32.xlu1 %v3280_v19, %s2841_s29  ;;  %822 = vrot.lane.b32.xlu0 %v3294_v22, %s2840_s28 }
 0x173   :  { %848 = vrot.lane.b32.xlu1 %v3288_v21, %s2841_s29  ;;  %846 = vrot.lane.b32.xlu0 %v3278_v18, %s2841_s29 }
 0x177   :  { %852 = vrot.lane.b32.xlu1 %v3294_v22, %s2841_s29  ;;  %850 = vrot.lane.b32.xlu0 %v3286_v20, %s2841_s29 }
 0x17b   :  { %901 = vrot.lane.b32.xlu1 %v3308_v23, %s2840_s28  ;;  %899 = vrot.lane.b32.xlu0 %v3310_v24, %s2840_s28 }
 0x17f   :  { %905 = vrot.lane.b32.xlu1 %v3316_v25, %s2840_s28  ;;  %903 = vrot.lane.b32.xlu0 %v3318_v26, %s2840_s28 }
 0x183   :  { %929 = vrot.lane.b32.xlu1 %v3310_v24, %s2841_s29  ;;  %907 = vrot.lane.b32.xlu0 %v3324_v27, %s2840_s28 }
 0x187   :  { %933 = vrot.lane.b32.xlu1 %v3318_v26, %s2841_s29  ;;  %931 = vrot.lane.b32.xlu0 %v3308_v23, %s2841_s29 }
 0x18b   :  { %937 = vrot.lane.b32.xlu1 %v3324_v27, %s2841_s29  ;;  %935 = vrot.lane.b32.xlu0 %v3316_v25, %s2841_s29  ;;  %v3667_v27 = vld [vmem:[#allocation2 + $0x99] sm:$0x3f] }
 0x18c   :  { %4794 = vst [vmem:[#allocation46_spill] sm:$0xff] %v3667_v27 }
 0x18f   :  { %986 = vrot.lane.b32.xlu1 %v3338_v28, %s2840_s28  ;;  %984 = vrot.lane.b32.xlu0 %v3340_v29, %s2840_s28 }
 0x193   :  { %990 = vrot.lane.b32.xlu1 %v3346_v30, %s2840_s28  ;;  %988 = vrot.lane.b32.xlu0 %v3348_v31, %s2840_s28 }
 0x197   :  { %1014 = vrot.lane.b32.xlu1 %v3340_v29, %s2841_s29  ;;  %992 = vrot.lane.b32.xlu0 %v3354_v32, %s2840_s28 }
 0x19b   :  { %1018 = vrot.lane.b32.xlu1 %v3348_v31, %s2841_s29  ;;  %1016 = vrot.lane.b32.xlu0 %v3338_v28, %s2841_s29 }
 0x19f   :  { %1022 = vrot.lane.b32.xlu1 %v3354_v32, %s2841_s29  ;;  %1020 = vrot.lane.b32.xlu0 %v3346_v30, %s2841_s29  ;;  %v3646_v30 = vld [vmem:[#allocation2 + $0x81] sm:$0xff] }
 0x1a0   :  { %4787 = vst [vmem:[#allocation39_spill] sm:$0xff] %v3646_v30 }
 0x1a1   :  { %v565_v35 = vpop.permute.xlu1 %564  ;;  %v563_v36 = vpop.permute.xlu0 %562 }
 0x1a2   :  { %v575_v44 = vmul.f32 %v3390_v41, %v563_v36  ;;  %v576_v51 = vmul.f32 %v3390_v41, %v565_v35  ;;  %v626_v36 = vmul.f32 %v3429_v59, %v3224_v8  ;;  %v3456_v8 = vld [vmem:[#allocation2 + $0x59] sm:$0xff] }
 0x1a3   :  { %1072 = vrot.lane.b32.xlu1 %v3372_v37, %s2840_s28  ;;  %1070 = vrot.lane.b32.xlu0 %v3374_v38, %s2840_s28  ;;  %4767 = vst [vmem:[#allocation19_spill] sm:$0xff] %v3456_v8 }
 0x1a4   :  { %v580_v55 = vadd.f32 %v575_v44, %v545_v49  ;;  %v581_v0 = vadd.f32 %v576_v51, %v546_v60 }
 0x1a5   :  { %v3392_v42 = vpop.permute.xlu1 %588  ;;  %v567_v43 = vpop.permute.xlu0 %566 }
 0x1a6   :  { %v577_v56 = vmul.f32 %v3390_v41, %v567_v43 }
 0x1a7   :  { %1076 = vrot.lane.b32.xlu1 %v3395_v45, %s2840_s28  ;;  %1074 = vrot.lane.b32.xlu0 %v3397_v46, %s2840_s28 }
 0x1a8   :  { %v582_v3 = vadd.f32 %v577_v56, %v547_v61  ;;  %v3472_v61 = vld [vmem:[#allocation2 + $0x69] sm:$0xff] }
 0x1a9   :  { %v593_v53 = vpop.permute.xlu1 %592  ;;  %v3419_v54 = vpop.permute.xlu0 %590  ;;  %4769 = vst [vmem:[#allocation21_spill] sm:$0xff] %v3472_v61 }
 0x1aa   :  { %v605_v57 = vmul.f32 %v3417_v52, %v593_v53 }
 0x1ab   :  { %1100 = vrot.lane.b32.xlu1 %v3374_v38, %s2841_s29  ;;  %1078 = vrot.lane.b32.xlu0 %v3423_v58, %s2840_s28 }
 0x1ac   :  { %v610_v63 = vadd.f32 %v605_v57, %v580_v55  ;;  %v3458_v55 = vld [vmem:[#allocation2 + $0x51] sm:$0xff] }
 0x1ad   :  { %v597_v1 = vpop.permute.xlu1 %596  ;;  %v595_v2 = vpop.permute.xlu0 %594  ;;  %4768 = vst [vmem:[#allocation20_spill] sm:$0xff] %v3458_v55 }
 0x1ae   :  { %v630_v6 = vadd.f32 %v625_v62, %v610_v63  ;;  %v607_v7 = vmul.f32 %v3417_v52, %v597_v1  ;;  %v606_v35 = vmul.f32 %v3417_v52, %v595_v2  ;;  %v3474_v62 = vld [vmem:[#allocation2 + $0x61] sm:$0xff] }
 0x1af   :  { %1104 = vrot.lane.b32.xlu1 %v3397_v46, %s2841_s29  ;;  %1102 = vrot.lane.b32.xlu0 %v3372_v37, %s2841_s29  ;;  %4770 = vst [vmem:[#allocation22_spill] sm:$0xff] %v3474_v62  ;;  %v3620_v46 = vld [vmem:[#allocation2 + $0x98] sm:$0x3f] }
 0x1b0   :  { %v612_v40 = vadd.f32 %v607_v7, %v582_v3  ;;  %v611_v43 = vadd.f32 %v606_v35, %v581_v0  ;;  %v3484_v0 = vld [vmem:[%s4707_s1 + $0x5] ss:$0 sm:$0xff]  ;;  %4783 = vst [vmem:[#allocation35_spill] sm:$0xff] %v3620_v46 }
 0x1b1   :  { %v3448_v44 = vpop.permute.xlu1 %645  ;;  %v3450_v48 = vpop.permute.xlu0 %643 }
 0x1b2   :  { %v632_v49 = vadd.f32 %v627_v11, %v612_v40  ;;  %v631_v50 = vadd.f32 %v626_v36, %v611_v43  ;;  %v3490_v36 = vld [vmem:[#allocation2 + $0x71] sm:$0x3f]  ;;  %v3495_v11 = vld [vmem:[%s4707_s1 + $0x6] ss:$0 sm:$0xff] }
 0x1b3   :  { %1108 = vrot.lane.b32.xlu1 %v3423_v58, %s2841_s29  ;;  %1106 = vrot.lane.b32.xlu0 %v3395_v45, %s2841_s29  ;;  %4771 = vst [vmem:[#allocation23_spill] sm:$0xff] %v3490_v36 }
 0x1b5   :  { %v650_v51 = vpop.permute.xlu1 %649  ;;  %v648_v53 = vpop.permute.xlu0 %647 }
 0x1b6   :  { %v660_v60 = vmul.f32 %v3467_v12, %v648_v53  ;;  %v661_v63 = vmul.f32 %v3467_v12, %v650_v51 }
 0x1b7   :  { %1157 = vrot.lane.b32.xlu1 %v3456_v8, %s2840_s28  ;;  %1155 = vrot.lane.b32.xlu0 %v3458_v55, %s2840_s28 }
 0x1b8   :  { %v665_v3 = vadd.f32 %v660_v60, %v630_v6  ;;  %v710_v6 = vmul.f32 %v3495_v11, %v3258_v16  ;;  %v666_v43 = vadd.f32 %v661_v63, %v631_v50  ;;  %v712_v16 = vmul.f32 %v3495_v11, %v3264_v17  ;;  %v3527_v17 = vld [vmem:[#allocation2 + $0x5a] sm:$0xff] }
 0x1b9   :  { %v3469_v56 = vpop.permute.xlu1 %673  ;;  %v652_v57 = vpop.permute.xlu0 %651  ;;  %4772 = vst [vmem:[#allocation24_spill] sm:$0xff] %v3527_v17 }
 0x1ba   :  { %v662_v7 = vmul.f32 %v3467_v12, %v652_v57 }
 0x1bb   :  { %1161 = vrot.lane.b32.xlu1 %v3472_v61, %s2840_s28  ;;  %1159 = vrot.lane.b32.xlu0 %v3474_v62, %s2840_s28 }
 0x1bc   :  { %v667_v57 = vadd.f32 %v662_v7, %v632_v49 }
 0x1bd   :  { %v678_v1 = vpop.permute.xlu1 %677  ;;  %v3486_v2 = vpop.permute.xlu0 %675 }
 0x1be   :  { %v690_v35 = vmul.f32 %v3484_v0, %v678_v1 }
 0x1bf   :  { %1185 = vrot.lane.b32.xlu1 %v3458_v55, %s2841_s29  ;;  %1163 = vrot.lane.b32.xlu0 %v3490_v36, %s2840_s28  ;;  %v711_v55 = vmul.f32 %v3495_v11, %v3256_v15 }
 0x1c0   :  { %v695_v40 = vadd.f32 %v690_v35, %v665_v3 }
 0x1c1   :  { %v682_v51 = vpop.permute.xlu1 %681  ;;  %v680_v53 = vpop.permute.xlu0 %679 }
 0x1c2   :  { %v715_v60 = vadd.f32 %v710_v6, %v695_v40  ;;  %v692_v1 = vmul.f32 %v3484_v0, %v682_v51  ;;  %v691_v38 = vmul.f32 %v3484_v0, %v680_v53  ;;  %v3545_v53 = vld [vmem:[#allocation2 + $0x6a] sm:$0xff] }
 0x1c3   :  { %1189 = vrot.lane.b32.xlu1 %v3474_v62, %s2841_s29  ;;  %1187 = vrot.lane.b32.xlu0 %v3456_v8, %s2841_s29  ;;  %4774 = vst [vmem:[#allocation26_spill] sm:$0xff] %v3545_v53  ;;  %v3566_v8 = vld [vmem:[%s4707_s1 + $0x9] ss:$0 sm:$0xff] }
 0x1c4   :  { %v697_v50 = vadd.f32 %v692_v1, %v667_v57  ;;  %v696_v63 = vadd.f32 %v691_v38, %v666_v43  ;;  %v3529_v38 = vld [vmem:[#allocation2 + $0x52] sm:$0xff]  ;;  %v3547_v57 = vld [vmem:[#allocation2 + $0x62] sm:$0xff]  ;;  %v796_v62 = vmul.f32 %v3566_v8, %v3288_v21 }
 0x1c5   :  { %v3513_v49 = vpop.permute.xlu1 %730  ;;  %v3515_v3 = vpop.permute.xlu0 %728  ;;  %4773 = vst [vmem:[#allocation25_spill] sm:$0xff] %v3529_v38  ;;  %4775 = vst [vmem:[#allocation27_spill] sm:$0xff] %v3547_v57  ;;  %v3556_v1 = vld [vmem:[%s4707_s1 + $0x8] ss:$0 sm:$0xff] }
 0x1c6   :  { %v3517_v7 = vadd.f32 %v712_v16, %v697_v50  ;;  %v3519_v35 = vadd.f32 %v711_v55, %v696_v63  ;;  %v3538_v55 = vld [vmem:[%s4707_s1 + $0x7] ss:$0 sm:$0xff] }
 0x1c7   :  { %1193 = vrot.lane.b32.xlu1 %v3490_v36, %s2841_s29  ;;  %1191 = vrot.lane.b32.xlu0 %v3472_v61, %s2841_s29  ;;  %v3561_v36 = vld [vmem:[#allocation2 + $0x72] sm:$0x3f] }
 0x1c8   :  { %4776 = vst [vmem:[#allocation28_spill] sm:$0xff] %v3561_v36 }
 0x1c9   :  { %v3525_v15 = vpop.permute.xlu1 %734  ;;  %v733_v6 = vpop.permute.xlu0 %732 }
 0x1ca   :  { %v745_v51 = vmul.f32 %v3538_v55, %v733_v6 }
 0x1cb   :  { %1242 = vrot.lane.b32.xlu1 %v3527_v17, %s2840_s28  ;;  %1240 = vrot.lane.b32.xlu0 %v3529_v38, %s2840_s28 }
 0x1cc   :  { %v750_v63 = vadd.f32 %v745_v51, %v715_v60 }
 0x1cd   :  { %v3540_v40 = vpop.permute.xlu1 %758  ;;  %v3542_v43 = vpop.permute.xlu0 %736 }
 0x1cf   :  { %1246 = vrot.lane.b32.xlu1 %v3545_v53, %s2840_s28  ;;  %1244 = vrot.lane.b32.xlu0 %v3547_v57, %s2840_s28 }
 0x1d1   :  { %v763_v16 = vpop.permute.xlu1 %762  ;;  %v3558_v50 = vpop.permute.xlu0 %760 }
 0x1d2   :  { %v775_v6 = vmul.f32 %v3556_v1, %v763_v16 }
 0x1d3   :  { %1270 = vrot.lane.b32.xlu1 %v3529_v38, %s2841_s29  ;;  %1248 = vrot.lane.b32.xlu0 %v3561_v36, %s2840_s28 }
 0x1d4   :  { %v780_v61 = vadd.f32 %v775_v6, %v750_v63  ;;  %v3598_v63 = vld [vmem:[#allocation2 + $0x78] sm:$0xff] }
 0x1d5   :  { %v3574_v60 = vpop.permute.xlu1 %766  ;;  %v3576_v51 = vpop.permute.xlu0 %764  ;;  %4778 = vst [vmem:[#allocation30_spill] sm:$0xff] %v3598_v63 }
 0x1d6   :  { %v3578_v16 = vadd.f32 %v796_v62, %v780_v61  ;;  %v3596_v62 = vld [vmem:[#allocation2 + $0x80] sm:$0xff] }
 0x1d7   :  { %1274 = vrot.lane.b32.xlu1 %v3547_v57, %s2841_s29  ;;  %1272 = vrot.lane.b32.xlu0 %v3527_v17, %s2841_s29  ;;  %4777 = vst [vmem:[#allocation29_spill] sm:$0xff] %v3596_v62  ;;  %v3608_v17 = vld [vmem:[#allocation2 + $0x90] sm:$0xff]  ;;  %v3610_v57 = vld [vmem:[#allocation2 + $0x88] sm:$0xff] }
 0x1d8   :  { %4780 = vst [vmem:[#allocation32_spill] sm:$0xff] %v3608_v17  ;;  %4781 = vst [vmem:[#allocation33_spill] sm:$0xff] %v3610_v57 }
 0x1d9   :  { %v3584_v38 = vpop.permute.xlu1 %816  ;;  %v3586_v58 = vpop.permute.xlu0 %814 }
 0x1db   :  { %1278 = vrot.lane.b32.xlu1 %v3561_v36, %s2841_s29  ;;  %1276 = vrot.lane.b32.xlu0 %v3545_v53, %s2841_s29 }
 0x1dd   :  { %v3592_v21 = vpop.permute.xlu1 %820  ;;  %v3594_v61 = vpop.permute.xlu0 %818 }
 0x1df   :  { %1328 = vrot.lane.b32.xlu1 %v3596_v62, %s2840_s28  ;;  %1326 = vrot.lane.b32.xlu0 %v3598_v63, %s2840_s28 }
 0x1e1   :  { %v3604_v6 = vpop.permute.xlu1 %844  ;;  %v3606_v36 = vpop.permute.xlu0 %822 }
 0x1e2   :  { %4779 = vst [vmem:[#allocation31_spill] sm:$0xff] %v3604_v6 }
 0x1e3   :  { %1332 = vrot.lane.b32.xlu1 %v3608_v17, %s2840_s28  ;;  %1330 = vrot.lane.b32.xlu0 %v3610_v57, %s2840_s28 }
 0x1e5   :  { %v3616_v53 = vpop.permute.xlu1 %848  ;;  %v3618_v37 = vpop.permute.xlu0 %846 }
 0x1e6   :  { %4782 = vst [vmem:[#allocation34_spill] sm:$0xff] %v3618_v37 }
 0x1e7   :  { %1356 = vrot.lane.b32.xlu1 %v3598_v63, %s2841_s29  ;;  %1334 = vrot.lane.b32.xlu0 %v3620_v46, %s2840_s28 }
 0x1e9   :  { %v3626_v45 = vpop.permute.xlu1 %852  ;;  %v3628_v29 = vpop.permute.xlu0 %850 }
 0x1eb   :  { %1360 = vrot.lane.b32.xlu1 %v3610_v57, %s2841_s29  ;;  %1358 = vrot.lane.b32.xlu0 %v3596_v62, %s2841_s29  ;;  %v1382_v57 = vld [vmem:[#allocation2 + $0x79] sm:$0xff] }
 0x1ed   :  { %v3634_v32 = vpop.permute.xlu1 %901  ;;  %v3636_v28 = vpop.permute.xlu0 %899 }
 0x1ee   :  { %4784 = vst [vmem:[#allocation36_spill] sm:$0xff] %v3634_v32  ;;  %4785 = vst [vmem:[#allocation37_spill] sm:$0xff] %v3636_v28  ;;  %v3657_v28 = vld [vmem:[#allocation2 + $0x89] sm:$0xff] }
 0x1ef   :  { %1364 = vrot.lane.b32.xlu1 %v3620_v46, %s2841_s29  ;;  %1362 = vrot.lane.b32.xlu0 %v3608_v17, %s2841_s29  ;;  %v3655_v46 = vld [vmem:[#allocation2 + $0x91] sm:$0xff]  ;;  %4791 = vst [vmem:[#allocation43_spill] sm:$0xff] %v3657_v28 }
 0x1f0   :  { %4790 = vst [vmem:[#allocation42_spill] sm:$0xff] %v3655_v46 }
 0x1f1   :  { %v3642_v63 = vpop.permute.xlu1 %905  ;;  %v3644_v31 = vpop.permute.xlu0 %903 }
 0x1f2   :  { %4786 = vst [vmem:[#allocation38_spill] sm:$0xff] %v3642_v63 }
 0x1f3   :  { %1413 = vrot.lane.b32.xlu1 %v3646_v30, %s2840_s28  ;;  %1411 = vrot.lane.b32.xlu0 %v1382_v57, %s2840_s28 }
 0x1f5   :  { %v3651_v62 = vpop.permute.xlu1 %929  ;;  %v3653_v32 = vpop.permute.xlu0 %907 }
 0x1f6   :  { %4788 = vst [vmem:[#allocation40_spill] sm:$0xff] %v3651_v62  ;;  %4789 = vst [vmem:[#allocation41_spill] sm:$0xff] %v3653_v32 }
 0x1f7   :  { %1417 = vrot.lane.b32.xlu1 %v3655_v46, %s2840_s28  ;;  %1415 = vrot.lane.b32.xlu0 %v3657_v28, %s2840_s28 }
 0x1f9   :  { %v3663_v17 = vpop.permute.xlu1 %933  ;;  %v3665_v24 = vpop.permute.xlu0 %931 }
 0x1fa   :  { %4792 = vst [vmem:[#allocation44_spill] sm:$0xff] %v3663_v17  ;;  %4793 = vst [vmem:[#allocation45_spill] sm:$0xff] %v3665_v24  ;;  %v1467_v17 = vld [vmem:[#allocation2 + $0x7a] sm:$0xff] }
 0x1fb   :  { %1441 = vrot.lane.b32.xlu1 %v1382_v57, %s2841_s29  ;;  %1419 = vrot.lane.b32.xlu0 %v3667_v27, %s2840_s28 }
 0x1fd   :  { %v3672_v62 = vpop.permute.xlu1 %937  ;;  %v3674_v32 = vpop.permute.xlu0 %935 }
 0x1fe   :  { %4795 = vst [vmem:[#allocation47_spill] sm:$0xff] %v3672_v62  ;;  %4796 = vst [vmem:[#allocation48_spill] sm:$0xff] %v3674_v32  ;;  %v1468_v32 = vld [vmem:[#allocation2 + $0x82] sm:$0xff] }
 0x1ff   :  { %1445 = vrot.lane.b32.xlu1 %v3657_v28, %s2841_s29  ;;  %1443 = vrot.lane.b32.xlu0 %v3646_v30, %s2841_s29 }
 0x201   :  { %v3680_v23 = vpop.permute.xlu1 %986  ;;  %v3682_v24 = vpop.permute.xlu0 %984 }
 0x202   :  { %4797 = vst [vmem:[#allocation49_spill] sm:$0xff] %v3680_v23  ;;  %4798 = vst [vmem:[#allocation50_spill] sm:$0xff] %v3682_v24  ;;  %v3698_v23 = vld [vmem:[#allocation2 + $0x92] sm:$0xff] }
 0x203   :  { %1449 = vrot.lane.b32.xlu1 %v3667_v27, %s2841_s29  ;;  %1447 = vrot.lane.b32.xlu0 %v3655_v46, %s2841_s29  ;;  %4803 = vst [vmem:[#allocation55_spill] sm:$0xff] %v3698_v23  ;;  %v3700_v27 = vld [vmem:[#allocation2 + $0x8a] sm:$0xff] }
 0x204   :  { %4804 = vst [vmem:[#allocation56_spill] sm:$0xff] %v3700_v27 }
 0x205   :  { %v3688_v57 = vpop.permute.xlu1 %990  ;;  %v3690_v62 = vpop.permute.xlu0 %988 }
 0x206   :  { %4799 = vst [vmem:[#allocation51_spill] sm:$0xff] %v3688_v57  ;;  %4800 = vst [vmem:[#allocation52_spill] sm:$0xff] %v3690_v62  ;;  %v1471_v57 = vld [vmem:[#allocation2 + $0x9a] sm:$0x3f] }
 0x207   :  { %1498 = vrot.lane.b32.xlu1 %v1468_v32, %s2840_s28  ;;  %1496 = vrot.lane.b32.xlu0 %v1467_v17, %s2840_s28 }
 0x209   :  { %v3694_v30 = vpop.permute.xlu1 %1014  ;;  %v3696_v28 = vpop.permute.xlu0 %992 }
 0x20a   :  { %4801 = vst [vmem:[#allocation53_spill] sm:$0xff] %v3694_v30  ;;  %4802 = vst [vmem:[#allocation54_spill] sm:$0xff] %v3696_v28 }
 0x20b   :  { %1502 = vrot.lane.b32.xlu1 %v3698_v23, %s2840_s28  ;;  %1500 = vrot.lane.b32.xlu0 %v3700_v27, %s2840_s28 }
 0x20d   :  { %v3706_v46 = vpop.permute.xlu1 %1018  ;;  %v3708_v24 = vpop.permute.xlu0 %1016 }
 0x20e   :  { %4805 = vst [vmem:[#allocation57_spill] sm:$0xff] %v3706_v46  ;;  %4806 = vst [vmem:[#allocation58_spill] sm:$0xff] %v3708_v24 }
 0x20f   :  { %1526 = vrot.lane.b32.xlu1 %v1467_v17, %s2841_s29  ;;  %1504 = vrot.lane.b32.xlu0 %v1471_v57, %s2840_s28 }
 0x211   :  { %v3712_v30 = vpop.permute.xlu1 %1022  ;;  %v3714_v28 = vpop.permute.xlu0 %1020 }
 0x212   :  { %4807 = vst [vmem:[#allocation59_spill] sm:$0xff] %v3712_v30  ;;  %4808 = vst [vmem:[#allocation60_spill] sm:$0xff] %v3714_v28  ;;  %v1554_v30 = vld [vmem:[#allocation2 + $0xa8] sm:$0xff]  ;;  %v1553_v28 = vld [vmem:[#allocation2 + $0xa0] sm:$0xff] }
 0x213   :  { %1530 = vrot.lane.b32.xlu1 %v3700_v27, %s2841_s29  ;;  %1528 = vrot.lane.b32.xlu0 %v1468_v32, %s2841_s29 }
 0x215   :  { %v3719_v62 = vpop.permute.xlu1 %1072  ;;  %v3721_v37 = vpop.permute.xlu0 %1070 }
 0x216   :  { %4809 = vst [vmem:[#allocation61_spill] sm:$0xff] %v3719_v62  ;;  %4810 = vst [vmem:[#allocation62_spill] sm:$0xff] %v3721_v37  ;;  %v3736_v62 = vld [vmem:[#allocation2 + $0xb8] sm:$0xff] }
 0x217   :  { %1534 = vrot.lane.b32.xlu1 %v1471_v57, %s2841_s29  ;;  %1532 = vrot.lane.b32.xlu0 %v3698_v23, %s2841_s29  ;;  %4815 = vst [vmem:[#allocation67_spill] sm:$0xff] %v3736_v62  ;;  %v1555_v57 = vld [vmem:[#allocation2 + $0xb0] sm:$0xff] }
 0x219   :  { %v3726_v17 = vpop.permute.xlu1 %1076  ;;  %v3728_v24 = vpop.permute.xlu0 %1074 }
 0x21a   :  { %4811 = vst [vmem:[#allocation63_spill] sm:$0xff] %v3726_v17  ;;  %4812 = vst [vmem:[#allocation64_spill] sm:$0xff] %v3728_v24  ;;  %v1557_v17 = vld [vmem:[#allocation2 + $0xc0] sm:$0x3f] }
 0x21b   :  { %1584 = vrot.lane.b32.xlu1 %v1554_v30, %s2840_s28  ;;  %1582 = vrot.lane.b32.xlu0 %v1553_v28, %s2840_s28 }
 0x21d   :  { %v3732_v32 = vpop.permute.xlu1 %1100  ;;  %v3734_v27 = vpop.permute.xlu0 %1078 }
 0x21e   :  { %4813 = vst [vmem:[#allocation65_spill] sm:$0xff] %v3732_v32  ;;  %4814 = vst [vmem:[#allocation66_spill] sm:$0xff] %v3734_v27 }
 0x21f   :  { %1588 = vrot.lane.b32.xlu1 %v3736_v62, %s2840_s28  ;;  %1586 = vrot.lane.b32.xlu0 %v1555_v57, %s2840_s28 }
 0x221   :  { %v3741_v23 = vpop.permute.xlu1 %1104  ;;  %v3743_v37 = vpop.permute.xlu0 %1102 }
 0x222   :  { %4816 = vst [vmem:[#allocation68_spill] sm:$0xff] %v3741_v23  ;;  %4817 = vst [vmem:[#allocation69_spill] sm:$0xff] %v3743_v37  ;;  %v1638_v23 = vld [vmem:[#allocation2 + $0xa1] sm:$0xff] }
 0x223   :  { %1612 = vrot.lane.b32.xlu1 %v1553_v28, %s2841_s29  ;;  %1590 = vrot.lane.b32.xlu0 %v1557_v17, %s2840_s28 }
 0x225   :  { %v3747_v32 = vpop.permute.xlu1 %1108  ;;  %v3749_v27 = vpop.permute.xlu0 %1106 }
 0x226   :  { %4818 = vst [vmem:[#allocation70_spill] sm:$0xff] %v3747_v32  ;;  %4819 = vst [vmem:[#allocation71_spill] sm:$0xff] %v3749_v27  ;;  %v1639_v32 = vld [vmem:[#allocation2 + $0xa9] sm:$0xff] }
 0x227   :  { %1616 = vrot.lane.b32.xlu1 %v1555_v57, %s2841_s29  ;;  %1614 = vrot.lane.b32.xlu0 %v1554_v30, %s2841_s29 }
 0x229   :  { %v3753_v24 = vpop.permute.xlu1 %1157  ;;  %v3755_v46 = vpop.permute.xlu0 %1155 }
 0x22a   :  { %4820 = vst [vmem:[#allocation72_spill] sm:$0xff] %v3753_v24  ;;  %4821 = vst [vmem:[#allocation73_spill] sm:$0xff] %v3755_v46  ;;  %v1641_v24 = vld [vmem:[#allocation2 + $0xb9] sm:$0xff]  ;;  %v1640_v46 = vld [vmem:[#allocation2 + $0xb1] sm:$0xff] }
 0x22b   :  { %1620 = vrot.lane.b32.xlu1 %v1557_v17, %s2841_s29  ;;  %1618 = vrot.lane.b32.xlu0 %v3736_v62, %s2841_s29 }
 0x22d   :  { %v3760_v28 = vpop.permute.xlu1 %1161  ;;  %v3762_v37 = vpop.permute.xlu0 %1159 }
 0x22e   :  { %4822 = vst [vmem:[#allocation74_spill] sm:$0xff] %v3760_v28  ;;  %4823 = vst [vmem:[#allocation75_spill] sm:$0xff] %v3762_v37  ;;  %v1642_v28 = vld [vmem:[#allocation2 + $0xc1] sm:$0x3f] }
 0x22f   :  { %1669 = vrot.lane.b32.xlu1 %v1639_v32, %s2840_s28  ;;  %1667 = vrot.lane.b32.xlu0 %v1638_v23, %s2840_s28 }
 0x231   :  { %v3766_v30 = vpop.permute.xlu1 %1185  ;;  %v3768_v57 = vpop.permute.xlu0 %1163 }
 0x232   :  { %4824 = vst [vmem:[#allocation76_spill] sm:$0xff] %v3766_v30  ;;  %4825 = vst [vmem:[#allocation77_spill] sm:$0xff] %v3768_v57 }
 0x233   :  { %1673 = vrot.lane.b32.xlu1 %v1641_v24, %s2840_s28  ;;  %1671 = vrot.lane.b32.xlu0 %v1640_v46, %s2840_s28 }
 0x235   :  { %v3772_v17 = vpop.permute.xlu1 %1189  ;;  %v3774_v62 = vpop.permute.xlu0 %1187 }
 0x236   :  { %4826 = vst [vmem:[#allocation78_spill] sm:$0xff] %v3772_v17  ;;  %4827 = vst [vmem:[#allocation79_spill] sm:$0xff] %v3774_v62  ;;  %v1724_v17 = vld [vmem:[#allocation2 + $0xaa] sm:$0xff] }
 0x237   :  { %1697 = vrot.lane.b32.xlu1 %v1638_v23, %s2841_s29  ;;  %1675 = vrot.lane.b32.xlu0 %v1642_v28, %s2840_s28 }
 0x239   :  { %v3778_v37 = vpop.permute.xlu1 %1193  ;;  %v3780_v30 = vpop.permute.xlu0 %1191 }
 0x23a   :  { %4828 = vst [vmem:[#allocation80_spill] sm:$0xff] %v3778_v37  ;;  %4829 = vst [vmem:[#allocation81_spill] sm:$0xff] %v3780_v30  ;;  %v1723_v37 = vld [vmem:[#allocation2 + $0xa2] sm:$0xff] }
 0x23b   :  { %1701 = vrot.lane.b32.xlu1 %v1640_v46, %s2841_s29  ;;  %1699 = vrot.lane.b32.xlu0 %v1639_v32, %s2841_s29 }
 0x23d   :  { %v3784_v57 = vpop.permute.xlu1 %1242  ;;  %v3786_v27 = vpop.permute.xlu0 %1240 }
 0x23e   :  { %4830 = vst [vmem:[#allocation82_spill] sm:$0xff] %v3784_v57  ;;  %4831 = vst [vmem:[#allocation83_spill] sm:$0xff] %v3786_v27  ;;  %v1726_v57 = vld [vmem:[#allocation2 + $0xba] sm:$0xff]  ;;  %v1725_v27 = vld [vmem:[#allocation2 + $0xb2] sm:$0xff] }
 0x23f   :  { %1705 = vrot.lane.b32.xlu1 %v1642_v28, %s2841_s29  ;;  %1703 = vrot.lane.b32.xlu0 %v1641_v24, %s2841_s29 }
 0x241   :  { %v3790_v62 = vpop.permute.xlu1 %1246  ;;  %v3792_v23 = vpop.permute.xlu0 %1244 }
 0x242   :  { %4832 = vst [vmem:[#allocation84_spill] sm:$0xff] %v3790_v62  ;;  %4833 = vst [vmem:[#allocation85_spill] sm:$0xff] %v3792_v23  ;;  %v1727_v62 = vld [vmem:[#allocation2 + $0xc2] sm:$0x3f] }
 0x243   :  { %1754 = vrot.lane.b32.xlu1 %v1724_v17, %s2840_s28  ;;  %1752 = vrot.lane.b32.xlu0 %v1723_v37, %s2840_s28 }
 0x245   :  { %v3796_v46 = vpop.permute.xlu1 %1270  ;;  %v3798_v32 = vpop.permute.xlu0 %1248 }
 0x246   :  { %4834 = vst [vmem:[#allocation86_spill] sm:$0xff] %v3796_v46  ;;  %4835 = vst [vmem:[#allocation87_spill] sm:$0xff] %v3798_v32 }
 0x247   :  { %1758 = vrot.lane.b32.xlu1 %v1726_v57, %s2840_s28  ;;  %1756 = vrot.lane.b32.xlu0 %v1725_v27, %s2840_s28 }
 0x249   :  { %v3802_v24 = vpop.permute.xlu1 %1274  ;;  %v3804_v28 = vpop.permute.xlu0 %1272 }
 0x24a   :  { %4836 = vst [vmem:[#allocation88_spill] sm:$0xff] %v3802_v24  ;;  %4837 = vst [vmem:[#allocation89_spill] sm:$0xff] %v3804_v28  ;;  %v1810_v24 = vld [vmem:[#allocation2 + $0xd0] sm:$0xff] }
 0x24b   :  { %1782 = vrot.lane.b32.xlu1 %v1723_v37, %s2841_s29  ;;  %1760 = vrot.lane.b32.xlu0 %v1727_v62, %s2840_s28 }
 0x24d   :  { %v3808_v23 = vpop.permute.xlu1 %1278  ;;  %v3810_v46 = vpop.permute.xlu0 %1276 }
 0x24e   :  { %4838 = vst [vmem:[#allocation90_spill] sm:$0xff] %v3808_v23  ;;  %4839 = vst [vmem:[#allocation91_spill] sm:$0xff] %v3810_v46  ;;  %v1809_v23 = vld [vmem:[#allocation2 + $0xc8] sm:$0xff] }
 0x24f   :  { %1786 = vrot.lane.b32.xlu1 %v1725_v27, %s2841_s29  ;;  %1784 = vrot.lane.b32.xlu0 %v1724_v17, %s2841_s29  ;;  %v538_v27 = vmul.f32 %v3379_v39, %v3134_v10  ;;  %v539_v17 = vmul.f32 %v3379_v39, %v3132_v9  ;;  %v603_v9 = vmul.f32 %v3417_v52, %v3392_v42 }
 0x251   :  { %v3814_v32 = vpop.permute.xlu1 %1328  ;;  %v3816_v30 = vpop.permute.xlu0 %1326  ;;  %v543_v10 = vadd.f32 %v3402_v47, %v538_v27  ;;  %v544_v39 = vadd.f32 %v3402_v47, %v539_v17  ;;  %v623_v47 = vmul.f32 %v3429_v59, %v3216_v5  ;;  %v746_v5 = vmul.f32 %v3538_v55, %v3525_v15 }
 0x252   :  { %4840 = vst [vmem:[#allocation92_spill] sm:$0xff] %v3814_v32  ;;  %4841 = vst [vmem:[#allocation93_spill] sm:$0xff] %v3816_v30  ;;  %v1812_v30 = vld [vmem:[#allocation2 + $0xe0] sm:$0xff] }
 0x253   :  { %1790 = vrot.lane.b32.xlu1 %v1727_v62, %s2841_s29  ;;  %1788 = vrot.lane.b32.xlu0 %v1726_v57, %s2841_s29  ;;  %v573_v57 = vmul.f32 %v3390_v41, %v3366_v34  ;;  %v751_v15 = vadd.f32 %v746_v5, %v3519_v35  ;;  %v777_v35 = vmul.f32 %v3556_v1, %v3574_v60 }
 0x254   :  { %v773_v60 = vmul.f32 %v3556_v1, %v3540_v40 }
 0x255   :  { %v3820_v28 = vpop.permute.xlu1 %1332  ;;  %v3822_v37 = vpop.permute.xlu0 %1330  ;;  %v578_v46 = vadd.f32 %v573_v57, %v543_v10  ;;  %v1894_v10 = vld [vmem:[#allocation2 + $0xc9] sm:$0xff] }
 0x256   :  { %4842 = vst [vmem:[#allocation94_spill] sm:$0xff] %v3820_v28  ;;  %4843 = vst [vmem:[#allocation95_spill] sm:$0xff] %v3822_v37  ;;  %v1811_v28 = vld [vmem:[#allocation2 + $0xd8] sm:$0xff]  ;;  %v574_v37 = vmul.f32 %v3390_v41, %v3364_v33  ;;  %v1813_v33 = vld [vmem:[#allocation2 + $0xe8] sm:$0x3f] }
 0x257   :  { %1840 = vrot.lane.b32.xlu1 %v1810_v24, %s2840_s28  ;;  %1838 = vrot.lane.b32.xlu0 %v1809_v23, %s2840_s28  ;;  %v608_v27 = vadd.f32 %v603_v9, %v578_v46  ;;  %v797_v9 = vmul.f32 %v3566_v8, %v3286_v20  ;;  %v2679_v20 = vld [vmem:[%s4707_s1 + $0xb] ss:$0 sm:$0xff] }
 0x258   :  { %v579_v41 = vadd.f32 %v574_v37, %v544_v39 }
 0x259   :  { %v3830_v32 = vpop.permute.xlu1 %1356  ;;  %v3832_v62 = vpop.permute.xlu0 %1334  ;;  %v628_v46 = vadd.f32 %v623_v47, %v608_v27 }
 0x25a   :  { %4844 = vst [vmem:[#allocation96_spill] sm:$0xff] %v3830_v32  ;;  %4845 = vst [vmem:[#allocation97_spill] sm:$0xff] %v3832_v62  ;;  %v604_v32 = vmul.f32 %v3417_v52, %v3419_v54  ;;  %v658_v52 = vmul.f32 %v3467_v12, %v3450_v48  ;;  %v624_v54 = vmul.f32 %v3429_v59, %v3214_v4 }
 0x25b   :  { %1844 = vrot.lane.b32.xlu1 %v1812_v30, %s2840_s28  ;;  %1842 = vrot.lane.b32.xlu0 %v1811_v28, %s2840_s28  ;;  %v689_v48 = vmul.f32 %v3484_v0, %v3486_v2 }
 0x25c   :  { %v609_v63 = vadd.f32 %v604_v32, %v579_v41  ;;  %v688_v32 = vmul.f32 %v3484_v0, %v3469_v56  ;;  %v663_v59 = vadd.f32 %v658_v52, %v628_v46  ;;  %v709_v0 = vmul.f32 %v3495_v11, %v3248_v13  ;;  %v3898_v13 = vld [vmem:[#allocation2 + $0xd1] sm:$0xff] }
 0x25d   :  { %v3846_v34 = vpop.permute.xlu1 %1360  ;;  %v3848_v62 = vpop.permute.xlu0 %1358 }
 0x25e   :  { %v629_v37 = vadd.f32 %v624_v54, %v609_v63  ;;  %v693_v56 = vadd.f32 %v688_v32, %v663_v59  ;;  %v747_v63 = vmul.f32 %v3538_v55, %v3542_v43  ;;  %v2678_v43 = vld [vmem:[%s4707_s1 + $0xa] ss:$0 sm:$0xff]  ;;  %v1896_v54 = vld [vmem:[#allocation2 + $0xd9] sm:$0xff] }
 0x25f   :  { %1868 = vrot.lane.b32.xlu1 %v1809_v23, %s2841_s29  ;;  %1846 = vrot.lane.b32.xlu0 %v1813_v33, %s2840_s28  ;;  %v659_v23 = vmul.f32 %v3467_v12, %v3448_v44  ;;  %v776_v44 = vmul.f32 %v3556_v1, %v3576_v51  ;;  %v708_v51 = vmul.f32 %v3495_v11, %v3250_v14 }
 0x260   :  { %v744_v14 = vmul.f32 %v3538_v55, %v3513_v49  ;;  %v831_v11 = vmul.f32 %v2678_v43, %v3594_v61  ;;  %v752_v39 = vadd.f32 %v747_v63, %v3517_v7  ;;  %v861_v61 = vmul.f32 %v2679_v20, %v3616_v53  ;;  %v1898_v63 = vld [vmem:[#allocation2 + $0xe9] sm:$0x3f] }
 0x261   :  { %v3852_v6 = vpop.permute.xlu1 %1364  ;;  %v3854_v42 = vpop.permute.xlu0 %1362  ;;  %v664_v12 = vadd.f32 %v659_v23, %v629_v37  ;;  %v781_v57 = vadd.f32 %v776_v44, %v751_v15  ;;  %v862_v7 = vmul.f32 %v2679_v20, %v3628_v29  ;;  %v795_v23 = vmul.f32 %v3566_v8, %v3278_v18  ;;  %v2680_v29 = vld [vmem:[%s4707_s1 + $0xc] ss:$0 sm:$0xff] }
 0x262   :  { %v782_v40 = vadd.f32 %v777_v35, %v752_v39  ;;  %v798_v53 = vmul.f32 %v3566_v8, %v3294_v22  ;;  %v833_v5 = vmul.f32 %v2678_v43, %v3606_v36  ;;  %v794_v18 = vmul.f32 %v3566_v8, %v3280_v19  ;;  %v2681_v36 = vld [vmem:[%s4707_s1 + $0xd] ss:$0 sm:$0xff]  ;;  %v2682_v35 = vld [vmem:[%s4707_s1 + $0xe] ss:$0 sm:$0xff]  ;;  %v4850_v39 = vld [vmem:[#allocation48_spill] sm:$0xff] }
 0x263   :  { %1872 = vrot.lane.b32.xlu1 %v1811_v28, %s2841_s29  ;;  %1870 = vrot.lane.b32.xlu0 %v1810_v24, %s2841_s29  ;;  %v694_v2 = vadd.f32 %v689_v48, %v664_v12  ;;  %v802_v52 = vadd.f32 %v797_v9, %v781_v57  ;;  %v829_v12 = vmul.f32 %v2678_v43, %v3586_v58  ;;  %v4846_v58 = vld [vmem:[#allocation31_spill] sm:$0xff]  ;;  %v4848_v9 = vld [vmem:[#allocation34_spill] sm:$0xff] }
 0x264   :  { %v803_v22 = vadd.f32 %v798_v53, %v782_v40  ;;  %v881_v19 = vmul.f32 %v2680_v29, %v3318_v26  ;;  %v916_v8 = vmul.f32 %v2681_v36, %v3644_v31  ;;  %v4854_v53 = vld [vmem:[#allocation7_spill] sm:$0xff] }
 0x265   :  { %v3872_v17 = vpop.permute.xlu1 %1413  ;;  %v3874_v4 = vpop.permute.xlu0 %1411  ;;  %v714_v49 = vadd.f32 %v709_v0, %v694_v2  ;;  %v859_v2 = vmul.f32 %v2679_v20, %v4846_v58  ;;  %v4860_v58 = vld [vmem:[#allocation52_spill] sm:$0xff] }
 0x267   :  { %1876 = vrot.lane.b32.xlu1 %v1813_v33, %s2841_s29  ;;  %1874 = vrot.lane.b32.xlu0 %v1812_v30, %s2841_s29  ;;  %v743_v30 = vmul.f32 %v3538_v55, %v3515_v3  ;;  %v713_v3 = vadd.f32 %v708_v51, %v693_v56  ;;  %v832_v33 = vmul.f32 %v2678_v43, %v3592_v21  ;;  %v3923_v21 = vld [vmem:[#allocation2 + $0xe1] sm:$0xff] }
 0x268   :  { %v774_v55 = vmul.f32 %v3556_v1, %v3558_v50  ;;  %v749_v46 = vadd.f32 %v744_v14, %v714_v49  ;;  %v836_v1 = vadd.f32 %v831_v11, %v3578_v16  ;;  %v882_v16 = vmul.f32 %v2680_v29, %v3316_v25  ;;  %v4847_v51 = vld [vmem:[#allocation38_spill] sm:$0xff] }
 0x269   :  { %v3885_v24 = vpop.permute.xlu1 %1417  ;;  %v3887_v28 = vpop.permute.xlu0 %1415  ;;  %v748_v47 = vadd.f32 %v743_v30, %v713_v3  ;;  %v837_v32 = vadd.f32 %v832_v33, %v802_v52  ;;  %v863_v56 = vmul.f32 %v2679_v20, %v3626_v45  ;;  %v830_v25 = vmul.f32 %v2678_v43, %v3584_v38  ;;  %v4849_v43 = vld [vmem:[#allocation44_spill] sm:$0xff]  ;;  %v4851_v49 = vld [vmem:[#allocation6_spill] sm:$0xff]  ;;  %v2683_v52 = vld [vmem:[%s4707_s1 + $0xf] ss:$0 sm:$0xff] }
 0x26a   :  { %v779_v37 = vadd.f32 %v774_v55, %v749_v46  ;;  %v866_v48 = vadd.f32 %v861_v61, %v836_v1  ;;  %v838_v45 = vadd.f32 %v833_v5, %v803_v22  ;;  %v917_v30 = vmul.f32 %v2681_v36, %v4847_v51  ;;  %v4853_v46 = vld [vmem:[#allocation41_spill] sm:$0xff]  ;;  %v4861_v51 = vld [vmem:[#allocation40_spill] sm:$0xff] }
 0x26b   :  { %1925 = vrot.lane.b32.xlu1 %v3898_v13, %s2840_s28  ;;  %1923 = vrot.lane.b32.xlu0 %v1894_v10, %s2840_s28  ;;  %v778_v50 = vadd.f32 %v773_v60, %v748_v47  ;;  %v867_v15 = vadd.f32 %v862_v7, %v837_v32  ;;  %v860_v38 = vmul.f32 %v2679_v20, %v4848_v9  ;;  %v4852_v20 = vld [vmem:[#allocation8_spill] sm:$0xff]  ;;  %v4855_v32 = vld [vmem:[#allocation11_spill] sm:$0xff] }
 0x26c   :  { %v800_v57 = vadd.f32 %v795_v23, %v779_v37  ;;  %v886_v26 = vadd.f32 %v881_v19, %v866_v48  ;;  %v946_v31 = vmul.f32 %v2682_v35, %v4849_v43  ;;  %v868_v3 = vadd.f32 %v863_v56, %v838_v45  ;;  %v4856_v48 = vld [vmem:[#allocation37_spill] sm:$0xff]  ;;  %v2684_v19 = vld [vmem:[%s4707_s1 + $0x10] ss:$0 sm:$0xff] }
 0x26d   :  { %v3918_v41 = vpop.permute.xlu1 %1441  ;;  %v3920_v27 = vpop.permute.xlu0 %1419  ;;  %v799_v0 = vadd.f32 %v794_v18, %v778_v50  ;;  %v887_v60 = vadd.f32 %v882_v16, %v867_v15  ;;  %v947_v33 = vmul.f32 %v2682_v35, %v4850_v39  ;;  %v880_v55 = vmul.f32 %v2680_v29, %v4851_v49 }
 0x26e   :  { %v835_v61 = vadd.f32 %v830_v25, %v800_v57  ;;  %v921_v47 = vadd.f32 %v916_v8, %v886_v26  ;;  %v883_v40 = vmul.f32 %v2680_v29, %v4852_v20  ;;  %v918_v1 = vmul.f32 %v2681_v36, %v4853_v46  ;;  %v4858_v25 = vld [vmem:[#allocation12_spill] sm:$0xff]  ;;  %v4862_v26 = vld [vmem:[#allocation51_spill] sm:$0xff] }
 0x26f   :  { %1929 = vrot.lane.b32.xlu1 %v3923_v21, %s2840_s28  ;;  %1927 = vrot.lane.b32.xlu0 %v1896_v54, %s2840_s28  ;;  %v834_v11 = vadd.f32 %v829_v12, %v799_v0  ;;  %v922_v23 = vadd.f32 %v917_v30, %v887_v60  ;;  %v879_v50 = vmul.f32 %v2680_v29, %v4854_v53  ;;  %v4857_v12 = vld [vmem:[#allocation47_spill] sm:$0xff]  ;;  %v4859_v8 = vld [vmem:[#allocation36_spill] sm:$0xff] }
 0x270   :  { %v967_v5 = vmul.f32 %v2683_v52, %v4855_v32  ;;  %v865_v18 = vadd.f32 %v860_v38, %v835_v61  ;;  %v951_v16 = vadd.f32 %v946_v31, %v921_v47  ;;  %v914_v22 = vmul.f32 %v2681_v36, %v4856_v48  ;;  %v2685_v38 = vld [vmem:[%s4707_s1 + $0x11] ss:$0 sm:$0xff]  ;;  %v4004_v20 = vld [vmem:[#allocation2 + $0xd2] sm:$0xff] }
 0x271   :  { %v3940_v59 = vpop.permute.xlu1 %1445  ;;  %v3942_v44 = vpop.permute.xlu0 %1443  ;;  %v864_v7 = vadd.f32 %v859_v2, %v834_v11  ;;  %v948_v56 = vmul.f32 %v2682_v35, %v4857_v12  ;;  %v952_v15 = vadd.f32 %v947_v33, %v922_v23  ;;  %v966_v29 = vmul.f32 %v2683_v52, %v4858_v25  ;;  %v4865_v61 = vld [vmem:[#allocation60_spill] sm:$0xff] }
 0x272   :  { %v915_v0 = vmul.f32 %v2681_v36, %v4859_v8  ;;  %v1001_v2 = vmul.f32 %v2684_v19, %v4860_v58  ;;  %v944_v30 = vmul.f32 %v2682_v35, %v4861_v51  ;;  %v1002_v9 = vmul.f32 %v2684_v19, %v4862_v26  ;;  %v4863_v36 = vld [vmem:[#allocation45_spill] sm:$0xff]  ;;  %v2686_v53 = vld [vmem:[%s4707_s1 + $0x12] ss:$0 sm:$0xff]  ;;  %v4871_v8 = vld [vmem:[#allocation50_spill] sm:$0xff] }
 0x273   :  { %1953 = vrot.lane.b32.xlu1 %v1894_v10, %s2841_s29  ;;  %1931 = vrot.lane.b32.xlu0 %v1898_v63, %s2840_s28  ;;  %v884_v45 = vadd.f32 %v879_v50, %v864_v7  ;;  %v885_v43 = vadd.f32 %v880_v55, %v865_v18  ;;  %v971_v31 = vadd.f32 %v966_v29, %v951_v16  ;;  %v4866_v7 = vld [vmem:[#allocation9_spill] sm:$0xff]  ;;  %v4869_v16 = vld [vmem:[#allocation10_spill] sm:$0xff]  ;;  %v4870_v48 = vld [vmem:[#allocation16_spill] sm:$0xff] }
 0x274   :  { %v945_v11 = vmul.f32 %v2682_v35, %v4863_v36  ;;  %v972_v49 = vadd.f32 %v967_v5, %v952_v15  ;;  %v1032_v47 = vmul.f32 %v2685_v38, %v4865_v61  ;;  %v965_v23 = vmul.f32 %v2683_v52, %v4866_v7  ;;  %v4867_v35 = vld [vmem:[#allocation13_spill] sm:$0xff]  ;;  %v4868_v5 = vld [vmem:[#allocation54_spill] sm:$0xff]  ;;  %v4872_v58 = vld [vmem:[#allocation59_spill] sm:$0xff] }
 0x275   :  { %v3961_v14 = vpop.permute.xlu1 %1449  ;;  %v3963_v10 = vpop.permute.xlu0 %1447  ;;  %v920_v55 = vadd.f32 %v915_v0, %v885_v43  ;;  %v1006_v46 = vadd.f32 %v1001_v2, %v971_v31  ;;  %v1003_v18 = vmul.f32 %v2684_v19, %v4868_v5  ;;  %v999_v0 = vmul.f32 %v2684_v19, %v4871_v8  ;;  %v2687_v51 = vld [vmem:[%s4707_s1 + $0x13] ss:$0 sm:$0xff]  ;;  %v2688_v61 = vld [vmem:[%s4707_s1 + $0x14] ss:$0 sm:$0xff] }
 0x276   :  { %v1007_v32 = vadd.f32 %v1002_v9, %v972_v49  ;;  %v1033_v2 = vmul.f32 %v2685_v38, %v4872_v58  ;;  %v4874_v9 = vld [vmem:[#allocation49_spill] sm:$0xff]  ;;  %v4875_v31 = vld [vmem:[#allocation64_spill] sm:$0xff] }
 0x277   :  { %1957 = vrot.lane.b32.xlu1 %v1896_v54, %s2841_s29  ;;  %1955 = vrot.lane.b32.xlu0 %v3898_v13, %s2841_s29  ;;  %v888_v13 = vadd.f32 %v883_v40, %v868_v3  ;;  %v4864_v3 = vld [vmem:[#allocation57_spill] sm:$0xff]  ;;  %v1979_v40 = vld [vmem:[#allocation2 + $0xca] sm:$0xff]  ;;  %v950_v12 = vadd.f32 %v945_v11, %v920_v55  ;;  %v1000_v43 = vmul.f32 %v2684_v19, %v4874_v9  ;;  %v4878_v19 = vld [vmem:[#allocation58_spill] sm:$0xff] }
 0x278   :  { %v1031_v60 = vmul.f32 %v2685_v38, %v4864_v3  ;;  %v1087_v36 = vmul.f32 %v2687_v51, %v4875_v31  ;;  %v4876_v3 = vld [vmem:[#allocation53_spill] sm:$0xff]  ;;  %v1030_v55 = vmul.f32 %v2685_v38, %v4878_v19 }
 0x279   :  { %v3977_v54 = vpop.permute.xlu1 %1498  ;;  %v3979_v37 = vpop.permute.xlu0 %1496  ;;  %v923_v57 = vadd.f32 %v918_v1, %v888_v13  ;;  %v968_v1 = vmul.f32 %v2683_v52, %v4867_v35  ;;  %v964_v13 = vmul.f32 %v2683_v52, %v4869_v16  ;;  %v1981_v52 = vld [vmem:[#allocation2 + $0xda] sm:$0xff] }
 0x27a   :  { %v4885_v9 = vld [vmem:[#allocation21_spill] sm:$0xff] }
 0x27b   :  { %1961 = vrot.lane.b32.xlu1 %v1898_v63, %s2841_s29  ;;  %1959 = vrot.lane.b32.xlu0 %v3923_v21, %s2841_s29  ;;  %v919_v21 = vadd.f32 %v914_v22, %v884_v45  ;;  %v953_v33 = vadd.f32 %v948_v56, %v923_v57  ;;  %v1053_v22 = vmul.f32 %v2686_v53, %v4870_v48  ;;  %v4873_v57 = vld [vmem:[#allocation17_spill] sm:$0xff]  ;;  %v1983_v48 = vld [vmem:[#allocation2 + $0xea] sm:$0x3f] }
 0x27c   :  { %v1036_v56 = vadd.f32 %v1031_v60, %v1006_v46  ;;  %v1037_v45 = vadd.f32 %v1032_v47, %v1007_v32  ;;  %v1052_v26 = vmul.f32 %v2686_v53, %v4873_v57  ;;  %v1029_v60 = vmul.f32 %v2685_v38, %v4876_v3  ;;  %v4879_v46 = vld [vmem:[#allocation68_spill] sm:$0xff]  ;;  %v4882_v38 = vld [vmem:[#allocation18_spill] sm:$0xff] }
 0x27d   :  { %v3999_v63 = vpop.permute.xlu1 %1502  ;;  %v4001_v39 = vpop.permute.xlu0 %1500  ;;  %v949_v50 = vadd.f32 %v944_v30, %v919_v21  ;;  %v973_v29 = vadd.f32 %v968_v1, %v953_v33  ;;  %v4026_v30 = vld [vmem:[#allocation2 + $0xe2] sm:$0xff]  ;;  %v970_v47 = vadd.f32 %v965_v23, %v950_v12  ;;  %v1117_v35 = vmul.f32 %v2688_v61, %v4879_v46  ;;  %v2689_v12 = vld [vmem:[%s4707_s1 + $0x15] ss:$0 sm:$0xff]  ;;  %v4889_v46 = vld [vmem:[#allocation61_spill] sm:$0xff] }
 0x27e   :  { %v4877_v33 = vld [vmem:[#allocation63_spill] sm:$0xff]  ;;  %v1057_v7 = vadd.f32 %v1052_v26, %v1036_v56  ;;  %v1058_v16 = vadd.f32 %v1053_v22, %v1037_v45  ;;  %v1054_v23 = vmul.f32 %v2686_v53, %v4882_v38  ;;  %v4883_v22 = vld [vmem:[#allocation66_spill] sm:$0xff]  ;;  %v1138_v31 = vmul.f32 %v2689_v12, %v4885_v9 }
 0x27f   :  { %2010 = vrot.lane.b32.xlu1 %v4004_v20, %s2840_s28  ;;  %2008 = vrot.lane.b32.xlu0 %v1979_v40, %s2840_s28  ;;  %v969_v11 = vadd.f32 %v964_v13, %v949_v50  ;;  %v1008_v21 = vadd.f32 %v1003_v18, %v973_v29  ;;  %v1088_v49 = vmul.f32 %v2687_v51, %v4877_v33  ;;  %v4880_v18 = vld [vmem:[#allocation71_spill] sm:$0xff]  ;;  %v4881_v29 = vld [vmem:[#allocation14_spill] sm:$0xff] }
 0x280   :  { %v1118_v13 = vmul.f32 %v2688_v61, %v4880_v18  ;;  %v1051_v8 = vmul.f32 %v2686_v53, %v4881_v29  ;;  %v1005_v58 = vadd.f32 %v1000_v43, %v970_v47  ;;  %v1092_v57 = vadd.f32 %v1087_v36, %v1057_v7  ;;  %v4884_v45 = vld [vmem:[#allocation15_spill] sm:$0xff]  ;;  %v4887_v47 = vld [vmem:[#allocation70_spill] sm:$0xff] }
 0x281   :  { %v4017_v15 = vpop.permute.xlu1 %1526  ;;  %v4019_v25 = vpop.permute.xlu0 %1504  ;;  %v1004_v50 = vadd.f32 %v999_v0, %v969_v11  ;;  %v1038_v5 = vadd.f32 %v1033_v2, %v1008_v21  ;;  %v1093_v0 = vadd.f32 %v1088_v49, %v1058_v16  ;;  %v1089_v2 = vmul.f32 %v2687_v51, %v4883_v22  ;;  %v4886_v21 = vld [vmem:[#allocation62_spill] sm:$0xff]  ;;  %v4891_v16 = vld [vmem:[#allocation65_spill] sm:$0xff] }
 0x282   :  { %v1050_v26 = vmul.f32 %v2686_v53, %v4884_v45  ;;  %v1035_v43 = vadd.f32 %v1030_v55, %v1005_v58  ;;  %v1122_v36 = vadd.f32 %v1117_v35, %v1092_v57  ;;  %v1085_v33 = vmul.f32 %v2687_v51, %v4886_v21  ;;  %v4888_v49 = vld [vmem:[#allocation22_spill] sm:$0xff]  ;;  %v4890_v55 = vld [vmem:[#allocation75_spill] sm:$0xff]  ;;  %v2691_v57 = vld [vmem:[%s4707_s1 + $0x17] ss:$0 sm:$0xff] }
 0x283   :  { %2014 = vrot.lane.b32.xlu1 %v4026_v30, %s2840_s28  ;;  %2012 = vrot.lane.b32.xlu0 %v1981_v52, %s2840_s28  ;;  %v1034_v56 = vadd.f32 %v1029_v60, %v1004_v50  ;;  %v1059_v3 = vadd.f32 %v1054_v23, %v1038_v5  ;;  %v1119_v7 = vmul.f32 %v2688_v61, %v4887_v47  ;;  %v2690_v60 = vld [vmem:[%s4707_s1 + $0x16] ss:$0 sm:$0xff]  ;;  %v4894_v22 = vld [vmem:[#allocation78_spill] sm:$0xff]  ;;  %v4898_v21 = vld [vmem:[#allocation19_spill] sm:$0xff] }
 0x284   :  { %v1123_v19 = vadd.f32 %v1118_v13, %v1093_v0  ;;  %v1137_v53 = vmul.f32 %v2689_v12, %v4888_v49  ;;  %v1086_v50 = vmul.f32 %v2687_v51, %v4889_v46  ;;  %v1172_v35 = vmul.f32 %v2690_v60, %v4890_v55  ;;  %v4892_v13 = vld [vmem:[#allocation74_spill] sm:$0xff]  ;;  %v4893_v51 = vld [vmem:[#allocation69_spill] sm:$0xff] }
 0x285   :  { %v4041_v1 = vpop.permute.xlu1 %1530  ;;  %v4043_v32 = vpop.permute.xlu0 %1528  ;;  %v1055_v5 = vadd.f32 %v1050_v26, %v1034_v56  ;;  %v1115_v18 = vmul.f32 %v2688_v61, %v4891_v16  ;;  %v1094_v29 = vadd.f32 %v1089_v2, %v1059_v3  ;;  %v1173_v58 = vmul.f32 %v2690_v60, %v4892_v13  ;;  %v4897_v2 = vld [vmem:[#allocation81_spill] sm:$0xff]  ;;  %v4902_v55 = vld [vmem:[#allocation26_spill] sm:$0xff] }
 0x286   :  { %v1056_v38 = vadd.f32 %v1051_v8, %v1035_v43  ;;  %v1142_v23 = vadd.f32 %v1137_v53, %v1122_v36  ;;  %v1116_v0 = vmul.f32 %v2688_v61, %v4893_v51  ;;  %v1202_v45 = vmul.f32 %v2691_v57, %v4894_v22  ;;  %v4899_v61 = vld [vmem:[#allocation23_spill] sm:$0xff]  ;;  %v2692_v43 = vld [vmem:[%s4707_s1 + $0x18] ss:$0 sm:$0xff] }
 0x287   :  { %2038 = vrot.lane.b32.xlu1 %v1979_v40, %s2841_s29  ;;  %2016 = vrot.lane.b32.xlu0 %v1983_v48, %s2840_s28  ;;  %v1124_v56 = vadd.f32 %v1119_v7, %v1094_v29  ;;  %v1143_v26 = vadd.f32 %v1138_v31, %v1123_v19  ;;  %v1203_v3 = vmul.f32 %v2691_v57, %v4897_v2  ;;  %v4900_v31 = vld [vmem:[#allocation77_spill] sm:$0xff]  ;;  %v4901_v19 = vld [vmem:[#allocation20_spill] sm:$0xff] }
 0x288   :  { %v1136_v47 = vmul.f32 %v2689_v12, %v4898_v21  ;;  %v1091_v49 = vadd.f32 %v1086_v50, %v1056_v38  ;;  %v1177_v46 = vadd.f32 %v1172_v35, %v1142_v23  ;;  %v1139_v8 = vmul.f32 %v2689_v12, %v4899_v61  ;;  %v4903_v29 = vld [vmem:[#allocation73_spill] sm:$0xff]  ;;  %v4904_v38 = vld [vmem:[#allocation80_spill] sm:$0xff] }
 0x289   :  { %v4056_v11 = vpop.permute.xlu1 %1534  ;;  %v4058_v40 = vpop.permute.xlu0 %1532  ;;  %v1174_v7 = vmul.f32 %v2690_v60, %v4900_v31  ;;  %v1135_v53 = vmul.f32 %v2689_v12, %v4901_v19  ;;  %v1223_v50 = vmul.f32 %v2692_v43, %v4902_v55  ;;  %v1170_v13 = vmul.f32 %v2690_v60, %v4903_v29  ;;  %v4105_v12 = vld [vmem:[#allocation2 + $0xf0] sm:$0xff]  ;;  %v4911_v31 = vld [vmem:[#allocation79_spill] sm:$0xff] }
 0x28a   :  { %v1121_v35 = vadd.f32 %v1116_v0, %v1091_v49  ;;  %v1204_v23 = vmul.f32 %v2691_v57, %v4904_v38  ;;  %4905 = vst [vmem:[#allocation34_spill] sm:$0xff] %v4105_v12  ;;  %v4906_v0 = vld [vmem:[#allocation27_spill] sm:$0xff]  ;;  %v1201_v19 = vmul.f32 %v2691_v57, %v4911_v31  ;;  %v4912_v55 = vld [vmem:[#allocation88_spill] sm:$0xff] }
 0x28b   :  { %2042 = vrot.lane.b32.xlu1 %v1981_v52, %s2841_s29  ;;  %2040 = vrot.lane.b32.xlu0 %v4004_v20, %s2841_s29  ;;  %v1090_v20 = vadd.f32 %v1085_v33, %v1055_v5  ;;  %v1178_v33 = vadd.f32 %v1173_v58, %v1143_v26  ;;  %v1207_v5 = vadd.f32 %v1202_v45, %v1177_v46  ;;  %v4103_v58 = vld [vmem:[#allocation2 + $0xf8] sm:$0xff]  ;;  %v4907_v45 = vld [vmem:[#allocation72_spill] sm:$0xff] }
 0x28c   :  { %v1222_v22 = vmul.f32 %v2692_v43, %v4906_v0  ;;  %v4908_v26 = vld [vmem:[#allocation85_spill] sm:$0xff]  ;;  %v4910_v46 = vld [vmem:[#allocation84_spill] sm:$0xff] }
 0x28d   :  { %v4078_v52 = vpop.permute.xlu1 %1584  ;;  %v4080_v9 = vpop.permute.xlu0 %1582  ;;  %v1120_v36 = vadd.f32 %v1115_v18, %v1090_v20  ;;  %v1208_v51 = vadd.f32 %v1203_v3, %v1178_v33  ;;  %v2693_v18 = vld [vmem:[%s4707_s1 + $0x19] ss:$0 sm:$0xff]  ;;  %v1171_v20 = vmul.f32 %v2690_v60, %v4907_v45  ;;  %v4909_v3 = vld [vmem:[#allocation76_spill] sm:$0xff]  ;;  %v1141_v33 = vadd.f32 %v1136_v47, %v1121_v35 }
 0x28e   :  { %4895 = vst [vmem:[#allocation31_spill] sm:$0xff] %v4078_v52  ;;  %4896 = vst [vmem:[#allocation38_spill] sm:$0xff] %v4080_v9  ;;  %v1257_v2 = vmul.f32 %v2693_v18, %v4908_v26  ;;  %v1200_v21 = vmul.f32 %v2691_v57, %v4909_v3  ;;  %v1258_v61 = vmul.f32 %v2693_v18, %v4910_v46  ;;  %v4126_v26 = vld [vmem:[#allocation2 + $0x108] sm:$0xff]  ;;  %v4128_v3 = vld [vmem:[#allocation2 + $0x100] sm:$0xff] }
 0x28f   :  { %2046 = vrot.lane.b32.xlu1 %v1983_v48, %s2841_s29  ;;  %2044 = vrot.lane.b32.xlu0 %v4026_v30, %s2841_s29  ;;  %v1144_v30 = vadd.f32 %v1139_v8, %v1124_v56  ;;  %v1140_v56 = vadd.f32 %v1135_v53, %v1120_v36  ;;  %v2694_v8 = vld [vmem:[%s4707_s1 + $0x1a] ss:$0 sm:$0xff]  ;;  %v1227_v60 = vadd.f32 %v1222_v22, %v1207_v5  ;;  %v4916_v46 = vld [vmem:[#allocation24_spill] sm:$0xff]  ;;  %v4918_v22 = vld [vmem:[#allocation87_spill] sm:$0xff] }
 0x290   :  { %v1287_v29 = vmul.f32 %v2694_v8, %v4912_v55  ;;  %v1228_v45 = vadd.f32 %v1223_v50, %v1208_v51  ;;  %v1221_v47 = vmul.f32 %v2692_v43, %v4916_v46  ;;  %v1176_v35 = vadd.f32 %v1171_v20, %v1141_v33  ;;  %v4917_v57 = vld [vmem:[#allocation28_spill] sm:$0xff]  ;;  %v2695_v50 = vld [vmem:[%s4707_s1 + $0x1b] ss:$0 sm:$0xff]  ;;  %v4923_v52 = vld [vmem:[#allocation90_spill] sm:$0xff] }
 0x291   :  { %v4094_v48 = vpop.permute.xlu1 %1588  ;;  %v4096_v16 = vpop.permute.xlu0 %1586  ;;  %v1179_v49 = vadd.f32 %v1174_v7, %v1144_v30  ;;  %v1175_v36 = vadd.f32 %v1170_v13, %v1140_v56  ;;  %v4915_v7 = vld [vmem:[#allocation91_spill] sm:$0xff]  ;;  %v1262_v5 = vadd.f32 %v1257_v2, %v1227_v60  ;;  %v1224_v13 = vmul.f32 %v2692_v43, %v4917_v57  ;;  %v4920_v20 = vld [vmem:[#allocation32_spill] sm:$0xff] }
 0x292   :  { %v1288_v30 = vmul.f32 %v2694_v8, %v4915_v7  ;;  %v1263_v51 = vadd.f32 %v1258_v61, %v1228_v45  ;;  %v1259_v56 = vmul.f32 %v2693_v18, %v4918_v22  ;;  %v1309_v2 = vmul.f32 %v2695_v50, %v4920_v20  ;;  %v4922_v57 = vld [vmem:[#allocation83_spill] sm:$0xff]  ;;  %v4151_v61 = vld [vmem:[#allocation2 + $0x110] sm:$0x3f]  ;;  %v2697_v22 = vld [vmem:[%s4707_s1 + $0x1d] ss:$0 sm:$0xff] }
 0x293   :  { %2096 = vrot.lane.b32.xlu1 %v4103_v58, %s2840_s28  ;;  %2094 = vrot.lane.b32.xlu0 %v4105_v12, %s2840_s28  ;;  %v1209_v53 = vadd.f32 %v1204_v23, %v1179_v49  ;;  %v1205_v23 = vadd.f32 %v1200_v21, %v1175_v36  ;;  %v4919_v49 = vld [vmem:[#allocation25_spill] sm:$0xff]  ;;  %v1206_v33 = vadd.f32 %v1201_v19, %v1176_v35  ;;  %v4925_v19 = vld [vmem:[#allocation82_spill] sm:$0xff]  ;;  %v4926_v45 = vld [vmem:[#allocation95_spill] sm:$0xff] }
 0x294   :  { %v1220_v31 = vmul.f32 %v2692_v43, %v4919_v49  ;;  %v1292_v60 = vadd.f32 %v1287_v29, %v1262_v5  ;;  %v1289_v9 = vmul.f32 %v2694_v8, %v4923_v52  ;;  %v2696_v21 = vld [vmem:[%s4707_s1 + $0x1c] ss:$0 sm:$0xff]  ;;  %v1256_v29 = vmul.f32 %v2693_v18, %v4925_v19 }
 0x295   :  { %v4121_v38 = vpop.permute.xlu1 %1612  ;;  %v4123_v0 = vpop.permute.xlu0 %1590  ;;  %v1229_v46 = vadd.f32 %v1224_v13, %v1209_v53  ;;  %v4924_v43 = vld [vmem:[#allocation33_spill] sm:$0xff]  ;;  %v1343_v35 = vmul.f32 %v2696_v21, %v4926_v45  ;;  %v4927_v53 = vld [vmem:[#allocation86_spill] sm:$0xff]  ;;  %v1226_v49 = vadd.f32 %v1221_v47, %v1206_v33 }
 0x296   :  { %4913 = vst [vmem:[#allocation44_spill] sm:$0xff] %v4121_v38  ;;  %4914 = vst [vmem:[#allocation48_spill] sm:$0xff] %v4123_v0  ;;  %v1255_v38 = vmul.f32 %v2693_v18, %v4922_v57  ;;  %v1293_v0 = vadd.f32 %v1288_v30, %v1263_v51  ;;  %v1308_v36 = vmul.f32 %v2695_v50, %v4924_v43  ;;  %v4928_v13 = vld [vmem:[#allocation94_spill] sm:$0xff]  ;;  %v4929_v20 = vld [vmem:[#allocation89_spill] sm:$0xff] }
 0x297   :  { %2100 = vrot.lane.b32.xlu1 %v4126_v26, %s2840_s28  ;;  %2098 = vrot.lane.b32.xlu0 %v4128_v3, %s2840_s28  ;;  %v1225_v52 = vadd.f32 %v1220_v31, %v1205_v23  ;;  %v1285_v30 = vmul.f32 %v2694_v8, %v4927_v53  ;;  %v1264_v5 = vadd.f32 %v1259_v56, %v1229_v46  ;;  %v4930_v46 = vld [vmem:[#allocation29_spill] sm:$0xff] }
 0x298   :  { %v1344_v51 = vmul.f32 %v2696_v21, %v4928_v13  ;;  %v1313_v18 = vadd.f32 %v1308_v36, %v1292_v60  ;;  %v1286_v57 = vmul.f32 %v2694_v8, %v4929_v20  ;;  %v1373_v43 = vmul.f32 %v2697_v22, %v3846_v34  ;;  %v4931_v34 = vld [vmem:[#allocation35_spill] sm:$0xff]  ;;  %v4932_v47 = vld [vmem:[#allocation97_spill] sm:$0xff]  ;;  %v4934_v60 = vld [vmem:[#allocation42_spill] sm:$0xff] }
 0x299   :  { %v4142_v55 = vpop.permute.xlu1 %1616  ;;  %v4144_v7 = vpop.permute.xlu0 %1614  ;;  %v1260_v23 = vadd.f32 %v1255_v38, %v1225_v52  ;;  %v1294_v31 = vadd.f32 %v1289_v9, %v1264_v5  ;;  %v1314_v53 = vadd.f32 %v1309_v2, %v1293_v0  ;;  %v1374_v56 = vmul.f32 %v2697_v22, %v3854_v42  ;;  %v2698_v38 = vld [vmem:[%s4707_s1 + $0x1e] ss:$0 sm:$0xff]  ;;  %v4933_v2 = vld [vmem:[#allocation30_spill] sm:$0xff] }
 0x29a   :  { %4921 = vst [vmem:[#allocation6_spill] sm:$0xff] %v4144_v7  ;;  %v1307_v13 = vmul.f32 %v2695_v50, %v4930_v46  ;;  %v1348_v7 = vadd.f32 %v1343_v35, %v1313_v18  ;;  %v1310_v8 = vmul.f32 %v2695_v50, %v4931_v34  ;;  %v1345_v42 = vmul.f32 %v2696_v21, %v4932_v47  ;;  %v4935_v18 = vld [vmem:[#allocation93_spill] sm:$0xff] }
 0x29b   :  { %2124 = vrot.lane.b32.xlu1 %v4105_v12, %s2841_s29  ;;  %2102 = vrot.lane.b32.xlu0 %v4151_v61, %s2840_s28  ;;  %v1261_v12 = vadd.f32 %v1256_v29, %v1226_v49  ;;  %v1290_v9 = vadd.f32 %v1285_v30, %v1260_v23  ;;  %v1349_v0 = vadd.f32 %v1344_v51, %v1314_v53  ;;  %v2699_v30 = vld [vmem:[%s4707_s1 + $0x1f] ss:$0 sm:$0xff]  ;;  %v4936_v51 = vld [vmem:[#allocation43_spill] sm:$0xff]  ;;  %v4937_v23 = vld [vmem:[#allocation92_spill] sm:$0xff] }
 0x29c   :  { %v1306_v33 = vmul.f32 %v2695_v50, %v4933_v2  ;;  %v1394_v36 = vmul.f32 %v2698_v38, %v4934_v60  ;;  %v1378_v35 = vadd.f32 %v1373_v43, %v1348_v7  ;;  %v1315_v49 = vadd.f32 %v1310_v8, %v1294_v31 }
 0x29d   :  { %v4167_v19 = vpop.permute.xlu1 %1620  ;;  %v4169_v45 = vpop.permute.xlu0 %1618  ;;  %v1291_v29 = vadd.f32 %v1286_v57, %v1261_v12  ;;  %v1341_v20 = vmul.f32 %v2696_v21, %v4935_v18  ;;  %v1375_v46 = vmul.f32 %v2697_v22, %v3852_v6  ;;  %v1379_v34 = vadd.f32 %v1374_v56, %v1349_v0  ;;  %v4938_v57 = vld [vmem:[#allocation96_spill] sm:$0xff]  ;;  %v2700_v56 = vld [vmem:[%s4707_s1 + $0x20] ss:$0 sm:$0xff]  ;;  %v4939_v18 = vld [vmem:[#allocation39_spill] sm:$0xff] }
 0x29e   :  { %v1393_v50 = vmul.f32 %v2698_v38, %v4936_v51  ;;  %v1342_v53 = vmul.f32 %v2696_v21, %v4937_v23  ;;  %v1428_v12 = vmul.f32 %v2699_v30, %v3887_v28  ;;  %v1311_v7 = vadd.f32 %v1306_v33, %v1290_v9  ;;  %v4941_v51 = vld [vmem:[#allocation55_spill] sm:$0xff] }
 0x29f   :  { %2128 = vrot.lane.b32.xlu1 %v4128_v3, %s2841_s29  ;;  %2126 = vrot.lane.b32.xlu0 %v4103_v58, %s2841_s29  ;;  %v1371_v6 = vmul.f32 %v2697_v22, %v4938_v57  ;;  %v1350_v43 = vadd.f32 %v1345_v42, %v1315_v49  ;;  %v1429_v31 = vmul.f32 %v2699_v30, %v3885_v24  ;;  %v4212_v24 = vld [vmem:[#allocation2 + $0xf9] sm:$0xff]  ;;  %v4214_v49 = vld [vmem:[#allocation2 + $0xf1] sm:$0xff] }
 0x2a0   :  { %v1312_v8 = vadd.f32 %v1307_v13, %v1291_v29  ;;  %v1372_v21 = vmul.f32 %v2697_v22, %v3848_v62  ;;  %v1398_v28 = vadd.f32 %v1393_v50, %v1378_v35  ;;  %v1458_v0 = vmul.f32 %v2700_v56, %v3940_v59  ;;  %v4940_v59 = vld [vmem:[#allocation46_spill] sm:$0xff] }
 0x2a1   :  { %v4184_v52 = vpop.permute.xlu1 %1669  ;;  %v4186_v5 = vpop.permute.xlu0 %1667  ;;  %v1346_v9 = vadd.f32 %v1341_v20, %v1311_v7  ;;  %v1380_v33 = vadd.f32 %v1375_v46, %v1350_v43  ;;  %v1399_v60 = vadd.f32 %v1394_v36, %v1379_v34  ;;  %v1459_v42 = vmul.f32 %v2700_v56, %v3963_v10  ;;  %v2701_v10 = vld [vmem:[%s4707_s1 + $0x21] ss:$0 sm:$0xff]  ;;  %v2776_v46 = vld [vmem:[#allocation2 + $0x79] sm:$0xff] }
 0x2a2   :  { %v1392_v13 = vmul.f32 %v2698_v38, %v4939_v18  ;;  %v1347_v29 = vadd.f32 %v1342_v53, %v1312_v8  ;;  %v1433_v62 = vadd.f32 %v1428_v12, %v1398_v28  ;;  %v1395_v22 = vmul.f32 %v2698_v38, %v4940_v59 }
 0x2a3   :  { %2132 = vrot.lane.b32.xlu1 %v4151_v61, %s2841_s29  ;;  %2130 = vrot.lane.b32.xlu0 %v4126_v26, %s2841_s29  ;;  %v1376_v36 = vadd.f32 %v1371_v6, %v1346_v9  ;;  %v1434_v35 = vadd.f32 %v1429_v31, %v1399_v60  ;;  %v1430_v20 = vmul.f32 %v2699_v30, %v3920_v27  ;;  %v2702_v27 = vld [vmem:[%s4707_s1 + $0x22] ss:$0 sm:$0xff]  ;;  %v4236_v6 = vld [vmem:[#allocation2 + $0x109] sm:$0xff] }
 0x2a4   :  { %v1391_v34 = vmul.f32 %v2776_v46, %v2698_v38  ;;  %v1479_v50 = vmul.f32 %v2701_v10, %v4941_v51  ;;  %v1377_v23 = vadd.f32 %v1372_v21, %v1347_v29  ;;  %v1463_v53 = vadd.f32 %v1458_v0, %v1433_v62  ;;  %v4238_v38 = vld [vmem:[#allocation2 + $0x101] sm:$0xff]  ;;  %v4942_v31 = vld [vmem:[#allocation56_spill] sm:$0xff] }
 0x2a5   :  { %v4207_v47 = vpop.permute.xlu1 %1673  ;;  %v4209_v2 = vpop.permute.xlu0 %1671  ;;  %v1426_v57 = vmul.f32 %v2699_v30, %v3874_v4  ;;  %v1400_v43 = vadd.f32 %v1395_v22, %v1380_v33  ;;  %v1460_v8 = vmul.f32 %v2700_v56, %v3961_v14  ;;  %v1464_v28 = vadd.f32 %v1459_v42, %v1434_v35  ;;  %v2703_v42 = vld [vmem:[%s4707_s1 + $0x23] ss:$0 sm:$0xff] }
 0x2a6   :  { %v1478_v21 = vmul.f32 %v2701_v10, %v4942_v31  ;;  %v1427_v0 = vmul.f32 %v2699_v30, %v3872_v17  ;;  %v1513_v9 = vmul.f32 %v2702_v27, %v4001_v39  ;;  %v1396_v4 = vadd.f32 %v1391_v34, %v1376_v36  ;;  %v2777_v35 = vld [vmem:[#allocation2 + $0x82] sm:$0xff] }
 0x2a7   :  { %2181 = vrot.lane.b32.xlu1 %v4212_v24, %s2840_s28  ;;  %2179 = vrot.lane.b32.xlu0 %v4214_v49, %s2840_s28  ;;  %v1456_v14 = vmul.f32 %v2700_v56, %v3918_v41  ;;  %v1435_v33 = vadd.f32 %v1430_v20, %v1400_v43  ;;  %v1514_v60 = vmul.f32 %v2702_v27, %v3999_v63  ;;  %v4259_v63 = vld [vmem:[#allocation2 + $0x111] sm:$0x3f] }
 0x2a8   :  { %v1397_v18 = vadd.f32 %v1392_v13, %v1377_v23  ;;  %v1457_v17 = vmul.f32 %v2700_v56, %v3942_v44  ;;  %v1483_v39 = vadd.f32 %v1478_v21, %v1463_v53  ;;  %v1543_v30 = vmul.f32 %v2703_v42, %v4041_v1  ;;  %v2778_v44 = vld [vmem:[#allocation2 + $0x9a] sm:$0x3f]  ;;  %v2704_v56 = vld [vmem:[%s4707_s1 + $0x24] ss:$0 sm:$0xff]  ;;  %v4943_v53 = vld [vmem:[#allocation67_spill] sm:$0xff] }
 0x2a9   :  { %v4227_v12 = vpop.permute.xlu1 %1697  ;;  %v4229_v7 = vpop.permute.xlu0 %1675  ;;  %v1431_v59 = vadd.f32 %v1426_v57, %v1396_v4  ;;  %v1465_v22 = vadd.f32 %v1460_v8, %v1435_v33  ;;  %v1484_v41 = vadd.f32 %v1479_v50, %v1464_v28  ;;  %v1544_v36 = vmul.f32 %v2703_v42, %v4058_v40  ;;  %v2779_v50 = vld [vmem:[#allocation2 + $0x7a] sm:$0xff] }
 0x2aa   :  { %v1477_v20 = vmul.f32 %v2777_v35, %v2701_v10  ;;  %v1432_v46 = vadd.f32 %v1427_v0, %v1397_v18  ;;  %v1518_v13 = vadd.f32 %v1513_v9, %v1483_v39  ;;  %v1480_v1 = vmul.f32 %v2778_v44, %v2701_v10  ;;  %v2706_v39 = vld [vmem:[%s4707_s1 + $0x26] ss:$0 sm:$0xff] }
 0x2ab   :  { %2185 = vrot.lane.b32.xlu1 %v4236_v6, %s2840_s28  ;;  %2183 = vrot.lane.b32.xlu0 %v4238_v38, %s2840_s28  ;;  %v1461_v34 = vadd.f32 %v1456_v14, %v1431_v59  ;;  %v1519_v40 = vadd.f32 %v1514_v60, %v1484_v41  ;;  %v1515_v51 = vmul.f32 %v2702_v27, %v4019_v25  ;;  %v2705_v25 = vld [vmem:[%s4707_s1 + $0x25] ss:$0 sm:$0xff]  ;;  %v2780_v14 = vld [vmem:[#allocation2 + $0xb0] sm:$0xff] }
 0x2ac   :  { %v1476_v23 = vmul.f32 %v2779_v50, %v2701_v10  ;;  %v1565_v57 = vmul.f32 %v2704_v56, %v4943_v53  ;;  %v1462_v43 = vadd.f32 %v1457_v17, %v1432_v46  ;;  %v1548_v8 = vadd.f32 %v1543_v30, %v1518_v13  ;;  %v2784_v50 = vld [vmem:[#allocation2 + $0xb9] sm:$0xff] }
 0x2ad   :  { %v4254_v29 = vpop.permute.xlu1 %1701  ;;  %v4256_v62 = vpop.permute.xlu0 %1699  ;;  %v1511_v21 = vmul.f32 %v2702_v27, %v3979_v37  ;;  %v1485_v0 = vadd.f32 %v1480_v1, %v1465_v22  ;;  %v1545_v9 = vmul.f32 %v2703_v42, %v4056_v11  ;;  %v1549_v4 = vadd.f32 %v1544_v36, %v1519_v40  ;;  %v2783_v40 = vld [vmem:[#allocation2 + $0xa0] sm:$0xff] }
 0x2ae   :  { %v1564_v10 = vmul.f32 %v2780_v14, %v2704_v56  ;;  %v1512_v33 = vmul.f32 %v2702_v27, %v3977_v54  ;;  %v1599_v60 = vmul.f32 %v2705_v25, %v4096_v16  ;;  %v1481_v37 = vadd.f32 %v1476_v23, %v1461_v34  ;;  %v4944_v34 = vld [vmem:[#allocation48_spill] sm:$0xff] }
 0x2af   :  { %2209 = vrot.lane.b32.xlu1 %v4214_v49, %s2841_s29  ;;  %2187 = vrot.lane.b32.xlu0 %v4259_v63, %s2840_s28  ;;  %v1541_v11 = vmul.f32 %v2703_v42, %v4017_v15  ;;  %v1520_v18 = vadd.f32 %v1515_v51, %v1485_v0  ;;  %v1600_v17 = vmul.f32 %v2705_v25, %v4094_v48  ;;  %v2781_v48 = vld [vmem:[#allocation2 + $0xa8] sm:$0xff] }
 0x2b0   :  { %v1482_v30 = vadd.f32 %v1477_v20, %v1462_v43  ;;  %v1542_v54 = vmul.f32 %v2703_v42, %v4043_v32  ;;  %v1569_v16 = vadd.f32 %v1564_v10, %v1548_v8  ;;  %v1629_v27 = vmul.f32 %v2706_v39, %v4142_v55  ;;  %v2782_v32 = vld [vmem:[#allocation2 + $0xc0] sm:$0x3f]  ;;  %v2707_v42 = vld [vmem:[%s4707_s1 + $0x27] ss:$0 sm:$0xff]  ;;  %v2708_v10 = vld [vmem:[%s4707_s1 + $0x28] ss:$0 sm:$0xff] }
 0x2b1   :  { %v4270_v28 = vpop.permute.xlu1 %1705  ;;  %v4272_v31 = vpop.permute.xlu0 %1703  ;;  %v1516_v41 = vadd.f32 %v1511_v21, %v1481_v37  ;;  %v1550_v36 = vadd.f32 %v1545_v9, %v1520_v18  ;;  %v1570_v15 = vadd.f32 %v1565_v57, %v1549_v4  ;;  %v1630_v35 = vmul.f32 %v2706_v39, %v4169_v45  ;;  %v4945_v21 = vld [vmem:[#allocation38_spill] sm:$0xff] }
 0x2b2   :  { %v1563_v46 = vmul.f32 %v2781_v48, %v2704_v56  ;;  %v1517_v13 = vadd.f32 %v1512_v33, %v1482_v30  ;;  %v1604_v44 = vadd.f32 %v1599_v60, %v1569_v16  ;;  %v1566_v55 = vmul.f32 %v2782_v32, %v2704_v56  ;;  %v4312_v33 = vld [vmem:[#allocation2 + $0xfa] sm:$0xff]  ;;  %v2785_v60 = vld [vmem:[#allocation2 + $0xb1] sm:$0xff] }
 0x2b3   :  { %2213 = vrot.lane.b32.xlu1 %v4238_v38, %s2841_s29  ;;  %2211 = vrot.lane.b32.xlu0 %v4212_v24, %s2841_s29  ;;  %v1546_v20 = vadd.f32 %v1541_v11, %v1516_v41  ;;  %v1605_v1 = vadd.f32 %v1600_v17, %v1570_v15  ;;  %v1601_v45 = vmul.f32 %v2705_v25, %v4944_v34  ;;  %v4946_v11 = vld [vmem:[#allocation31_spill] sm:$0xff]  ;;  %v4947_v30 = vld [vmem:[#allocation44_spill] sm:$0xff] }
 0x2b4   :  { %v1562_v51 = vmul.f32 %v2783_v40, %v2704_v56  ;;  %v1650_v23 = vmul.f32 %v2784_v50, %v2707_v42  ;;  %v1547_v53 = vadd.f32 %v1542_v54, %v1517_v13  ;;  %v1634_v57 = vadd.f32 %v1629_v27, %v1604_v44  ;;  %v4314_v56 = vld [vmem:[#allocation2 + $0xf2] sm:$0xff]  ;;  %v2709_v41 = vld [vmem:[%s4707_s1 + $0x29] ss:$0 sm:$0xff] }
 0x2b5   :  { %v4292_v59 = vpop.permute.xlu1 %1754  ;;  %v4294_v22 = vpop.permute.xlu0 %1752  ;;  %v1597_v0 = vmul.f32 %v2705_v25, %v4945_v21  ;;  %v1571_v9 = vadd.f32 %v1566_v55, %v1550_v36  ;;  %v1631_v4 = vmul.f32 %v2706_v39, %v4167_v19  ;;  %v1635_v14 = vadd.f32 %v1630_v35, %v1605_v1  ;;  %v4332_v1 = vld [vmem:[#allocation2 + $0x10a] sm:$0xff]  ;;  %v2789_v21 = vld [vmem:[#allocation2 + $0xba] sm:$0xff] }
 0x2b6   :  { %v1649_v37 = vmul.f32 %v2785_v60, %v2707_v42  ;;  %v1598_v18 = vmul.f32 %v2705_v25, %v4946_v11  ;;  %v1684_v17 = vmul.f32 %v2708_v10, %v4209_v2  ;;  %v1567_v19 = vadd.f32 %v1562_v51, %v1546_v20  ;;  %v4948_v25 = vld [vmem:[#allocation6_spill] sm:$0xff]  ;;  %v2786_v34 = vld [vmem:[#allocation2 + $0xa9] sm:$0xff] }
 0x2b7   :  { %2217 = vrot.lane.b32.xlu1 %v4259_v63, %s2841_s29  ;;  %2215 = vrot.lane.b32.xlu0 %v4236_v6, %s2841_s29  ;;  %v1627_v54 = vmul.f32 %v2706_v39, %v4947_v30  ;;  %v1606_v16 = vadd.f32 %v1601_v45, %v1571_v9  ;;  %v1685_v27 = vmul.f32 %v2708_v10, %v4207_v47  ;;  %v4334_v47 = vld [vmem:[#allocation2 + $0x102] sm:$0xff]  ;;  %v4349_v30 = vld [vmem:[#allocation2 + $0x112] sm:$0x3f] }
 0x2b8   :  { %v1568_v36 = vadd.f32 %v1563_v46, %v1547_v53  ;;  %v1628_v15 = vmul.f32 %v2706_v39, %v4948_v25  ;;  %v1654_v2 = vadd.f32 %v1649_v37, %v1634_v57  ;;  %v1714_v35 = vmul.f32 %v2709_v41, %v4254_v29  ;;  %v2787_v29 = vld [vmem:[#allocation2 + $0xc1] sm:$0x3f]  ;;  %v2712_v25 = vld [vmem:[%s4707_s1 + $0x2c] ss:$0 sm:$0xff] }
 0x2b9   :  { %v4305_v43 = vpop.permute.xlu1 %1758  ;;  %v1757_v8 = vpop.permute.xlu0 %1756  ;;  %v1602_v44 = vadd.f32 %v1597_v0, %v1567_v19  ;;  %v1636_v32 = vadd.f32 %v1631_v4, %v1606_v16  ;;  %v1655_v55 = vadd.f32 %v1650_v23, %v1635_v14  ;;  %v1715_v20 = vmul.f32 %v2709_v41, %v4272_v31  ;;  %v2710_v31 = vld [vmem:[%s4707_s1 + $0x2a] ss:$0 sm:$0xff]  ;;  %v2788_v53 = vld [vmem:[#allocation2 + $0xa1] sm:$0xff]  ;;  %v2711_v19 = vld [vmem:[%s4707_s1 + $0x2b] ss:$0 sm:$0xff] }
 0x2ba   :  { %v1648_v45 = vmul.f32 %v2786_v34, %v2707_v42  ;;  %v1603_v46 = vadd.f32 %v1598_v18, %v1568_v36  ;;  %v1689_v40 = vadd.f32 %v1684_v17, %v1654_v2  ;;  %v1651_v39 = vmul.f32 %v2787_v29, %v2707_v42 }
 0x2bb   :  { %2266 = vrot.lane.b32.xlu1 %v4312_v33, %s2840_s28  ;;  %2264 = vrot.lane.b32.xlu0 %v4314_v56, %s2840_s28  ;;  %v1632_v51 = vadd.f32 %v1627_v54, %v1602_v44  ;;  %v1690_v50 = vadd.f32 %v1685_v27, %v1655_v55  ;;  %v1686_v23 = vmul.f32 %v2708_v10, %v4229_v7  ;;  %v2790_v7 = vld [vmem:[#allocation2 + $0xb2] sm:$0xff] }
 0x2bc   :  { %v1647_v57 = vmul.f32 %v2788_v53, %v2707_v42  ;;  %v1735_v0 = vmul.f32 %v2789_v21, %v2710_v31  ;;  %v1633_v9 = vadd.f32 %v1628_v15, %v1603_v46  ;;  %v1719_v4 = vadd.f32 %v1714_v35, %v1689_v40  ;;  %v2713_v53 = vld [vmem:[%s4707_s1 + $0x2d] ss:$0 sm:$0xff] }
 0x2bd   :  { %v4329_v48 = vpop.permute.xlu1 %1782  ;;  %v1761_v13 = vpop.permute.xlu0 %1760  ;;  %v1682_v37 = vmul.f32 %v2708_v10, %v4186_v5  ;;  %v1656_v11 = vadd.f32 %v1651_v39, %v1636_v32  ;;  %v1716_v18 = vmul.f32 %v2709_v41, %v4270_v28  ;;  %v1720_v17 = vadd.f32 %v1715_v20, %v1690_v50  ;;  %v2792_v50 = vld [vmem:[#allocation2 + $0xa2] sm:$0xff] }
 0x2be   :  { %v1734_v42 = vmul.f32 %v2790_v7, %v2710_v31  ;;  %v1683_v54 = vmul.f32 %v2708_v10, %v4184_v52  ;;  %v1769_v16 = vmul.f32 %v2711_v19, %v1757_v8  ;;  %v1652_v5 = vadd.f32 %v1647_v57, %v1632_v51 }
 0x2bf   :  { %2270 = vrot.lane.b32.xlu1 %v4332_v1, %s2840_s28  ;;  %2268 = vrot.lane.b32.xlu0 %v4334_v47, %s2840_s28  ;;  %v1712_v28 = vmul.f32 %v2709_v41, %v4227_v12  ;;  %v1691_v27 = vadd.f32 %v1686_v23, %v1656_v11  ;;  %v1770_v36 = vmul.f32 %v2711_v19, %v4305_v43  ;;  %v2791_v43 = vld [vmem:[#allocation2 + $0xc2] sm:$0x3f] }
 0x2c0   :  { %v1653_v15 = vadd.f32 %v1648_v45, %v1633_v9  ;;  %v1713_v52 = vmul.f32 %v2709_v41, %v4256_v62  ;;  %v1739_v8 = vadd.f32 %v1734_v42, %v1719_v4  ;;  %v1687_v44 = vadd.f32 %v1682_v37, %v1652_v5  ;;  %v2793_v9 = vld [vmem:[#allocation2 + $0xaa] sm:$0xff] }
 0x2c1   :  { %v1787_v14 = vpop.permute.xlu1 %1786  ;;  %v1785_v60 = vpop.permute.xlu0 %1784  ;;  %v1721_v32 = vadd.f32 %v1716_v18, %v1691_v27  ;;  %v1740_v55 = vadd.f32 %v1735_v0, %v1720_v17  ;;  %v1736_v45 = vmul.f32 %v2791_v43, %v2710_v31  ;;  %v1771_v41 = vmul.f32 %v2711_v19, %v1761_v13  ;;  %v2795_v13 = vld [vmem:[#allocation2 + $0xe0] sm:$0xff]  ;;  %v4387_v43 = vld [vmem:[#allocation2 + $0x130] sm:$0xff] }
 0x2c2   :  { %v1799_v10 = vmul.f32 %v2712_v25, %v1787_v14  ;;  %v1688_v34 = vadd.f32 %v1683_v54, %v1653_v15  ;;  %v1774_v12 = vadd.f32 %v1769_v16, %v1739_v8  ;;  %v1717_v46 = vadd.f32 %v1712_v28, %v1687_v44  ;;  %v2794_v14 = vld [vmem:[#allocation2 + $0xd8] sm:$0xff] }
 0x2c3   :  { %2294 = vrot.lane.b32.xlu1 %v4314_v56, %s2841_s29  ;;  %2272 = vrot.lane.b32.xlu0 %v4349_v30, %s2840_s28  ;;  %v1775_v62 = vadd.f32 %v1770_v36, %v1740_v55  ;;  %v1732_v23 = vmul.f32 %v2792_v50, %v2710_v31  ;;  %v1741_v57 = vadd.f32 %v1736_v45, %v1721_v32  ;;  %v4389_v45 = vld [vmem:[#allocation2 + $0x128] sm:$0xff] }
 0x2c4   :  { %v1718_v40 = vadd.f32 %v1713_v52, %v1688_v34  ;;  %v1804_v29 = vadd.f32 %v1799_v10, %v1774_v12  ;;  %v1733_v4 = vmul.f32 %v2793_v9, %v2710_v31  ;;  %v1820_v37 = vmul.f32 %v2794_v14, %v2713_v53  ;;  %v4379_v10 = vld [vmem:[#allocation2 + $0x120] sm:$0xff] }
 0x2c5   :  { %v1791_v2 = vpop.permute.xlu1 %1790  ;;  %v1789_v35 = vpop.permute.xlu0 %1788  ;;  %v1767_v11 = vmul.f32 %v2711_v19, %v4294_v22  ;;  %v1821_v18 = vmul.f32 %v2795_v13, %v2713_v53  ;;  %v1768_v17 = vmul.f32 %v2711_v19, %v4292_v59  ;;  %v1737_v7 = vadd.f32 %v1732_v23, %v1717_v46  ;;  %v2714_v22 = vld [vmem:[%s4707_s1 + $0x2e] ss:$0 sm:$0xff]  ;;  %v4381_v59 = vld [vmem:[#allocation2 + $0x118] sm:$0xff] }
 0x2c6   :  { %v1800_v20 = vmul.f32 %v2712_v25, %v1789_v35  ;;  %v1801_v21 = vmul.f32 %v2712_v25, %v1791_v2  ;;  %v1776_v42 = vadd.f32 %v1771_v41, %v1741_v57  ;;  %v1738_v54 = vadd.f32 %v1733_v4, %v1718_v40  ;;  %v2797_v46 = vld [vmem:[#allocation2 + $0xc8] sm:$0xff]  ;;  %v2798_v40 = vld [vmem:[#allocation2 + $0xd0] sm:$0xff]  ;;  %v4398_v13 = vld [vmem:[#allocation2 + $0x138] sm:$0x3f] }
 0x2c7   :  { %2298 = vrot.lane.b32.xlu1 %v4334_v47, %s2841_s29  ;;  %2296 = vrot.lane.b32.xlu0 %v4312_v33, %s2841_s29  ;;  %v1797_v16 = vmul.f32 %v2712_v25, %v4329_v48  ;;  %v1798_v31 = vmul.f32 %v2712_v25, %v1785_v60  ;;  %v1825_v28 = vadd.f32 %v1820_v37, %v1804_v29  ;;  %v2796_v48 = vld [vmem:[#allocation2 + $0xe8] sm:$0x3f]  ;;  %v2715_v41 = vld [vmem:[%s4707_s1 + $0x2f] ss:$0 sm:$0xff] }
 0x2c8   :  { %v1805_v0 = vadd.f32 %v1800_v20, %v1775_v62  ;;  %v1806_v36 = vadd.f32 %v1801_v21, %v1776_v42  ;;  %v1772_v19 = vadd.f32 %v1767_v11, %v1737_v7  ;;  %v1822_v60 = vmul.f32 %v2796_v48, %v2713_v53 }
 0x2c9   :  { %v1841_v39 = vpop.permute.xlu1 %1840  ;;  %v1839_v51 = vpop.permute.xlu0 %1838  ;;  %v1773_v25 = vadd.f32 %v1768_v17, %v1738_v54  ;;  %v1818_v62 = vmul.f32 %v2797_v46, %v2713_v53  ;;  %v1819_v29 = vmul.f32 %v2798_v40, %v2713_v53 }
 0x2ca   :  { %v1826_v15 = vadd.f32 %v1821_v18, %v1805_v0  ;;  %v1802_v44 = vadd.f32 %v1797_v16, %v1772_v19  ;;  %v1827_v34 = vadd.f32 %v1822_v60, %v1806_v36  ;;  %v1854_v50 = vmul.f32 %v2714_v22, %v1841_v39 }
 0x2cb   :  { %2302 = vrot.lane.b32.xlu1 %v4349_v30, %s2841_s29  ;;  %2300 = vrot.lane.b32.xlu0 %v4332_v1, %s2841_s29  ;;  %v1803_v20 = vadd.f32 %v1798_v31, %v1773_v25  ;;  %v1853_v23 = vmul.f32 %v2714_v22, %v1839_v51  ;;  %v2716_v51 = vld [vmem:[%s4707_s1 + $0x30] ss:$0 sm:$0xff] }
 0x2cc   :  { %v1823_v21 = vadd.f32 %v1818_v62, %v1802_v44  ;;  %v2801_v44 = vld [vmem:[#allocation2 + $0xe1] sm:$0xff] }
 0x2cd   :  { %v1845_v5 = vpop.permute.xlu1 %1844  ;;  %v1843_v27 = vpop.permute.xlu0 %1842  ;;  %v1824_v4 = vadd.f32 %v1819_v29, %v1803_v20 }
 0x2ce   :  { %v1856_v52 = vmul.f32 %v2714_v22, %v1845_v5  ;;  %v1855_v8 = vmul.f32 %v2714_v22, %v1843_v27  ;;  %v1858_v53 = vadd.f32 %v1853_v23, %v1823_v21  ;;  %v2799_v5 = vld [vmem:[#allocation2 + $0xd1] sm:$0xff]  ;;  %v2800_v27 = vld [vmem:[#allocation2 + $0xc9] sm:$0xff]  ;;  %v4420_v23 = vld [vmem:[#allocation2 + $0x119] sm:$0xff] }
 0x2cf   :  { %2352 = vrot.lane.b32.xlu1 %v4379_v10, %s2840_s28  ;;  %2350 = vrot.lane.b32.xlu0 %v4381_v59, %s2840_s28  ;;  %v1859_v18 = vadd.f32 %v1854_v50, %v1824_v4  ;;  %v1903_v36 = vmul.f32 %v2800_v27, %v2716_v51  ;;  %v4418_v50 = vld [vmem:[#allocation2 + $0x121] sm:$0xff]  ;;  %v2803_v21 = vld [vmem:[#allocation2 + $0xe9] sm:$0x3f]  ;;  %v2719_v27 = vld [vmem:[%s4707_s1 + $0x33] ss:$0 sm:$0xff] }
 0x2d0   :  { %v1861_v2 = vadd.f32 %v1856_v52, %v1826_v15  ;;  %v1860_v35 = vadd.f32 %v1855_v8, %v1825_v28  ;;  %v1904_v28 = vmul.f32 %v2799_v5, %v2716_v51  ;;  %v4437_v5 = vld [vmem:[#allocation2 + $0x139] sm:$0x3f] }
 0x2d1   :  { %v1869_v32 = vpop.permute.xlu1 %1868  ;;  %v1847_v55 = vpop.permute.xlu0 %1846  ;;  %4951 = vst [vmem:[#allocation7_spill] sm:$0xff] %v4437_v5 }
 0x2d2   :  { %v1857_v12 = vmul.f32 %v2714_v22, %v1847_v55  ;;  %v1883_v14 = vmul.f32 %v2715_v41, %v1869_v32  ;;  %v2717_v22 = vld [vmem:[%s4707_s1 + $0x31] ss:$0 sm:$0xff]  ;;  %v1906_v32 = vmul.f32 %v2801_v44, %v2716_v51  ;;  %v2802_v55 = vld [vmem:[#allocation2 + $0xd9] sm:$0xff] }
 0x2d3   :  { %2356 = vrot.lane.b32.xlu1 %v4387_v43, %s2840_s28  ;;  %2354 = vrot.lane.b32.xlu0 %v4389_v45, %s2840_s28  ;;  %v1905_v20 = vmul.f32 %v2802_v55, %v2716_v51 }
 0x2d4   :  { %v1862_v57 = vadd.f32 %v1857_v12, %v1827_v34  ;;  %v1888_v42 = vadd.f32 %v1883_v14, %v1858_v53 }
 0x2d5   :  { %v1873_v0 = vpop.permute.xlu1 %1872  ;;  %v1871_v9 = vpop.permute.xlu0 %1870 }
 0x2d6   :  { %v1885_v37 = vmul.f32 %v2715_v41, %v1873_v0  ;;  %v1884_v11 = vmul.f32 %v2715_v41, %v1871_v9  ;;  %v1908_v25 = vadd.f32 %v1903_v36, %v1888_v42  ;;  %v1907_v0 = vmul.f32 %v2803_v21, %v2716_v51 }
 0x2d7   :  { %2380 = vrot.lane.b32.xlu1 %v4381_v59, %s2841_s29  ;;  %2358 = vrot.lane.b32.xlu0 %v4398_v13, %s2840_s28 }
 0x2d8   :  { %v1890_v39 = vadd.f32 %v1885_v37, %v1860_v35  ;;  %v1889_v54 = vadd.f32 %v1884_v11, %v1859_v18 }
 0x2d9   :  { %v1877_v17 = vpop.permute.xlu1 %1876  ;;  %v1875_v7 = vpop.permute.xlu0 %1874 }
 0x2da   :  { %v1887_v16 = vmul.f32 %v2715_v41, %v1877_v17  ;;  %v1886_v31 = vmul.f32 %v2715_v41, %v1875_v7  ;;  %v1909_v48 = vadd.f32 %v1904_v28, %v1889_v54  ;;  %v1910_v40 = vadd.f32 %v1905_v20, %v1890_v39  ;;  %v4429_v39 = vld [vmem:[#allocation2 + $0x131] sm:$0xff]  ;;  %v4431_v17 = vld [vmem:[#allocation2 + $0x129] sm:$0xff] }
 0x2db   :  { %2384 = vrot.lane.b32.xlu1 %v4389_v45, %s2841_s29  ;;  %2382 = vrot.lane.b32.xlu0 %v4379_v10, %s2841_s29  ;;  %4949 = vst [vmem:[#allocation8_spill] sm:$0xff] %v4429_v39  ;;  %4950 = vst [vmem:[#allocation41_spill] sm:$0xff] %v4431_v17 }
 0x2dc   :  { %v1892_v15 = vadd.f32 %v1887_v16, %v1862_v57  ;;  %v1891_v52 = vadd.f32 %v1886_v31, %v1861_v2  ;;  %v2718_v57 = vld [vmem:[%s4707_s1 + $0x32] ss:$0 sm:$0xff] }
 0x2dd   :  { %v1926_v8 = vpop.permute.xlu1 %1925  ;;  %v1924_v19 = vpop.permute.xlu0 %1923 }
 0x2de   :  { %v1939_v60 = vmul.f32 %v2717_v22, %v1926_v8  ;;  %v1938_v35 = vmul.f32 %v2717_v22, %v1924_v19  ;;  %v1911_v62 = vadd.f32 %v1906_v32, %v1891_v52  ;;  %v1912_v18 = vadd.f32 %v1907_v0, %v1892_v15  ;;  %v2720_v19 = vld [vmem:[%s4707_s1 + $0x34] ss:$0 sm:$0xff] }
 0x2df   :  { %2388 = vrot.lane.b32.xlu1 %v4398_v13, %s2841_s29  ;;  %2386 = vrot.lane.b32.xlu0 %v4387_v43, %s2841_s29 }
 0x2e0   :  { %v1944_v34 = vadd.f32 %v1939_v60, %v1909_v48  ;;  %v1943_v12 = vadd.f32 %v1938_v35, %v1908_v25  ;;  %v2804_v48 = vld [vmem:[#allocation2 + $0xd2] sm:$0xff]  ;;  %v2805_v25 = vld [vmem:[#allocation2 + $0xca] sm:$0xff] }
 0x2e1   :  { %v1930_v46 = vpop.permute.xlu1 %1929  ;;  %v1928_v2 = vpop.permute.xlu0 %1927  ;;  %v1989_v60 = vmul.f32 %v2804_v48, %v2719_v27  ;;  %v1988_v35 = vmul.f32 %v2805_v25, %v2719_v27 }
 0x2e2   :  { %v1941_v41 = vmul.f32 %v2717_v22, %v1930_v46  ;;  %v1940_v29 = vmul.f32 %v2717_v22, %v1928_v2 }
 0x2e3   :  { %2437 = vrot.lane.b32.xlu1 %v4418_v50, %s2840_s28  ;;  %2435 = vrot.lane.b32.xlu0 %v4420_v23, %s2840_s28 }
 0x2e4   :  { %v1946_v9 = vadd.f32 %v1941_v41, %v1911_v62  ;;  %v1945_v4 = vadd.f32 %v1940_v29, %v1910_v40  ;;  %v2806_v62 = vld [vmem:[#allocation2 + $0xe2] sm:$0xff]  ;;  %v2807_v40 = vld [vmem:[#allocation2 + $0xda] sm:$0xff] }
 0x2e5   :  { %v1954_v14 = vpop.permute.xlu1 %1953  ;;  %v1932_v37 = vpop.permute.xlu0 %1931  ;;  %v1991_v41 = vmul.f32 %v2806_v62, %v2719_v27  ;;  %v1990_v29 = vmul.f32 %v2807_v40, %v2719_v27  ;;  %v2723_v62 = vld [vmem:[%s4707_s1 + $0x37] ss:$0 sm:$0xff]  ;;  %v4957_v40 = vld [vmem:[#allocation34_spill] sm:$0xff] }
 0x2e6   :  { %v1968_v11 = vmul.f32 %v2718_v57, %v1954_v14  ;;  %v1942_v53 = vmul.f32 %v2717_v22, %v1932_v37 }
 0x2e7   :  { %2441 = vrot.lane.b32.xlu1 %v4429_v39, %s2840_s28  ;;  %2439 = vrot.lane.b32.xlu0 %v4431_v17, %s2840_s28 }
 0x2e8   :  { %v1973_v7 = vadd.f32 %v1968_v11, %v1943_v12  ;;  %v1947_v42 = vadd.f32 %v1942_v53, %v1912_v18  ;;  %v4457_v18 = vld [vmem:[#allocation2 + $0x122] sm:$0xff]  ;;  %v4459_v53 = vld [vmem:[#allocation2 + $0x11a] sm:$0xff] }
 0x2e9   :  { %v1958_v51 = vpop.permute.xlu1 %1957  ;;  %v1956_v54 = vpop.permute.xlu0 %1955  ;;  %4952 = vst [vmem:[#allocation11_spill] sm:$0xff] %v4457_v18  ;;  %4953 = vst [vmem:[#allocation37_spill] sm:$0xff] %v4459_v53 }
 0x2ea   :  { %v1970_v16 = vmul.f32 %v2718_v57, %v1958_v51  ;;  %v1969_v31 = vmul.f32 %v2718_v57, %v1956_v54  ;;  %v1993_v46 = vadd.f32 %v1988_v35, %v1973_v7  ;;  %v2721_v7 = vld [vmem:[%s4707_s1 + $0x35] ss:$0 sm:$0xff] }
 0x2eb   :  { %2465 = vrot.lane.b32.xlu1 %v4420_v23, %s2841_s29  ;;  %2443 = vrot.lane.b32.xlu0 %v4437_v5, %s2840_s28 }
 0x2ec   :  { %v1975_v22 = vadd.f32 %v1970_v16, %v1945_v4  ;;  %v1974_v28 = vadd.f32 %v1969_v31, %v1944_v34 }
 0x2ed   :  { %v1962_v36 = vpop.permute.xlu1 %1961  ;;  %v1960_v15 = vpop.permute.xlu0 %1959 }
 0x2ee   :  { %v1972_v52 = vmul.f32 %v2718_v57, %v1962_v36  ;;  %v1971_v8 = vmul.f32 %v2718_v57, %v1960_v15  ;;  %v1994_v34 = vadd.f32 %v1989_v60, %v1974_v28  ;;  %v1995_v37 = vadd.f32 %v1990_v29, %v1975_v22 }
 0x2ef   :  { %2469 = vrot.lane.b32.xlu1 %v4431_v17, %s2841_s29  ;;  %2467 = vrot.lane.b32.xlu0 %v4418_v50, %s2841_s29 }
 0x2f0   :  { %v1977_v44 = vadd.f32 %v1972_v52, %v1947_v42  ;;  %v1976_v32 = vadd.f32 %v1971_v8, %v1946_v9  ;;  %v2808_v42 = vld [vmem:[#allocation2 + $0xea] sm:$0x3f]  ;;  %v4468_v52 = vld [vmem:[#allocation2 + $0x132] sm:$0xff] }
 0x2f1   :  { %v2011_v55 = vpop.permute.xlu1 %2010  ;;  %v2009_v20 = vpop.permute.xlu0 %2008  ;;  %v1992_v51 = vmul.f32 %v2808_v42, %v2719_v27  ;;  %4954 = vst [vmem:[#allocation47_spill] sm:$0xff] %v4468_v52  ;;  %v4470_v8 = vld [vmem:[#allocation2 + $0x12a] sm:$0xff] }
 0x2f2   :  { %v2024_v12 = vmul.f32 %v2720_v19, %v2011_v55  ;;  %v2023_v2 = vmul.f32 %v2720_v19, %v2009_v20  ;;  %v1996_v4 = vadd.f32 %v1991_v41, %v1976_v32  ;;  %4955 = vst [vmem:[#allocation12_spill] sm:$0xff] %v4470_v8  ;;  %v4476_v55 = vld [vmem:[#allocation2 + $0x13a] sm:$0x3f]  ;;  %v2722_v20 = vld [vmem:[%s4707_s1 + $0x36] ss:$0 sm:$0xff] }
 0x2f3   :  { %2473 = vrot.lane.b32.xlu1 %v4437_v5, %s2841_s29  ;;  %2471 = vrot.lane.b32.xlu0 %v4429_v39, %s2841_s29  ;;  %v1997_v36 = vadd.f32 %v1992_v51, %v1977_v44  ;;  %4956 = vst [vmem:[#allocation36_spill] sm:$0xff] %v4476_v55  ;;  %v2075_v41 = vmul.f32 %v2722_v20, %v4103_v58 }
 0x2f4   :  { %v2029_v57 = vadd.f32 %v2024_v12, %v1994_v34  ;;  %v2028_v21 = vadd.f32 %v2023_v2, %v1993_v46  ;;  %v2074_v29 = vmul.f32 %v2722_v20, %v4957_v40  ;;  %v2076_v58 = vmul.f32 %v2722_v20, %v4128_v3 }
 0x2f5   :  { %v2015_v0 = vpop.permute.xlu1 %2014  ;;  %v2013_v9 = vpop.permute.xlu0 %2012 }
 0x2f6   :  { %v2026_v14 = vmul.f32 %v2720_v19, %v2015_v0  ;;  %v2025_v11 = vmul.f32 %v2720_v19, %v2013_v9 }
 0x2f7   :  { %2522 = vrot.lane.b32.xlu1 %v4457_v18, %s2840_s28  ;;  %2520 = vrot.lane.b32.xlu0 %v4459_v53, %s2840_s28 }
 0x2f8   :  { %v2031_v54 = vadd.f32 %v2026_v14, %v1996_v4  ;;  %v2030_v16 = vadd.f32 %v2025_v11, %v1995_v37 }
 0x2f9   :  { %v2039_v31 = vpop.permute.xlu1 %2038  ;;  %v2017_v22 = vpop.permute.xlu0 %2016 }
 0x2fa   :  { %v2053_v28 = vmul.f32 %v2721_v7, %v2039_v31  ;;  %v2027_v15 = vmul.f32 %v2720_v19, %v2017_v22 }
 0x2fb   :  { %2526 = vrot.lane.b32.xlu1 %v4468_v52, %s2840_s28  ;;  %2524 = vrot.lane.b32.xlu0 %v4470_v8, %s2840_s28 }
 0x2fc   :  { %v2058_v48 = vadd.f32 %v2053_v28, %v2028_v21  ;;  %v2032_v60 = vadd.f32 %v2027_v15, %v1997_v36  ;;  %v2724_v15 = vld [vmem:[%s4707_s1 + $0x38] ss:$0 sm:$0xff] }
 0x2fd   :  { %v2043_v27 = vpop.permute.xlu1 %2042  ;;  %v2041_v25 = vpop.permute.xlu0 %2040 }
 0x2fe   :  { %v2055_v35 = vmul.f32 %v2721_v7, %v2043_v27  ;;  %v2054_v32 = vmul.f32 %v2721_v7, %v2041_v25  ;;  %v2079_v37 = vadd.f32 %v2074_v29, %v2058_v48  ;;  %v2078_v48 = vmul.f32 %v2722_v20, %v4151_v61  ;;  %v2725_v29 = vld [vmem:[%s4707_s1 + $0x39] ss:$0 sm:$0xff] }
 0x2ff   :  { %2550 = vrot.lane.b32.xlu1 %v4459_v53, %s2841_s29  ;;  %2528 = vrot.lane.b32.xlu0 %v4476_v55, %s2840_s28 }
 0x300   :  { %v2060_v19 = vadd.f32 %v2055_v35, %v2030_v16  ;;  %v2059_v44 = vadd.f32 %v2054_v32, %v2029_v57 }
 0x301   :  { %v2047_v34 = vpop.permute.xlu1 %2046  ;;  %v2045_v12 = vpop.permute.xlu0 %2044 }
 0x302   :  { %v2057_v46 = vmul.f32 %v2721_v7, %v2047_v34  ;;  %v2056_v2 = vmul.f32 %v2721_v7, %v2045_v12  ;;  %v2080_v4 = vadd.f32 %v2075_v41, %v2059_v44  ;;  %v2077_v7 = vmul.f32 %v2722_v20, %v4126_v26 }
 0x303   :  { %2554 = vrot.lane.b32.xlu1 %v4470_v8, %s2841_s29  ;;  %2552 = vrot.lane.b32.xlu0 %v4457_v18, %s2841_s29  ;;  %v2081_v28 = vadd.f32 %v2076_v58, %v2060_v19  ;;  %v2162_v58 = vmul.f32 %v2725_v29, %v4236_v6  ;;  %v2728_v8 = vld [vmem:[%s4707_s1 + $0x3c] ss:$0 sm:$0xff] }
 0x304   :  { %v2062_v57 = vadd.f32 %v2057_v46, %v2032_v60  ;;  %v2061_v21 = vadd.f32 %v2056_v2, %v2031_v54 }
 0x305   :  { %v2097_v0 = vpop.permute.xlu1 %2096  ;;  %v2095_v9 = vpop.permute.xlu0 %2094 }
 0x306   :  { %v2110_v14 = vmul.f32 %v2723_v62, %v2097_v0  ;;  %v2109_v11 = vmul.f32 %v2723_v62, %v2095_v9  ;;  %v2082_v31 = vadd.f32 %v2077_v7, %v2061_v21  ;;  %v2083_v3 = vadd.f32 %v2078_v48, %v2062_v57 }
 0x307   :  { %2558 = vrot.lane.b32.xlu1 %v4476_v55, %s2841_s29  ;;  %2556 = vrot.lane.b32.xlu0 %v4468_v52, %s2841_s29  ;;  %v2160_v57 = vmul.f32 %v2725_v29, %v4212_v24 }
 0x308   :  { %v2115_v42 = vadd.f32 %v2110_v14, %v2080_v4  ;;  %v2114_v51 = vadd.f32 %v2109_v11, %v2079_v37 }
 0x309   :  { %v2101_v16 = vpop.permute.xlu1 %2100  ;;  %v2099_v54 = vpop.permute.xlu0 %2098 }
 0x30a   :  { %v2112_v22 = vmul.f32 %v2723_v62, %v2101_v16  ;;  %v2111_v36 = vmul.f32 %v2723_v62, %v2099_v54 }
 0x30c   :  { %v2117_v60 = vadd.f32 %v2112_v22, %v2082_v31  ;;  %v2116_v27 = vadd.f32 %v2111_v36, %v2081_v28 }
 0x30d   :  { %v2125_v25 = vpop.permute.xlu1 %2124  ;;  %v2103_v26 = vpop.permute.xlu0 %2102 }
 0x30e   :  { %v2139_v35 = vmul.f32 %v2724_v15, %v2125_v25  ;;  %v2113_v32 = vmul.f32 %v2723_v62, %v2103_v26  ;;  %v2726_v62 = vld [vmem:[%s4707_s1 + $0x3a] ss:$0 sm:$0xff] }
 0x310   :  { %v2144_v44 = vadd.f32 %v2139_v35, %v2114_v51  ;;  %v2118_v34 = vadd.f32 %v2113_v32, %v2083_v3 }
 0x311   :  { %v2129_v12 = vpop.permute.xlu1 %2128  ;;  %v2127_v46 = vpop.permute.xlu0 %2126 }
 0x312   :  { %v2141_v2 = vmul.f32 %v2724_v15, %v2129_v12  ;;  %v2140_v19 = vmul.f32 %v2724_v15, %v2127_v46 }
 0x314   :  { %v2146_v41 = vadd.f32 %v2141_v2, %v2116_v27  ;;  %v2145_v40 = vadd.f32 %v2140_v19, %v2115_v42 }
 0x315   :  { %v2133_v61 = vpop.permute.xlu1 %2132  ;;  %v2131_v20 = vpop.permute.xlu0 %2130 }
 0x316   :  { %v2143_v21 = vmul.f32 %v2724_v15, %v2133_v61  ;;  %v2142_v0 = vmul.f32 %v2724_v15, %v2131_v20  ;;  %v2165_v11 = vadd.f32 %v2160_v57, %v2145_v40 }
 0x318   :  { %v2148_v9 = vadd.f32 %v2143_v21, %v2118_v34  ;;  %v2147_v4 = vadd.f32 %v2142_v0, %v2117_v60  ;;  %v2727_v0 = vld [vmem:[%s4707_s1 + $0x3b] ss:$0 sm:$0xff] }
 0x319   :  { %v2182_v14 = vpop.permute.xlu1 %2181  ;;  %v2180_v37 = vpop.permute.xlu0 %2179 }
 0x31a   :  { %v2195_v7 = vmul.f32 %v2726_v62, %v2182_v14  ;;  %v2167_v54 = vadd.f32 %v2162_v58, %v2147_v4  ;;  %v2159_v14 = vmul.f32 %v2725_v29, %v4214_v49  ;;  %v2729_v49 = vld [vmem:[%s4707_s1 + $0x3d] ss:$0 sm:$0xff] }
 0x31c   :  { %v2200_v42 = vadd.f32 %v2195_v7, %v2165_v11  ;;  %v2194_v11 = vmul.f32 %v2726_v62, %v2180_v37  ;;  %v2164_v7 = vadd.f32 %v2159_v14, %v2144_v44  ;;  %v2163_v14 = vmul.f32 %v2725_v29, %v4259_v63 }
 0x31d   :  { %v2186_v51 = vpop.permute.xlu1 %2185  ;;  %v2184_v16 = vpop.permute.xlu0 %2183  ;;  %v2245_v63 = vmul.f32 %v2728_v8, %v4312_v33  ;;  %v2732_v33 = vld [vmem:[%s4707_s1 + $0x40] ss:$0 sm:$0xff] }
 0x31e   :  { %v2197_v31 = vmul.f32 %v2726_v62, %v2186_v51  ;;  %v2199_v52 = vadd.f32 %v2194_v11, %v2164_v7  ;;  %v2196_v55 = vmul.f32 %v2726_v62, %v2184_v16  ;;  %v2168_v5 = vadd.f32 %v2163_v14, %v2148_v9 }
 0x320   :  { %v4512_v22 = vadd.f32 %v2197_v31, %v2167_v54  ;;  %v2161_v31 = vmul.f32 %v2725_v29, %v4238_v38  ;;  %v2730_v38 = vld [vmem:[%s4707_s1 + $0x3e] ss:$0 sm:$0xff] }
 0x321   :  { %v2210_v28 = vpop.permute.xlu1 %2209  ;;  %v2188_v36 = vpop.permute.xlu0 %2187 }
 0x322   :  { %v2224_v58 = vmul.f32 %v2727_v0, %v2210_v28  ;;  %v2166_v37 = vadd.f32 %v2161_v31, %v2146_v41  ;;  %v2198_v53 = vmul.f32 %v2726_v62, %v2188_v36 }
 0x324   :  { %v2229_v44 = vadd.f32 %v2224_v58, %v2199_v52  ;;  %v2201_v7 = vadd.f32 %v2196_v55, %v2166_v37  ;;  %v2203_v29 = vadd.f32 %v2198_v53, %v2168_v5 }
 0x325   :  { %v2214_v15 = vpop.permute.xlu1 %2213  ;;  %v2212_v48 = vpop.permute.xlu0 %2211 }
 0x326   :  { %v2225_v18 = vmul.f32 %v2727_v0, %v2212_v48  ;;  %v2226_v28 = vmul.f32 %v2727_v0, %v2214_v15  ;;  %v2244_v48 = vmul.f32 %v2728_v8, %v4314_v56 }
 0x328   :  { %v2230_v17 = vadd.f32 %v2225_v18, %v2200_v42  ;;  %v2231_v52 = vadd.f32 %v2226_v28, %v2201_v7  ;;  %v2249_v15 = vadd.f32 %v2244_v48, %v2229_v44  ;;  %v2731_v18 = vld [vmem:[%s4707_s1 + $0x3f] ss:$0 sm:$0xff] }
 0x329   :  { %v2218_v24 = vpop.permute.xlu1 %2217  ;;  %v2216_v27 = vpop.permute.xlu0 %2215  ;;  %v2331_v44 = vmul.f32 %v2731_v18, %v4379_v10  ;;  %v2734_v10 = vld [vmem:[%s4707_s1 + $0x42] ss:$0 sm:$0xff] }
 0x32a   :  { %v2228_v41 = vmul.f32 %v2727_v0, %v2218_v24  ;;  %v2227_v62 = vmul.f32 %v2727_v0, %v2216_v27  ;;  %v2250_v42 = vadd.f32 %v2245_v63, %v2230_v17  ;;  %v2330_v0 = vmul.f32 %v2731_v18, %v4381_v59 }
 0x32b   :  { %v2334_v63 = vmul.f32 %v2731_v18, %v4398_v13 }
 0x32c   :  { %v2233_v9 = vadd.f32 %v2228_v41, %v2203_v29 }
 0x32d   :  { %v2267_v60 = vpop.permute.xlu1 %2266  ;;  %v2265_v25 = vpop.permute.xlu0 %2264 }
 0x32e   :  { %v2279_v39 = vmul.f32 %v2729_v49, %v2265_v25  ;;  %v2280_v36 = vmul.f32 %v2729_v49, %v2267_v60  ;;  %v2248_v60 = vmul.f32 %v2728_v8, %v4349_v30 }
 0x330   :  { %v2284_v56 = vadd.f32 %v2279_v39, %v2249_v15  ;;  %v2285_v39 = vadd.f32 %v2280_v36, %v2250_v42  ;;  %v2736_v36 = vld [vmem:[%s4707_s1 + $0x44] ss:$0 sm:$0xff] }
 0x331   :  { %v4514_v26 = vpop.permute.xlu1 %2270  ;;  %v2269_v35 = vpop.permute.xlu0 %2268 }
 0x332   :  { %v2281_v55 = vmul.f32 %v2729_v49, %v2269_v35  ;;  %v2733_v35 = vld [vmem:[%s4707_s1 + $0x41] ss:$0 sm:$0xff]  ;;  %v2282_v30 = vmul.f32 %v2729_v49, %v4514_v26  ;;  %v2332_v26 = vmul.f32 %v2731_v18, %v4389_v45 }
 0x335   :  { %v2295_v3 = vpop.permute.xlu1 %2294  ;;  %v4516_v6 = vpop.permute.xlu0 %2272 }
 0x336   :  { %v2309_v58 = vmul.f32 %v2730_v38, %v2295_v3  ;;  %v2283_v25 = vmul.f32 %v2729_v49, %v4516_v6 }
 0x338   :  { %v2314_v53 = vadd.f32 %v2309_v58, %v2284_v56 }
 0x339   :  { %v2299_v32 = vpop.permute.xlu1 %2298  ;;  %v2297_v34 = vpop.permute.xlu0 %2296 }
 0x33a   :  { %v2310_v24 = vmul.f32 %v2730_v38, %v2297_v34  ;;  %v2311_v27 = vmul.f32 %v2730_v38, %v2299_v32  ;;  %v2247_v34 = vmul.f32 %v2728_v8, %v4332_v1  ;;  %v2335_v14 = vadd.f32 %v2330_v0, %v2314_v53 }
 0x33c   :  { %v2315_v37 = vadd.f32 %v2310_v24, %v2285_v39 }
 0x33d   :  { %v4518_v12 = vpop.permute.xlu1 %2302  ;;  %v4520_v46 = vpop.permute.xlu0 %2300 }
 0x33e   :  { %v2313_v6 = vmul.f32 %v2730_v38, %v4518_v12  ;;  %v2312_v1 = vmul.f32 %v2730_v38, %v4520_v46  ;;  %v2735_v46 = vld [vmem:[%s4707_s1 + $0x43] ss:$0 sm:$0xff] }
 0x341   :  { %v4522_v2 = vpop.permute.xlu1 %2352  ;;  %v4524_v19 = vpop.permute.xlu0 %2350 }
 0x342   :  { %v2365_v32 = vmul.f32 %v2732_v33, %v4524_v19  ;;  %v2366_v59 = vmul.f32 %v2732_v33, %v4522_v2 }
 0x344   :  { %v2370_v49 = vadd.f32 %v2365_v32, %v2335_v14 }
 0x345   :  { %v4526_v40 = vpop.permute.xlu1 %2356  ;;  %v4528_v61 = vpop.permute.xlu0 %2354 }
 0x349   :  { %v4530_v20 = vpop.permute.xlu1 %2380  ;;  %v4532_v21 = vpop.permute.xlu0 %2358 }
 0x34a   :  { %v2395_v48 = vmul.f32 %v2733_v35, %v4530_v20  ;;  %v2336_v20 = vadd.f32 %v2331_v44, %v2315_v37 }
 0x34c   :  { %v2400_v38 = vadd.f32 %v2395_v48, %v2370_v49  ;;  %v2371_v29 = vadd.f32 %v2366_v59, %v2336_v20  ;;  %v4964_v59 = vld [vmem:[#allocation8_spill] sm:$0xff]  ;;  %v4965_v49 = vld [vmem:[#allocation37_spill] sm:$0xff] }
 0x34d   :  { %v4537_v57 = vpop.permute.xlu1 %2384  ;;  %v4539_v4 = vpop.permute.xlu0 %2382 }
 0x34e   :  { %v2396_v58 = vmul.f32 %v2733_v35, %v4539_v4  ;;  %v2397_v45 = vmul.f32 %v2733_v35, %v4537_v57  ;;  %v2368_v57 = vmul.f32 %v2732_v33, %v4526_v40 }
 0x351   :  { %v4542_v51 = vpop.permute.xlu1 %2388  ;;  %v4544_v54 = vpop.permute.xlu0 %2386 }
 0x352   :  { %4958 = vst [vmem:[#allocation52_spill] sm:$0xff] %v4544_v54  ;;  %v2246_v54 = vmul.f32 %v2728_v8, %v4334_v47  ;;  %v2232_v47 = vadd.f32 %v2227_v62, %v4512_v22  ;;  %v2253_v22 = vadd.f32 %v2248_v60, %v2233_v9  ;;  %v2369_v62 = vmul.f32 %v2732_v33, %v4532_v21 }
 0x353   :  { %v2415_v9 = vmul.f32 %v2734_v10, %v4420_v23  ;;  %v2399_v53 = vmul.f32 %v2733_v35, %v4542_v51  ;;  %v2416_v21 = vmul.f32 %v2734_v10, %v4418_v50  ;;  %v2737_v50 = vld [vmem:[%s4707_s1 + $0x45] ss:$0 sm:$0xff] }
 0x354   :  { %v2251_v5 = vadd.f32 %v2246_v54, %v2231_v52  ;;  %v2252_v7 = vadd.f32 %v2247_v34, %v2232_v47  ;;  %v2288_v41 = vadd.f32 %v2283_v25, %v2253_v22  ;;  %v2367_v52 = vmul.f32 %v2732_v33, %v4528_v61 }
 0x355   :  { %v4557_v16 = vpop.permute.xlu1 %2437  ;;  %v4559_v11 = vpop.permute.xlu0 %2435  ;;  %v2420_v60 = vadd.f32 %v2415_v9, %v2400_v38  ;;  %v4966_v38 = vld [vmem:[#allocation11_spill] sm:$0xff] }
 0x356   :  { %4959 = vst [vmem:[#allocation40_spill] sm:$0xff] %v4557_v16  ;;  %v2286_v54 = vadd.f32 %v2281_v55, %v2251_v5  ;;  %v2287_v12 = vadd.f32 %v2282_v30, %v2252_v7  ;;  %v2318_v15 = vadd.f32 %v2313_v6, %v2288_v41  ;;  %v2333_v55 = vmul.f32 %v2731_v18, %v4387_v43 }
 0x357   :  { %v2450_v24 = vmul.f32 %v2735_v46, %v4559_v11  ;;  %v2401_v5 = vadd.f32 %v2396_v58, %v2371_v29  ;;  %v4962_v11 = vld [vmem:[#allocation41_spill] sm:$0xff] }
 0x358   :  { %v2316_v28 = vadd.f32 %v2311_v27, %v2286_v54  ;;  %v2317_v61 = vadd.f32 %v2312_v1, %v2287_v12  ;;  %v2339_v13 = vadd.f32 %v2334_v63, %v2318_v15  ;;  %v2417_v32 = vmul.f32 %v2734_v10, %v4962_v11 }
 0x359   :  { %v4563_v31 = vpop.permute.xlu1 %2441  ;;  %v4565_v16 = vpop.permute.xlu0 %2439  ;;  %v4960_v34 = vld [vmem:[#allocation52_spill] sm:$0xff]  ;;  %v2455_v40 = vadd.f32 %v2450_v24, %v2420_v60 }
 0x35a   :  { %v2337_v2 = vadd.f32 %v2332_v26, %v2316_v28  ;;  %v2338_v39 = vadd.f32 %v2333_v55, %v2317_v61  ;;  %v2374_v25 = vadd.f32 %v2369_v62, %v2339_v13  ;;  %v2398_v43 = vmul.f32 %v2733_v35, %v4960_v34  ;;  %v2738_v35 = vld [vmem:[%s4707_s1 + $0x46] ss:$0 sm:$0xff]  ;;  %v4963_v28 = vld [vmem:[#allocation7_spill] sm:$0xff] }
 0x35b   :  { %v2452_v33 = vmul.f32 %v2735_v46, %v4565_v16  ;;  %v2419_v14 = vmul.f32 %v2734_v10, %v4963_v28  ;;  %v2418_v26 = vmul.f32 %v2734_v10, %v4964_v59  ;;  %v2453_v15 = vmul.f32 %v2735_v46, %v4563_v31 }
 0x35c   :  { %v2372_v42 = vadd.f32 %v2367_v52, %v2337_v2  ;;  %v2373_v51 = vadd.f32 %v2368_v57, %v2338_v39  ;;  %v2404_v30 = vadd.f32 %v2399_v53, %v2374_v25  ;;  %v2500_v52 = vmul.f32 %v2737_v50, %v4965_v49 }
 0x35d   :  { %v2466_v17 = vpop.permute.xlu1 %2465  ;;  %v4580_v3 = vpop.permute.xlu0 %2443  ;;  %v4961_v18 = vld [vmem:[#allocation40_spill] sm:$0xff] }
 0x35e   :  { %v2402_v27 = vadd.f32 %v2397_v45, %v2372_v42  ;;  %v2480_v47 = vmul.f32 %v2736_v36, %v2466_v17  ;;  %v2451_v23 = vmul.f32 %v2735_v46, %v4961_v18  ;;  %v2421_v17 = vadd.f32 %v2416_v21, %v2401_v5  ;;  %v4967_v42 = vld [vmem:[#allocation12_spill] sm:$0xff] }
 0x35f   :  { %v2403_v48 = vadd.f32 %v2398_v43, %v2373_v51  ;;  %v2454_v16 = vmul.f32 %v2735_v46, %v4580_v3  ;;  %v2424_v20 = vadd.f32 %v2419_v14, %v2404_v30  ;;  %v2501_v45 = vmul.f32 %v2737_v50, %v4966_v38 }
 0x360   :  { %v2422_v37 = vadd.f32 %v2417_v32, %v2402_v27  ;;  %v2485_v6 = vadd.f32 %v2480_v47, %v2455_v40  ;;  %v2456_v7 = vadd.f32 %v2451_v23, %v2421_v17  ;;  %v2502_v24 = vmul.f32 %v2737_v50, %v4967_v42  ;;  %v4968_v27 = vld [vmem:[#allocation36_spill] sm:$0xff] }
 0x361   :  { %v2470_v8 = vpop.permute.xlu1 %2469  ;;  %v2468_v19 = vpop.permute.xlu0 %2467  ;;  %v2423_v61 = vadd.f32 %v2418_v26, %v2403_v48  ;;  %v2459_v29 = vadd.f32 %v2454_v16, %v2424_v20  ;;  %v2504_v60 = vmul.f32 %v2737_v50, %v4968_v27 }
 0x362   :  { %v2481_v22 = vmul.f32 %v2736_v36, %v2468_v19  ;;  %v2482_v44 = vmul.f32 %v2736_v36, %v2470_v8  ;;  %v2457_v19 = vadd.f32 %v2452_v33, %v2422_v37  ;;  %v2739_v8 = vld [vmem:[%s4707_s1 + $0x47] ss:$0 sm:$0xff]  ;;  %v2505_v63 = vadd.f32 %v2500_v52, %v2485_v6 }
 0x364   :  { %v2486_v58 = vadd.f32 %v2481_v22, %v2456_v7  ;;  %v2487_v3 = vadd.f32 %v2482_v44, %v2457_v19 }
 0x365   :  { %v2474_v56 = vpop.permute.xlu1 %2473  ;;  %v2472_v4 = vpop.permute.xlu0 %2471 }
 0x366   :  { %v2484_v2 = vmul.f32 %v2736_v36, %v2474_v56  ;;  %v2483_v10 = vmul.f32 %v2736_v36, %v2472_v4  ;;  %v2458_v56 = vadd.f32 %v2453_v15, %v2423_v61  ;;  %v2506_v5 = vadd.f32 %v2501_v45, %v2486_v58 }
 0x367   :  { %v2507_v53 = vadd.f32 %v2502_v24, %v2487_v3 }
 0x368   :  { %v2489_v13 = vadd.f32 %v2484_v2, %v2459_v29  ;;  %v2488_v47 = vadd.f32 %v2483_v10, %v2458_v56 }
 0x369   :  { %v2523_v0 = vpop.permute.xlu1 %2522  ;;  %v2521_v54 = vpop.permute.xlu0 %2520 }
 0x36a   :  { %v2535_v12 = vmul.f32 %v2738_v35, %v2521_v54  ;;  %v2536_v62 = vmul.f32 %v2738_v35, %v2523_v0  ;;  %v4969_v0 = vld [vmem:[#allocation47_spill] sm:$0xff]  ;;  %v2509_v32 = vadd.f32 %v2504_v60, %v2489_v13 }
 0x36b   :  { %v2503_v54 = vmul.f32 %v2737_v50, %v4969_v0 }
 0x36c   :  { %v2540_v31 = vadd.f32 %v2535_v12, %v2505_v63  ;;  %v2541_v39 = vadd.f32 %v2536_v62, %v2506_v5 }
 0x36d   :  { %v2527_v41 = vpop.permute.xlu1 %2526  ;;  %v2525_v1 = vpop.permute.xlu0 %2524  ;;  %v2508_v30 = vadd.f32 %v2503_v54, %v2488_v47 }
 0x36e   :  { %v2537_v46 = vmul.f32 %v2738_v35, %v2525_v1  ;;  %v2538_v11 = vmul.f32 %v2738_v35, %v2527_v41 }
 0x370   :  { %v2542_v4 = vadd.f32 %v2537_v46, %v2507_v53  ;;  %v2543_v14 = vadd.f32 %v2538_v11, %v2508_v30 }
 0x371   :  { %v2551_v55 = vpop.permute.xlu1 %2550  ;;  %v2529_v9 = vpop.permute.xlu0 %2528 }
 0x372   :  { %v2565_v57 = vmul.f32 %v2739_v8, %v2551_v55  ;;  %v2539_v25 = vmul.f32 %v2738_v35, %v2529_v9 }
 0x374   :  { %v2570_v21 = vadd.f32 %v2565_v57, %v2540_v31  ;;  %v2544_v17 = vadd.f32 %v2539_v25, %v2509_v32 }
 0x375   :  { %v2555_v34 = vpop.permute.xlu1 %2554  ;;  %v2553_v36 = vpop.permute.xlu0 %2552 }
 0x376   :  { %v2575_v43 = vmul.f32 1.044715, %v2570_v21  ;;  %v2567_v18 = vmul.f32 %v2739_v8, %v2555_v34  ;;  %v2566_v23 = vmul.f32 %v2739_v8, %v2553_v36 }
 0x378   :  { %v2580_v40 = vadd.f32 0.7978846, %v2575_v43  ;;  %v2572_v33 = vadd.f32 %v2567_v18, %v2542_v4  ;;  %v2571_v51 = vadd.f32 %v2566_v23, %v2541_v39 }
 0x379   :  { %v2559_v22 = vpop.permute.xlu1 %2558  ;;  %v2557_v37 = vpop.permute.xlu0 %2556 }
 0x37a   :  { %2766 = vtanh.f32 %v2580_v40  ;;  %v2577_v6 = vmul.f32 1.044715, %v2572_v33  ;;  %v2576_v44 = vmul.f32 1.044715, %v2571_v51  ;;  %v2569_v28 = vmul.f32 %v2739_v8, %v2559_v22 }
 0x37b   :  { %v2568_v48 = vmul.f32 %v2739_v8, %v2557_v37 }
 0x37c   :  { %v2582_v7 = vadd.f32 0.7978846, %v2577_v6  ;;  %v2581_v16 = vadd.f32 0.7978846, %v2576_v44  ;;  %v2574_v1 = vadd.f32 %v2569_v28, %v2544_v17 }
 0x37d   :  { %v2573_v59 = vadd.f32 %v2568_v48, %v2543_v14 }
 0x37e   :  { %2768 = vtanh.f32 %v2582_v7  ;;  %v2579_v50 = vmul.f32 1.044715, %v2574_v1 }
 0x37f   :  { %2770 = vtanh.f32 %v2581_v16  ;;  %v2578_v35 = vmul.f32 1.044715, %v2573_v59 }
 0x380   :  { %v2584_v41 = vadd.f32 0.7978846, %v2579_v50 }
 0x381   :  { %v2583_v26 = vadd.f32 0.7978846, %v2578_v35 }
 0x382   :  { %2772 = vtanh.f32 %v2584_v41 }
 0x383   :  { %2774 = vtanh.f32 %v2583_v26 }
 0x384   :  { %v2767_v49 = vpop.eup %2766 }
 0x385   :  { %v2590_v52 = vadd.f32 %v2767_v49, %v2570_v21 }
 0x387   :  { %v2595_v19 = vmul.f32 0.5, %v2590_v52 }
 0x388   :  { %v2769_v12 = vpop.eup %2768 }
 0x389   :  { %v2771_v15 = vpop.eup %2770  ;;  %2601 = vst.msk [vmem:[%s4709_s3] sm:$0xff] %vm2600_vm4, %v2595_v19  ;;  %v2592_v20 = vadd.f32 %v2769_v12, %v2572_v33  ;;  %2608 = vrot.lane.b32.xlu0 %v2595_v19, %s2842_s2 }
 0x38a   :  { %v2591_v58 = vadd.f32 %v2771_v15, %v2571_v51 }
 0x38b   :  { %v2597_v2 = vmul.f32 0.5, %v2592_v20 }
 0x38c   :  { %v2773_v8 = vpop.eup %2772  ;;  %v2596_v38 = vmul.f32 0.5, %v2591_v58 }
 0x38d   :  { %v2775_v45 = vpop.eup %2774  ;;  %v2594_v3 = vadd.f32 %v2773_v8, %v2574_v1  ;;  %2612 = vrot.lane.b32.xlu0 %v2597_v2, %s2842_s2  ;;  %2604 = vst.msk [vmem:[%s4709_s3 + $0x10] sm:$0x3] %vm2603_vm5, %v2597_v2 }
 0x38e   :  { %2746 = vst.msk [vmem:[%s4709_s3 + $0x44] sm:$0xf0] %vm2635_vm6, %v2597_v2  ;;  %v2593_v63 = vadd.f32 %v2775_v45, %v2573_v59  ;;  %2610 = vrot.lane.b32.xlu1 %v2596_v38, %s2842_s2 }
 0x38f   :  { %2602 = vst.msk [vmem:[%s4709_s3 + $0x8] sm:$0xff] %vm2600_vm4, %v2596_v38  ;;  %v2599_v61 = vmul.f32 0.5, %v2594_v3 }
 0x390   :  { %v2598_v29 = vmul.f32 0.5, %v2593_v63 }
 0x391   :  { %2623 = vrot.lane.b32.xlu0 %v2596_v38, %s2843_s17  ;;  %2748 = vst.msk [vmem:[%s4709_s3 + $0x54] sm:$0x3f] %vm2638_vm7, %v2599_v61 }
 0x392   :  { %2747 = vst.msk [vmem:[%s4709_s3 + $0x4c] sm:$0xff] %vm2600_vm4, %v2598_v29  ;;  %2621 = vrot.lane.b32.xlu1 %v2595_v19, %s2843_s17 }
 0x395   :  { %2642 = vrot.lane.b32.xlu0 %v2598_v29, %s2842_s2 }
 0x396   :  { %2625 = vrot.lane.b32.xlu1 %v2597_v2, %s2843_s17 }
 0x399   :  { %2652 = vrot.lane.b32.xlu0 %v2598_v29, %s2843_s17 }
 0x39a   :  { %2644 = vrot.lane.b32.xlu1 %v2599_v61, %s2842_s2 }
 0x39e   :  { %2654 = vrot.lane.b32.xlu1 %v2599_v61, %s2843_s17 }
 0x3fb   :  { %v2609_v10 = vpop.permute.xlu0 %2608 }
 0x3fc   :  { %2740 = vst.msk [vmem:[%s4709_s3 + $0x18] sm:$0xff] %vm2600_vm4, %v2609_v10 }
 0x3ff   :  { %v2613_v62 = vpop.permute.xlu0 %2612 }
 0x400   :  { %v2611_v55 = vpop.permute.xlu1 %2610  ;;  %2742 = vst.msk [vmem:[%s4709_s3 + $0x28] sm:$0x3] %vm2603_vm5, %v2613_v62 }
 0x401   :  { %2749 = vst.msk [vmem:[%s4709_s3 + $0x5c] sm:$0xf0] %vm2635_vm6, %v2613_v62 }
 0x402   :  { %2741 = vst.msk [vmem:[%s4709_s3 + $0x20] sm:$0xff] %vm2600_vm4, %v2611_v55 }
 0x403   :  { %v2624_v9 = vpop.permute.xlu0 %2623 }
 0x404   :  { %v2622_v42 = vpop.permute.xlu1 %2621  ;;  %2744 = vst.msk [vmem:[%s4709_s3 + $0x38] sm:$0xff] %vm2600_vm4, %v2624_v9 }
 0x405   :  { %2743 = vst.msk [vmem:[%s4709_s3 + $0x30] sm:$0xff] %vm2600_vm4, %v2622_v42 }
 0x407   :  { %v2643_v24 = vpop.permute.xlu0 %2642 }
 0x408   :  { %v2626_v31 = vpop.permute.xlu1 %2625  ;;  %2750 = vst.msk [vmem:[%s4709_s3 + $0x64] sm:$0xff] %vm2600_vm4, %v2643_v24 }
 0x409   :  { %2745 = vst.msk [vmem:[%s4709_s3 + $0x40] sm:$0x3] %vm2603_vm5, %v2626_v31 }
 0x40a   :  { %2752 = vst.msk [vmem:[%s4709_s3 + $0x74] sm:$0xf0] %vm2635_vm6, %v2626_v31 }
 0x40b   :  { %v2653_v46 = vpop.permute.xlu0 %2652 }
 0x40c   :  { %v2645_v57 = vpop.permute.xlu1 %2644  ;;  %2753 = vst.msk [vmem:[%s4709_s3 + $0x7c] sm:$0xff] %vm2600_vm4, %v2653_v46 }
 0x40d   :  { %2751 = vst.msk [vmem:[%s4709_s3 + $0x6c] sm:$0x3f] %vm2638_vm7, %v2645_v57 }
 0x410   :  { %v2655_v56 = vpop.permute.xlu1 %2654 }
 0x411   :  { %2754 = vst.msk [vmem:[%s4709_s3 + $0x84] sm:$0x3f] %vm2638_vm7, %v2655_v56 }
 0x412   :  { %2666 = vsyncpa [#allocation4], 1 }

</bundles_post_ra>
